<compile_context>
chip_gen: v7x
topology: tpu7x:2x2x1
jax: 0.10.0
libtpu: 0.0.40
codegen_flags: <defaults>
</compile_context>

<pallas_src>
import functools

import jax
import jax.numpy as jnp
from jax.experimental import pallas as pl
from jax.experimental.pallas import tpu as pltpu


def _round_up(x, m):
    return ((x + m - 1) // m) * m


def _silu(v):
    # jnp.exp runs on the EUP; the exact divide keeps the 1e-4 reference check
    # tight (pl.reciprocal(..., approx=True) would move it to the EUP too).
    return v * (1.0 / (1.0 + jnp.exp(-v)))


# ----------------------------------------------------------------------------
# Fused kernel: cv1 (1x1) -> n x (3x3) -> + y.  One grid step == one image.
# ----------------------------------------------------------------------------
def _c1_kernel(x_ref, w1_ref, b1_ref, w3_ref, b3_ref, o_ref,
               act_scr, y_scr, *, H, W, cin, cp, n_layers, w_off):
    HW = H * W

    # ---- cv1: 1x1 conv (+ folded BN) + SiLU --------------------------------
    x2d = x_ref[...]                                     # (HW, cin) raw input
    if cin <= 8:
        # Tiny K: skip the MXU, do cin broadcast-FMAs on the VPU directly in
        # the lane-dense (HW, cp) layout.
        w1 = w1_ref[...]                                 # (cin, cp)
        acc = jnp.zeros((HW, cp), jnp.float32)
        for ci in range(cin):
            acc = acc + x2d[:, ci:ci + 1] * w1[ci:ci + 1, :]
    else:
        acc = jnp.dot(x2d, w1_ref[...], preferred_element_type=jnp.float32)
    y = _silu(acc + b1_ref[...])                         # (HW, cp) lane-dense

    if n_layers == 0:                                    # empty nn.Sequential
        o_ref[...] = (y + y).astype(o_ref.dtype)
        return

    y_scr[...] = y                                       # residual kept in VMEM
    # Zero-halo scratch replaces the wrapper-side jnp.pad HBM round trip.
    act_scr[...] = jnp.zeros(act_scr.shape, jnp.float32)
    act_scr[1:1 + H, w_off:w_off + W, :] = y.reshape(H, W, cp)   # aligned store

    # ---- m: n x (3x3 'same' conv + folded BN + SiLU) -----------------------
    for li in range(n_layers):
        acc = jnp.zeros((HW, cp), jnp.float32)
        for kw in range(3):
            # One sublane-offset read per column offset kw; the kh row offsets
            # below are free slices along the untiled major axis.
            c0 = w_off - 1 + kw
            xkw = act_scr[:, c0:c0 + W, :]               # (H+2, W, cp)
            for kh in range(3):
                patch = xkw[kh:kh + H].reshape(HW, cp)   # free: W % 8 == 0
                acc = acc + jnp.dot(patch, w3_ref[li, kh * 3 + kw],
                                    preferred_element_type=jnp.float32)
        z = _silu(acc + b3_ref[li])                      # (HW, cp)

        if li == n_layers - 1:
            # Residual fused into the last layer; lane-dense 128-wide store.
            o_ref[...] = (z + y_scr[...]).astype(o_ref.dtype)
        else:
            act_scr[1:1 + H, w_off:w_off + W, :] = z.reshape(H, W, cp)


# ----------------------------------------------------------------------------
# Wrapper (glue): layout, channel padding, pallas_call
# ----------------------------------------------------------------------------
def _pad_params(params, cp):
    """Zero-pad BN-folded conv weights/biases to cp lanes (tiny, done once)."""
    w1, b1 = params["cv1"]                               # (cin, c2), (c2,)
    c2 = w1.shape[1]
    w1p = jnp.zeros((w1.shape[0], cp), jnp.float32).at[:, :c2].set(w1)
    b1p = jnp.zeros((1, cp), jnp.float32).at[:, :c2].set(b1)
    w3s, b3s = [], []
    for w3, b3 in params["m"]:                           # (3,3,c2,c2) HWIO
        w3p = jnp.zeros((3, 3, cp, cp), jnp.float32).at[:, :, :c2, :c2].set(w3)
        b3p = jnp.zeros((1, cp), jnp.float32).at[:, :c2].set(b3)
        w3s.append(w3p.reshape(9, cp, cp))
        b3s.append(b3p)
    if w3s:
        w3_all = jnp.stack(w3s)                          # (n, 9, cp, cp)
        b3_all = jnp.stack(b3s)                          # (n, 1, cp)
    else:                                                # n == 0 (dummy)
        w3_all = jnp.zeros((1, 9, cp, cp), jnp.float32)
        b3_all = jnp.zeros((1, 1, cp), jnp.float32)
    return w1p, b1p, w3_all, b3_all


@jax.jit
def c1_forward(x_nchw, params):
    """Full C1 forward.  Input NCHW (PyTorch convention), output NCHW."""
    N, cin, H, W = x_nchw.shape
    c2 = params["cv1"][0].shape[1]
    n_layers = len(params["m"])
    cp = _round_up(max(c2, 128), 128)     # lane-dense padded channel width
    HW = H * W
    w_off = 8                              # 8-aligned column offset of data in
    wp = w_off + W + 8                     # the zero-halo scratch

    w1p, b1p, w3p, b3p = _pad_params(params, cp)
    x_flat = jnp.transpose(x_nchw, (0, 2, 3, 1)).reshape(N, HW, cin)

    kernel = functools.partial(
        _c1_kernel, H=H, W=W, cin=cin, cp=cp, n_layers=n_layers, w_off=w_off)

    out_padded = pl.pallas_call(
        kernel,
        out_shape=jax.ShapeDtypeStruct((N, HW, cp), jnp.float32),
        grid=(N,),
        in_specs=[
            pl.BlockSpec((None, HW, cin), lambda b: (b, 0, 0)),      # x
            pl.BlockSpec(w1p.shape, lambda b: (0, 0)),               # w1
            pl.BlockSpec(b1p.shape, lambda b: (0, 0)),               # b1
            pl.BlockSpec(w3p.shape, lambda b: (0, 0, 0, 0)),         # w3 (all)
            pl.BlockSpec(b3p.shape, lambda b: (0, 0, 0)),            # b3 (all)
        ],
        out_specs=pl.BlockSpec((None, HW, cp), lambda b: (b, 0, 0)),
        scratch_shapes=[
            pltpu.VMEM((H + 2, wp, cp), jnp.float32),   # zero-halo activation
            pltpu.VMEM((HW, cp), jnp.float32),          # y kept for residual
        ],
        compiler_params=pltpu.CompilerParams(
            dimension_semantics=("parallel",)),          # v7x: 2 TCs share batch
    )(x_flat, w1p, b1p, w3p, b3p)

    out = out_padded[:, :, :c2].reshape(N, H, W, c2)     # drop channel padding
    return jnp.transpose(out, (0, 3, 1, 2))              # back to NCHW


# ----------------------------------------------------------------------------
# Parameter construction (deterministic, BN folded into conv weight/bias)
# ----------------------------------------------------------------------------
def _fold_bn(w_oihw, gamma, beta, mean, var, eps=1e-3):
    scale = gamma / jnp.sqrt(var + eps)
    w = w_oihw * scale[:, None, None, None]
    b = beta - mean * scale
    return w, b


def make_params(key, c1, c2, n=1):
    keys = jax.random.split(key, 2 + n)

    def bn_params(k, c):
        k1, k2, k3, k4 = jax.random.split(k, 4)
        gamma = 0.5 + jax.random.uniform(k1, (c,), jnp.float32)
        beta = 0.1 * jax.random.normal(k2, (c,), jnp.float32)
        mean = 0.1 * jax.random.normal(k3, (c,), jnp.float32)
        var = 0.5 + jax.random.uniform(k4, (c,), jnp.float32)
        return gamma, beta, mean, var

    # cv1: Conv2d(c1, c2, 1, 1, bias=False) + BN(c2)
    kw, kb = jax.random.split(keys[0])
    w1 = 0.2 * jax.random.normal(kw, (c2, c1, 1, 1), jnp.float32)
    w1f, b1f = _fold_bn(w1, *bn_params(kb, c2))
    cv1 = (w1f[:, :, 0, 0].T, b1f)                       # (c1, c2), (c2,)

    # m: n x [Conv2d(c2, c2, 3, pad=1, bias=False) + BN(c2)]
    m = []
    for i in range(n):
        kw, kb = jax.random.split(keys[1 + i])
        w3 = 0.1 * jax.random.normal(kw, (c2, c2, 3, 3), jnp.float32)
        w3f, b3f = _fold_bn(w3, *bn_params(kb, c2))
        m.append((jnp.transpose(w3f, (2, 3, 1, 0)), b3f))  # HWIO, (c2,)
    return {"cv1": cv1, "m": m}


# ----------------------------------------------------------------------------
# Pure-JAX reference (for correctness check)
# ----------------------------------------------------------------------------
def _ref_forward(x_nchw, params):
    x = jnp.transpose(x_nchw, (0, 2, 3, 1))
    w1, b1 = params["cv1"]
    y = jnp.einsum("nhwc,cd->nhwd", x, w1) + b1
    y = y * jax.nn.sigmoid(y)
    z = y
    for w3, b3 in params["m"]:
        t = jax.lax.conv_general_dilated(
            z, w3, (1, 1), ((1, 1), (1, 1)),
            dimension_numbers=("NHWC", "HWIO", "NHWC")) + b3
        z = t * jax.nn.sigmoid(t)
    return jnp.transpose(z + y, (0, 3, 1, 2))


# ----------------------------------------------------------------------------
if __name__ == "__main__":
    key = jax.random.PRNGKey(0)
    k_x, k_p = jax.random.split(key)

    N, C1_IN, C2_OUT, H, W, N_LAYERS = 2, 4, 8, 16, 16, 2
    x = jax.random.normal(k_x, (N, C1_IN, H, W), jnp.float32)  # NCHW input
    params = make_params(k_p, C1_IN, C2_OUT, n=N_LAYERS)

    out = jax.block_until_ready(c1_forward(x, params))

    ref = _ref_forward(x, params)
    assert out.shape == (N, C2_OUT, H, W), out.shape
    assert jnp.allclose(out, ref, atol=1e-4, rtol=1e-4), "mismatch vs reference"

    print("KERNEL_OK")
</pallas_src>

<mosaic_0001>
module attributes {stable_mosaic.version = 11 : i64} {
  func.func @_c1_kernel(%arg0: i32, %arg1: memref<1x256x4xf32, #tpu.memory_space<vmem>>, %arg2: memref<4x128xf32, #tpu.memory_space<vmem>>, %arg3: memref<1x128xf32, #tpu.memory_space<vmem>>, %arg4: memref<2x9x128x128xf32, #tpu.memory_space<vmem>>, %arg5: memref<2x1x128xf32, #tpu.memory_space<vmem>>, %arg6: memref<1x256x128xf32, #tpu.memory_space<vmem>>, %arg7: memref<18x32x128xf32, #tpu.memory_space<vmem>>, %arg8: memref<256x128xf32, #tpu.memory_space<vmem>>) attributes {dimension_semantics = [#tpu.dimension_semantics<parallel>], iteration_bounds = array<i64: 2>, scalar_prefetch = 0 : i64, scratch_operands = 2 : i64, tpu.core_type = #tpu.core_type<tc>, window_params = [{transform_indices = @transform_0, window_bounds = array<i64: 1, 256, 4>}, {pipeline_mode = #tpu.pipeline_mode<synchronous>, transform_indices = @transform_1, window_bounds = array<i64: 4, 128>}, {pipeline_mode = #tpu.pipeline_mode<synchronous>, transform_indices = @transform_2, window_bounds = array<i64: 1, 128>}, {pipeline_mode = #tpu.pipeline_mode<synchronous>, transform_indices = @transform_3, window_bounds = array<i64: 2, 9, 128, 128>}, {pipeline_mode = #tpu.pipeline_mode<synchronous>, transform_indices = @transform_4, window_bounds = array<i64: 2, 1, 128>}, {transform_indices = @transform_5, window_bounds = array<i64: 1, 256, 128>}]} {
    %c0 = arith.constant 0 : index
    %c0_0 = arith.constant 0 : index
    %c0_1 = arith.constant 0 : index
    %0 = vector.load %arg1[%c0, %c0_0, %c0_1] : memref<1x256x4xf32, #tpu.memory_space<vmem>>, vector<1x256x4xf32>
    %1 = vector.shape_cast %0 : vector<1x256x4xf32> to vector<256x4xf32>
    %c0_2 = arith.constant 0 : index
    %c0_3 = arith.constant 0 : index
    %2 = vector.load %arg2[%c0_2, %c0_3] : memref<4x128xf32, #tpu.memory_space<vmem>>, vector<4x128xf32>
    %cst = arith.constant 0.000000e+00 : f32
    %3 = vector.broadcast %cst : f32 to vector<256x128xf32>
    %4 = vector.extract_strided_slice %1 {offsets = [0, 0], sizes = [256, 1], strides = [1, 1]} : vector<256x4xf32> to vector<256x1xf32>
    %5 = vector.extract_strided_slice %2 {offsets = [0, 0], sizes = [1, 128], strides = [1, 1]} : vector<4x128xf32> to vector<1x128xf32>
    %6 = vector.broadcast %4 : vector<256x1xf32> to vector<256x128xf32>
    %7 = vector.broadcast %5 : vector<1x128xf32> to vector<256x128xf32>
    %8 = arith.mulf %6, %7 : vector<256x128xf32>
    %9 = arith.addf %3, %8 : vector<256x128xf32>
    %10 = vector.extract_strided_slice %1 {offsets = [0, 1], sizes = [256, 1], strides = [1, 1]} : vector<256x4xf32> to vector<256x1xf32>
    %11 = vector.extract_strided_slice %2 {offsets = [1, 0], sizes = [1, 128], strides = [1, 1]} : vector<4x128xf32> to vector<1x128xf32>
    %12 = vector.broadcast %10 : vector<256x1xf32> to vector<256x128xf32>
    %13 = vector.broadcast %11 : vector<1x128xf32> to vector<256x128xf32>
    %14 = arith.mulf %12, %13 : vector<256x128xf32>
    %15 = arith.addf %9, %14 : vector<256x128xf32>
    %16 = vector.extract_strided_slice %1 {offsets = [0, 2], sizes = [256, 1], strides = [1, 1]} : vector<256x4xf32> to vector<256x1xf32>
    %17 = vector.extract_strided_slice %2 {offsets = [2, 0], sizes = [1, 128], strides = [1, 1]} : vector<4x128xf32> to vector<1x128xf32>
    %18 = vector.broadcast %16 : vector<256x1xf32> to vector<256x128xf32>
    %19 = vector.broadcast %17 : vector<1x128xf32> to vector<256x128xf32>
    %20 = arith.mulf %18, %19 : vector<256x128xf32>
    %21 = arith.addf %15, %20 : vector<256x128xf32>
    %22 = vector.extract_strided_slice %1 {offsets = [0, 3], sizes = [256, 1], strides = [1, 1]} : vector<256x4xf32> to vector<256x1xf32>
    %23 = vector.extract_strided_slice %2 {offsets = [3, 0], sizes = [1, 128], strides = [1, 1]} : vector<4x128xf32> to vector<1x128xf32>
    %24 = vector.broadcast %22 : vector<256x1xf32> to vector<256x128xf32>
    %25 = vector.broadcast %23 : vector<1x128xf32> to vector<256x128xf32>
    %26 = arith.mulf %24, %25 : vector<256x128xf32>
    %27 = arith.addf %21, %26 : vector<256x128xf32>
    %c0_4 = arith.constant 0 : index
    %c0_5 = arith.constant 0 : index
    %28 = vector.load %arg3[%c0_4, %c0_5] : memref<1x128xf32, #tpu.memory_space<vmem>>, vector<1x128xf32>
    %29 = vector.broadcast %28 : vector<1x128xf32> to vector<256x128xf32>
    %30 = arith.addf %27, %29 : vector<256x128xf32>
    %cst_6 = arith.constant 0.000000e+00 : f32
    %31 = vector.broadcast %cst_6 : f32 to vector<256x128xf32>
    %32 = arith.subf %31, %30 : vector<256x128xf32>
    %33 = math.exp %32 : vector<256x128xf32>
    %cst_7 = arith.constant 1.000000e+00 : f32
    %34 = vector.broadcast %cst_7 : f32 to vector<256x128xf32>
    %35 = arith.addf %34, %33 : vector<256x128xf32>
    %cst_8 = arith.constant 1.000000e+00 : f32
    %36 = vector.broadcast %cst_8 : f32 to vector<256x128xf32>
    %37 = arith.divf %36, %35 : vector<256x128xf32>
    %38 = arith.mulf %30, %37 : vector<256x128xf32>
    %c0_9 = arith.constant 0 : index
    %c0_10 = arith.constant 0 : index
    %39 = vector.load %arg8[%c0_9, %c0_10] : memref<256x128xf32, #tpu.memory_space<vmem>>, vector<256x128xf32>
    tpu.vector_store %arg8[%c0_9, %c0_10], %38 {strides = array<i32>} : memref<256x128xf32, #tpu.memory_space<vmem>>, vector<256x128xf32>,
    %cst_11 = arith.constant 0.000000e+00 : f32
    %40 = vector.broadcast %cst_11 : f32 to vector<18x32x128xf32>
    %c0_12 = arith.constant 0 : index
    %c0_13 = arith.constant 0 : index
    %c0_14 = arith.constant 0 : index
    %41 = vector.load %arg7[%c0_12, %c0_13, %c0_14] : memref<18x32x128xf32, #tpu.memory_space<vmem>>, vector<18x32x128xf32>
    tpu.vector_store %arg7[%c0_12, %c0_13, %c0_14], %40 {strides = array<i32>} : memref<18x32x128xf32, #tpu.memory_space<vmem>>, vector<18x32x128xf32>,
    %42 = vector.shape_cast %38 : vector<256x128xf32> to vector<16x16x128xf32>
    %c1 = arith.constant 1 : index
    %c8 = arith.constant 8 : index
    %c0_15 = arith.constant 0 : index
    %43 = vector.load %arg7[%c1, %c8, %c0_15] : memref<18x32x128xf32, #tpu.memory_space<vmem>>, vector<16x16x128xf32>
    tpu.vector_store %arg7[%c1, %c8, %c0_15], %42 {strides = array<i32>} : memref<18x32x128xf32, #tpu.memory_space<vmem>>, vector<16x16x128xf32>,
    %cst_16 = arith.constant 0.000000e+00 : f32
    %44 = vector.broadcast %cst_16 : f32 to vector<256x128xf32>
    %c0_17 = arith.constant 0 : index
    %c7 = arith.constant 7 : index
    %c0_18 = arith.constant 0 : index
    %45 = vector.load %arg7[%c0_17, %c7, %c0_18] : memref<18x32x128xf32, #tpu.memory_space<vmem>>, vector<18x16x128xf32>
    %46 = vector.extract_strided_slice %45 {offsets = [0, 0, 0], sizes = [16, 16, 128], strides = [1, 1, 1]} : vector<18x16x128xf32> to vector<16x16x128xf32>
    %47 = vector.shape_cast %46 : vector<16x16x128xf32> to vector<256x128xf32>
    %c0_19 = arith.constant 0 : index
    %c0_20 = arith.constant 0 : index
    %c0_21 = arith.constant 0 : index
    %c0_22 = arith.constant 0 : index
    %48 = vector.load %arg4[%c0_19, %c0_20, %c0_21, %c0_22] : memref<2x9x128x128xf32, #tpu.memory_space<vmem>>, vector<1x1x128x128xf32>
    %49 = vector.shape_cast %48 : vector<1x1x128x128xf32> to vector<128x128xf32>
    %cst_23 = arith.constant dense<0.000000e+00> : vector<256x128xf32>
    %50 = tpu.matmul %47, %49, %cst_23 {dimension_numbers = #tpu.dot_dimension_numbers<[1], [0], [0], [1], [0, 0, 1, 1], [], []>} : vector<256x128xf32>, vector<128x128xf32>, vector<256x128xf32> -> vector<256x128xf32>
    %51 = arith.addf %44, %50 : vector<256x128xf32>
    %52 = vector.extract_strided_slice %45 {offsets = [1, 0, 0], sizes = [16, 16, 128], strides = [1, 1, 1]} : vector<18x16x128xf32> to vector<16x16x128xf32>
    %53 = vector.shape_cast %52 : vector<16x16x128xf32> to vector<256x128xf32>
    %c0_24 = arith.constant 0 : index
    %c3 = arith.constant 3 : index
    %c0_25 = arith.constant 0 : index
    %c0_26 = arith.constant 0 : index
    %54 = vector.load %arg4[%c0_24, %c3, %c0_25, %c0_26] : memref<2x9x128x128xf32, #tpu.memory_space<vmem>>, vector<1x1x128x128xf32>
    %55 = vector.shape_cast %54 : vector<1x1x128x128xf32> to vector<128x128xf32>
    %cst_27 = arith.constant dense<0.000000e+00> : vector<256x128xf32>
    %56 = tpu.matmul %53, %55, %cst_27 {dimension_numbers = #tpu.dot_dimension_numbers<[1], [0], [0], [1], [0, 0, 1, 1], [], []>} : vector<256x128xf32>, vector<128x128xf32>, vector<256x128xf32> -> vector<256x128xf32>
    %57 = arith.addf %51, %56 : vector<256x128xf32>
    %58 = vector.extract_strided_slice %45 {offsets = [2, 0, 0], sizes = [16, 16, 128], strides = [1, 1, 1]} : vector<18x16x128xf32> to vector<16x16x128xf32>
    %59 = vector.shape_cast %58 : vector<16x16x128xf32> to vector<256x128xf32>
    %c0_28 = arith.constant 0 : index
    %c6 = arith.constant 6 : index
    %c0_29 = arith.constant 0 : index
    %c0_30 = arith.constant 0 : index
    %60 = vector.load %arg4[%c0_28, %c6, %c0_29, %c0_30] : memref<2x9x128x128xf32, #tpu.memory_space<vmem>>, vector<1x1x128x128xf32>
    %61 = vector.shape_cast %60 : vector<1x1x128x128xf32> to vector<128x128xf32>
    %cst_31 = arith.constant dense<0.000000e+00> : vector<256x128xf32>
    %62 = tpu.matmul %59, %61, %cst_31 {dimension_numbers = #tpu.dot_dimension_numbers<[1], [0], [0], [1], [0, 0, 1, 1], [], []>} : vector<256x128xf32>, vector<128x128xf32>, vector<256x128xf32> -> vector<256x128xf32>
    %63 = arith.addf %57, %62 : vector<256x128xf32>
    %c0_32 = arith.constant 0 : index
    %c8_33 = arith.constant 8 : index
    %c0_34 = arith.constant 0 : index
    %64 = vector.load %arg7[%c0_32, %c8_33, %c0_34] : memref<18x32x128xf32, #tpu.memory_space<vmem>>, vector<18x16x128xf32>
    %65 = vector.extract_strided_slice %64 {offsets = [0, 0, 0], sizes = [16, 16, 128], strides = [1, 1, 1]} : vector<18x16x128xf32> to vector<16x16x128xf32>
    %66 = vector.shape_cast %65 : vector<16x16x128xf32> to vector<256x128xf32>
    %c0_35 = arith.constant 0 : index
    %c1_36 = arith.constant 1 : index
    %c0_37 = arith.constant 0 : index
    %c0_38 = arith.constant 0 : index
    %67 = vector.load %arg4[%c0_35, %c1_36, %c0_37, %c0_38] : memref<2x9x128x128xf32, #tpu.memory_space<vmem>>, vector<1x1x128x128xf32>
    %68 = vector.shape_cast %67 : vector<1x1x128x128xf32> to vector<128x128xf32>
    %cst_39 = arith.constant dense<0.000000e+00> : vector<256x128xf32>
    %69 = tpu.matmul %66, %68, %cst_39 {dimension_numbers = #tpu.dot_dimension_numbers<[1], [0], [0], [1], [0, 0, 1, 1], [], []>} : vector<256x128xf32>, vector<128x128xf32>, vector<256x128xf32> -> vector<256x128xf32>
    %70 = arith.addf %63, %69 : vector<256x128xf32>
    %71 = vector.extract_strided_slice %64 {offsets = [1, 0, 0], sizes = [16, 16, 128], strides = [1, 1, 1]} : vector<18x16x128xf32> to vector<16x16x128xf32>
    %72 = vector.shape_cast %71 : vector<16x16x128xf32> to vector<256x128xf32>
    %c0_40 = arith.constant 0 : index
    %c4 = arith.constant 4 : index
    %c0_41 = arith.constant 0 : index
    %c0_42 = arith.constant 0 : index
    %73 = vector.load %arg4[%c0_40, %c4, %c0_41, %c0_42] : memref<2x9x128x128xf32, #tpu.memory_space<vmem>>, vector<1x1x128x128xf32>
    %74 = vector.shape_cast %73 : vector<1x1x128x128xf32> to vector<128x128xf32>
    %cst_43 = arith.constant dense<0.000000e+00> : vector<256x128xf32>
    %75 = tpu.matmul %72, %74, %cst_43 {dimension_numbers = #tpu.dot_dimension_numbers<[1], [0], [0], [1], [0, 0, 1, 1], [], []>} : vector<256x128xf32>, vector<128x128xf32>, vector<256x128xf32> -> vector<256x128xf32>
    %76 = arith.addf %70, %75 : vector<256x128xf32>
    %77 = vector.extract_strided_slice %64 {offsets = [2, 0, 0], sizes = [16, 16, 128], strides = [1, 1, 1]} : vector<18x16x128xf32> to vector<16x16x128xf32>
    %78 = vector.shape_cast %77 : vector<16x16x128xf32> to vector<256x128xf32>
    %c0_44 = arith.constant 0 : index
    %c7_45 = arith.constant 7 : index
    %c0_46 = arith.constant 0 : index
    %c0_47 = arith.constant 0 : index
    %79 = vector.load %arg4[%c0_44, %c7_45, %c0_46, %c0_47] : memref<2x9x128x128xf32, #tpu.memory_space<vmem>>, vector<1x1x128x128xf32>
    %80 = vector.shape_cast %79 : vector<1x1x128x128xf32> to vector<128x128xf32>
    %cst_48 = arith.constant dense<0.000000e+00> : vector<256x128xf32>
    %81 = tpu.matmul %78, %80, %cst_48 {dimension_numbers = #tpu.dot_dimension_numbers<[1], [0], [0], [1], [0, 0, 1, 1], [], []>} : vector<256x128xf32>, vector<128x128xf32>, vector<256x128xf32> -> vector<256x128xf32>
    %82 = arith.addf %76, %81 : vector<256x128xf32>
    %c0_49 = arith.constant 0 : index
    %c9 = arith.constant 9 : index
    %c0_50 = arith.constant 0 : index
    %83 = vector.load %arg7[%c0_49, %c9, %c0_50] : memref<18x32x128xf32, #tpu.memory_space<vmem>>, vector<18x16x128xf32>
    %84 = vector.extract_strided_slice %83 {offsets = [0, 0, 0], sizes = [16, 16, 128], strides = [1, 1, 1]} : vector<18x16x128xf32> to vector<16x16x128xf32>
    %85 = vector.shape_cast %84 : vector<16x16x128xf32> to vector<256x128xf32>
    %c0_51 = arith.constant 0 : index
    %c2 = arith.constant 2 : index
    %c0_52 = arith.constant 0 : index
    %c0_53 = arith.constant 0 : index
    %86 = vector.load %arg4[%c0_51, %c2, %c0_52, %c0_53] : memref<2x9x128x128xf32, #tpu.memory_space<vmem>>, vector<1x1x128x128xf32>
    %87 = vector.shape_cast %86 : vector<1x1x128x128xf32> to vector<128x128xf32>
    %cst_54 = arith.constant dense<0.000000e+00> : vector<256x128xf32>
    %88 = tpu.matmul %85, %87, %cst_54 {dimension_numbers = #tpu.dot_dimension_numbers<[1], [0], [0], [1], [0, 0, 1, 1], [], []>} : vector<256x128xf32>, vector<128x128xf32>, vector<256x128xf32> -> vector<256x128xf32>
    %89 = arith.addf %82, %88 : vector<256x128xf32>
    %90 = vector.extract_strided_slice %83 {offsets = [1, 0, 0], sizes = [16, 16, 128], strides = [1, 1, 1]} : vector<18x16x128xf32> to vector<16x16x128xf32>
    %91 = vector.shape_cast %90 : vector<16x16x128xf32> to vector<256x128xf32>
    %c0_55 = arith.constant 0 : index
    %c5 = arith.constant 5 : index
    %c0_56 = arith.constant 0 : index
    %c0_57 = arith.constant 0 : index
    %92 = vector.load %arg4[%c0_55, %c5, %c0_56, %c0_57] : memref<2x9x128x128xf32, #tpu.memory_space<vmem>>, vector<1x1x128x128xf32>
    %93 = vector.shape_cast %92 : vector<1x1x128x128xf32> to vector<128x128xf32>
    %cst_58 = arith.constant dense<0.000000e+00> : vector<256x128xf32>
    %94 = tpu.matmul %91, %93, %cst_58 {dimension_numbers = #tpu.dot_dimension_numbers<[1], [0], [0], [1], [0, 0, 1, 1], [], []>} : vector<256x128xf32>, vector<128x128xf32>, vector<256x128xf32> -> vector<256x128xf32>
    %95 = arith.addf %89, %94 : vector<256x128xf32>
    %96 = vector.extract_strided_slice %83 {offsets = [2, 0, 0], sizes = [16, 16, 128], strides = [1, 1, 1]} : vector<18x16x128xf32> to vector<16x16x128xf32>
    %97 = vector.shape_cast %96 : vector<16x16x128xf32> to vector<256x128xf32>
    %c0_59 = arith.constant 0 : index
    %c8_60 = arith.constant 8 : index
    %c0_61 = arith.constant 0 : index
    %c0_62 = arith.constant 0 : index
    %98 = vector.load %arg4[%c0_59, %c8_60, %c0_61, %c0_62] : memref<2x9x128x128xf32, #tpu.memory_space<vmem>>, vector<1x1x128x128xf32>
    %99 = vector.shape_cast %98 : vector<1x1x128x128xf32> to vector<128x128xf32>
    %cst_63 = arith.constant dense<0.000000e+00> : vector<256x128xf32>
    %100 = tpu.matmul %97, %99, %cst_63 {dimension_numbers = #tpu.dot_dimension_numbers<[1], [0], [0], [1], [0, 0, 1, 1], [], []>} : vector<256x128xf32>, vector<128x128xf32>, vector<256x128xf32> -> vector<256x128xf32>
    %101 = arith.addf %95, %100 : vector<256x128xf32>
    %c0_64 = arith.constant 0 : index
    %c0_65 = arith.constant 0 : index
    %c0_66 = arith.constant 0 : index
    %102 = vector.load %arg5[%c0_64, %c0_65, %c0_66] : memref<2x1x128xf32, #tpu.memory_space<vmem>>, vector<1x1x128xf32>
    %103 = vector.shape_cast %102 : vector<1x1x128xf32> to vector<1x128xf32>
    %104 = vector.broadcast %103 : vector<1x128xf32> to vector<256x128xf32>
    %105 = arith.addf %101, %104 : vector<256x128xf32>
    %cst_67 = arith.constant 0.000000e+00 : f32
    %106 = vector.broadcast %cst_67 : f32 to vector<256x128xf32>
    %107 = arith.subf %106, %105 : vector<256x128xf32>
    %108 = math.exp %107 : vector<256x128xf32>
    %cst_68 = arith.constant 1.000000e+00 : f32
    %109 = vector.broadcast %cst_68 : f32 to vector<256x128xf32>
    %110 = arith.addf %109, %108 : vector<256x128xf32>
    %cst_69 = arith.constant 1.000000e+00 : f32
    %111 = vector.broadcast %cst_69 : f32 to vector<256x128xf32>
    %112 = arith.divf %111, %110 : vector<256x128xf32>
    %113 = arith.mulf %105, %112 : vector<256x128xf32>
    %114 = vector.shape_cast %113 : vector<256x128xf32> to vector<16x16x128xf32>
    %c1_70 = arith.constant 1 : index
    %c8_71 = arith.constant 8 : index
    %c0_72 = arith.constant 0 : index
    %115 = vector.load %arg7[%c1_70, %c8_71, %c0_72] : memref<18x32x128xf32, #tpu.memory_space<vmem>>, vector<16x16x128xf32>
    tpu.vector_store %arg7[%c1_70, %c8_71, %c0_72], %114 {strides = array<i32>} : memref<18x32x128xf32, #tpu.memory_space<vmem>>, vector<16x16x128xf32>,
    %cst_73 = arith.constant 0.000000e+00 : f32
    %116 = vector.broadcast %cst_73 : f32 to vector<256x128xf32>
    %c0_74 = arith.constant 0 : index
    %c7_75 = arith.constant 7 : index
    %c0_76 = arith.constant 0 : index
    %117 = vector.load %arg7[%c0_74, %c7_75, %c0_76] : memref<18x32x128xf32, #tpu.memory_space<vmem>>, vector<18x16x128xf32>
    %118 = vector.extract_strided_slice %117 {offsets = [0, 0, 0], sizes = [16, 16, 128], strides = [1, 1, 1]} : vector<18x16x128xf32> to vector<16x16x128xf32>
    %119 = vector.shape_cast %118 : vector<16x16x128xf32> to vector<256x128xf32>
    %c1_77 = arith.constant 1 : index
    %c0_78 = arith.constant 0 : index
    %c0_79 = arith.constant 0 : index
    %c0_80 = arith.constant 0 : index
    %120 = vector.load %arg4[%c1_77, %c0_78, %c0_79, %c0_80] : memref<2x9x128x128xf32, #tpu.memory_space<vmem>>, vector<1x1x128x128xf32>
    %121 = vector.shape_cast %120 : vector<1x1x128x128xf32> to vector<128x128xf32>
    %cst_81 = arith.constant dense<0.000000e+00> : vector<256x128xf32>
    %122 = tpu.matmul %119, %121, %cst_81 {dimension_numbers = #tpu.dot_dimension_numbers<[1], [0], [0], [1], [0, 0, 1, 1], [], []>} : vector<256x128xf32>, vector<128x128xf32>, vector<256x128xf32> -> vector<256x128xf32>
    %123 = arith.addf %116, %122 : vector<256x128xf32>
    %124 = vector.extract_strided_slice %117 {offsets = [1, 0, 0], sizes = [16, 16, 128], strides = [1, 1, 1]} : vector<18x16x128xf32> to vector<16x16x128xf32>
    %125 = vector.shape_cast %124 : vector<16x16x128xf32> to vector<256x128xf32>
    %c1_82 = arith.constant 1 : index
    %c3_83 = arith.constant 3 : index
    %c0_84 = arith.constant 0 : index
    %c0_85 = arith.constant 0 : index
    %126 = vector.load %arg4[%c1_82, %c3_83, %c0_84, %c0_85] : memref<2x9x128x128xf32, #tpu.memory_space<vmem>>, vector<1x1x128x128xf32>
    %127 = vector.shape_cast %126 : vector<1x1x128x128xf32> to vector<128x128xf32>
    %cst_86 = arith.constant dense<0.000000e+00> : vector<256x128xf32>
    %128 = tpu.matmul %125, %127, %cst_86 {dimension_numbers = #tpu.dot_dimension_numbers<[1], [0], [0], [1], [0, 0, 1, 1], [], []>} : vector<256x128xf32>, vector<128x128xf32>, vector<256x128xf32> -> vector<256x128xf32>
    %129 = arith.addf %123, %128 : vector<256x128xf32>
    %130 = vector.extract_strided_slice %117 {offsets = [2, 0, 0], sizes = [16, 16, 128], strides = [1, 1, 1]} : vector<18x16x128xf32> to vector<16x16x128xf32>
    %131 = vector.shape_cast %130 : vector<16x16x128xf32> to vector<256x128xf32>
    %c1_87 = arith.constant 1 : index
    %c6_88 = arith.constant 6 : index
    %c0_89 = arith.constant 0 : index
    %c0_90 = arith.constant 0 : index
    %132 = vector.load %arg4[%c1_87, %c6_88, %c0_89, %c0_90] : memref<2x9x128x128xf32, #tpu.memory_space<vmem>>, vector<1x1x128x128xf32>
    %133 = vector.shape_cast %132 : vector<1x1x128x128xf32> to vector<128x128xf32>
    %cst_91 = arith.constant dense<0.000000e+00> : vector<256x128xf32>
    %134 = tpu.matmul %131, %133, %cst_91 {dimension_numbers = #tpu.dot_dimension_numbers<[1], [0], [0], [1], [0, 0, 1, 1], [], []>} : vector<256x128xf32>, vector<128x128xf32>, vector<256x128xf32> -> vector<256x128xf32>
    %135 = arith.addf %129, %134 : vector<256x128xf32>
    %c0_92 = arith.constant 0 : index
    %c8_93 = arith.constant 8 : index
    %c0_94 = arith.constant 0 : index
    %136 = vector.load %arg7[%c0_92, %c8_93, %c0_94] : memref<18x32x128xf32, #tpu.memory_space<vmem>>, vector<18x16x128xf32>
    %137 = vector.extract_strided_slice %136 {offsets = [0, 0, 0], sizes = [16, 16, 128], strides = [1, 1, 1]} : vector<18x16x128xf32> to vector<16x16x128xf32>
    %138 = vector.shape_cast %137 : vector<16x16x128xf32> to vector<256x128xf32>
    %c1_95 = arith.constant 1 : index
    %c1_96 = arith.constant 1 : index
    %c0_97 = arith.constant 0 : index
    %c0_98 = arith.constant 0 : index
    %139 = vector.load %arg4[%c1_95, %c1_96, %c0_97, %c0_98] : memref<2x9x128x128xf32, #tpu.memory_space<vmem>>, vector<1x1x128x128xf32>
    %140 = vector.shape_cast %139 : vector<1x1x128x128xf32> to vector<128x128xf32>
    %cst_99 = arith.constant dense<0.000000e+00> : vector<256x128xf32>
    %141 = tpu.matmul %138, %140, %cst_99 {dimension_numbers = #tpu.dot_dimension_numbers<[1], [0], [0], [1], [0, 0, 1, 1], [], []>} : vector<256x128xf32>, vector<128x128xf32>, vector<256x128xf32> -> vector<256x128xf32>
    %142 = arith.addf %135, %141 : vector<256x128xf32>
    %143 = vector.extract_strided_slice %136 {offsets = [1, 0, 0], sizes = [16, 16, 128], strides = [1, 1, 1]} : vector<18x16x128xf32> to vector<16x16x128xf32>
    %144 = vector.shape_cast %143 : vector<16x16x128xf32> to vector<256x128xf32>
    %c1_100 = arith.constant 1 : index
    %c4_101 = arith.constant 4 : index
    %c0_102 = arith.constant 0 : index
    %c0_103 = arith.constant 0 : index
    %145 = vector.load %arg4[%c1_100, %c4_101, %c0_102, %c0_103] : memref<2x9x128x128xf32, #tpu.memory_space<vmem>>, vector<1x1x128x128xf32>
    %146 = vector.shape_cast %145 : vector<1x1x128x128xf32> to vector<128x128xf32>
    %cst_104 = arith.constant dense<0.000000e+00> : vector<256x128xf32>
    %147 = tpu.matmul %144, %146, %cst_104 {dimension_numbers = #tpu.dot_dimension_numbers<[1], [0], [0], [1], [0, 0, 1, 1], [], []>} : vector<256x128xf32>, vector<128x128xf32>, vector<256x128xf32> -> vector<256x128xf32>
    %148 = arith.addf %142, %147 : vector<256x128xf32>
    %149 = vector.extract_strided_slice %136 {offsets = [2, 0, 0], sizes = [16, 16, 128], strides = [1, 1, 1]} : vector<18x16x128xf32> to vector<16x16x128xf32>
    %150 = vector.shape_cast %149 : vector<16x16x128xf32> to vector<256x128xf32>
    %c1_105 = arith.constant 1 : index
    %c7_106 = arith.constant 7 : index
    %c0_107 = arith.constant 0 : index
    %c0_108 = arith.constant 0 : index
    %151 = vector.load %arg4[%c1_105, %c7_106, %c0_107, %c0_108] : memref<2x9x128x128xf32, #tpu.memory_space<vmem>>, vector<1x1x128x128xf32>
    %152 = vector.shape_cast %151 : vector<1x1x128x128xf32> to vector<128x128xf32>
    %cst_109 = arith.constant dense<0.000000e+00> : vector<256x128xf32>
    %153 = tpu.matmul %150, %152, %cst_109 {dimension_numbers = #tpu.dot_dimension_numbers<[1], [0], [0], [1], [0, 0, 1, 1], [], []>} : vector<256x128xf32>, vector<128x128xf32>, vector<256x128xf32> -> vector<256x128xf32>
    %154 = arith.addf %148, %153 : vector<256x128xf32>
    %c0_110 = arith.constant 0 : index
    %c9_111 = arith.constant 9 : index
    %c0_112 = arith.constant 0 : index
    %155 = vector.load %arg7[%c0_110, %c9_111, %c0_112] : memref<18x32x128xf32, #tpu.memory_space<vmem>>, vector<18x16x128xf32>
    %156 = vector.extract_strided_slice %155 {offsets = [0, 0, 0], sizes = [16, 16, 128], strides = [1, 1, 1]} : vector<18x16x128xf32> to vector<16x16x128xf32>
    %157 = vector.shape_cast %156 : vector<16x16x128xf32> to vector<256x128xf32>
    %c1_113 = arith.constant 1 : index
    %c2_114 = arith.constant 2 : index
    %c0_115 = arith.constant 0 : index
    %c0_116 = arith.constant 0 : index
    %158 = vector.load %arg4[%c1_113, %c2_114, %c0_115, %c0_116] : memref<2x9x128x128xf32, #tpu.memory_space<vmem>>, vector<1x1x128x128xf32>
    %159 = vector.shape_cast %158 : vector<1x1x128x128xf32> to vector<128x128xf32>
    %cst_117 = arith.constant dense<0.000000e+00> : vector<256x128xf32>
    %160 = tpu.matmul %157, %159, %cst_117 {dimension_numbers = #tpu.dot_dimension_numbers<[1], [0], [0], [1], [0, 0, 1, 1], [], []>} : vector<256x128xf32>, vector<128x128xf32>, vector<256x128xf32> -> vector<256x128xf32>
    %161 = arith.addf %154, %160 : vector<256x128xf32>
    %162 = vector.extract_strided_slice %155 {offsets = [1, 0, 0], sizes = [16, 16, 128], strides = [1, 1, 1]} : vector<18x16x128xf32> to vector<16x16x128xf32>
    %163 = vector.shape_cast %162 : vector<16x16x128xf32> to vector<256x128xf32>
    %c1_118 = arith.constant 1 : index
    %c5_119 = arith.constant 5 : index
    %c0_120 = arith.constant 0 : index
    %c0_121 = arith.constant 0 : index
    %164 = vector.load %arg4[%c1_118, %c5_119, %c0_120, %c0_121] : memref<2x9x128x128xf32, #tpu.memory_space<vmem>>, vector<1x1x128x128xf32>
    %165 = vector.shape_cast %164 : vector<1x1x128x128xf32> to vector<128x128xf32>
    %cst_122 = arith.constant dense<0.000000e+00> : vector<256x128xf32>
    %166 = tpu.matmul %163, %165, %cst_122 {dimension_numbers = #tpu.dot_dimension_numbers<[1], [0], [0], [1], [0, 0, 1, 1], [], []>} : vector<256x128xf32>, vector<128x128xf32>, vector<256x128xf32> -> vector<256x128xf32>
    %167 = arith.addf %161, %166 : vector<256x128xf32>
    %168 = vector.extract_strided_slice %155 {offsets = [2, 0, 0], sizes = [16, 16, 128], strides = [1, 1, 1]} : vector<18x16x128xf32> to vector<16x16x128xf32>
    %169 = vector.shape_cast %168 : vector<16x16x128xf32> to vector<256x128xf32>
    %c1_123 = arith.constant 1 : index
    %c8_124 = arith.constant 8 : index
    %c0_125 = arith.constant 0 : index
    %c0_126 = arith.constant 0 : index
    %170 = vector.load %arg4[%c1_123, %c8_124, %c0_125, %c0_126] : memref<2x9x128x128xf32, #tpu.memory_space<vmem>>, vector<1x1x128x128xf32>
    %171 = vector.shape_cast %170 : vector<1x1x128x128xf32> to vector<128x128xf32>
    %cst_127 = arith.constant dense<0.000000e+00> : vector<256x128xf32>
    %172 = tpu.matmul %169, %171, %cst_127 {dimension_numbers = #tpu.dot_dimension_numbers<[1], [0], [0], [1], [0, 0, 1, 1], [], []>} : vector<256x128xf32>, vector<128x128xf32>, vector<256x128xf32> -> vector<256x128xf32>
    %173 = arith.addf %167, %172 : vector<256x128xf32>
    %c1_128 = arith.constant 1 : index
    %c0_129 = arith.constant 0 : index
    %c0_130 = arith.constant 0 : index
    %174 = vector.load %arg5[%c1_128, %c0_129, %c0_130] : memref<2x1x128xf32, #tpu.memory_space<vmem>>, vector<1x1x128xf32>
    %175 = vector.shape_cast %174 : vector<1x1x128xf32> to vector<1x128xf32>
    %176 = vector.broadcast %175 : vector<1x128xf32> to vector<256x128xf32>
    %177 = arith.addf %173, %176 : vector<256x128xf32>
    %cst_131 = arith.constant 0.000000e+00 : f32
    %178 = vector.broadcast %cst_131 : f32 to vector<256x128xf32>
    %179 = arith.subf %178, %177 : vector<256x128xf32>
    %180 = math.exp %179 : vector<256x128xf32>
    %cst_132 = arith.constant 1.000000e+00 : f32
    %181 = vector.broadcast %cst_132 : f32 to vector<256x128xf32>
    %182 = arith.addf %181, %180 : vector<256x128xf32>
    %cst_133 = arith.constant 1.000000e+00 : f32
    %183 = vector.broadcast %cst_133 : f32 to vector<256x128xf32>
    %184 = arith.divf %183, %182 : vector<256x128xf32>
    %185 = arith.mulf %177, %184 : vector<256x128xf32>
    %c0_134 = arith.constant 0 : index
    %c0_135 = arith.constant 0 : index
    %186 = vector.load %arg8[%c0_134, %c0_135] : memref<256x128xf32, #tpu.memory_space<vmem>>, vector<256x128xf32>
    %187 = arith.addf %185, %186 : vector<256x128xf32>
    %c0_136 = arith.constant 0 : index
    %c0_137 = arith.constant 0 : index
    %c0_138 = arith.constant 0 : index
    %188 = vector.load %arg6[%c0_136, %c0_137, %c0_138] : memref<1x256x128xf32, #tpu.memory_space<vmem>>, vector<1x256x128xf32>
    %189 = vector.shape_cast %188 : vector<1x256x128xf32> to vector<256x128xf32>
    %190 = vector.shape_cast %187 : vector<256x128xf32> to vector<1x256x128xf32>
    tpu.vector_store %arg6[%c0_136, %c0_137, %c0_138], %190 {strides = array<i32>} : memref<1x256x128xf32, #tpu.memory_space<vmem>>, vector<1x256x128xf32>,
    return
  }
  func.func @transform_0(%arg0: i32) -> (i32, i32, i32) {
    %c0_i32 = arith.constant 0 : i32
    %c0_i32_0 = arith.constant 0 : i32
    %c0_i32_1 = arith.constant 0 : i32
    return %arg0, %c0_i32, %c0_i32_0 : i32, i32, i32
  }
  func.func @transform_1(%arg0: i32) -> (i32, i32) {
    %c0_i32 = arith.constant 0 : i32
    %c0_i32_0 = arith.constant 0 : i32
    %c0_i32_1 = arith.constant 0 : i32
    return %c0_i32, %c0_i32_0 : i32, i32
  }
  func.func @transform_2(%arg0: i32) -> (i32, i32) {
    %c0_i32 = arith.constant 0 : i32
    %c0_i32_0 = arith.constant 0 : i32
    %c0_i32_1 = arith.constant 0 : i32
    return %c0_i32, %c0_i32_0 : i32, i32
  }
  func.func @transform_3(%arg0: i32) -> (i32, i32, i32, i32) {
    %c0_i32 = arith.constant 0 : i32
    %c0_i32_0 = arith.constant 0 : i32
    %c0_i32_1 = arith.constant 0 : i32
    %c0_i32_2 = arith.constant 0 : i32
    %c0_i32_3 = arith.constant 0 : i32
    return %c0_i32, %c0_i32_0, %c0_i32_1, %c0_i32_2 : i32, i32, i32, i32
  }
  func.func @transform_4(%arg0: i32) -> (i32, i32, i32) {
    %c0_i32 = arith.constant 0 : i32
    %c0_i32_0 = arith.constant 0 : i32
    %c0_i32_1 = arith.constant 0 : i32
    %c0_i32_2 = arith.constant 0 : i32
    return %c0_i32, %c0_i32_0, %c0_i32_1 : i32, i32, i32
  }
  func.func @transform_5(%arg0: i32) -> (i32, i32, i32) {
    %c0_i32 = arith.constant 0 : i32
    %c0_i32_0 = arith.constant 0 : i32
    %c0_i32_1 = arith.constant 0 : i32
    return %arg0, %c0_i32, %c0_i32_0 : i32, i32, i32
  }
}

</mosaic_0001>

<bundles_post_ra>
// kernel: c1_forward.1
= control target key start
LH: loop header
LB: loop body
LE: loop exit
PB: predicated region body
PF: predicated region fallthrough
CT: control target
= control target key end

     0   :  { %s11437_s18 = smov 0   ;;  %s14390_s0 = inlined_call_operand.vmem [shape: f32[2,256,4], index: 0, kind: input, shape index: {}]   ;;  %s14391_s1 = inlined_call_operand.vmem [shape: f32[4,128], index: 1, kind: input, shape index: {}]   ;;  %s14392_s2 = inlined_call_operand.vmem [shape: f32[1,128], index: 2, kind: input, shape index: {}]   ;;  %s14393_s3 = inlined_call_operand.vmem [shape: f32[2,9,128,128], index: 3, kind: input, shape index: {}]   ;;  %s14394_s4 = inlined_call_operand.vmem [shape: f32[2,1,128], index: 4, kind: input, shape index: {}]   ;;  %s14395_s5 = inlined_call_operand.vmem [shape: f32[2,256,128], index: 5, kind: output, shape index: {}]  }
   0x1 LB: > { %s7203_s19 = sadd.s32 4294967295, %s11400_s18   ;;  %p7207_p0 = scmp.ge.s32.totalorder %s11400_s18, 1  ;;  %s11400_s18 = sphi %s11437_s18, %s15_s18  }
   0x2   : > { %p187_p1 = scmp.lt.s32.totalorder %s11400_s18, 3 }
   0x4   : > { %p188_p2 = pnand %p7207_p0, %p187_p1 }
   0x6   : > { %191 = sbr.rel (%p188_p2) target bundleno = 2117 (0x845), region = 40 }
   0xd   : > { %p215_p3 = scmp.lt.s32.totalorder %s7203_s19, 1  ;;  %v14397_v0 = vmov 0   ;;  %v14401_v3 = vmov 1   ;;  %v14399_v4 = vmov 2   ;;  %v14396_v5 = vmov 3   ;;  %v7213_v63 = vld [vmem:[%s14393_s3 + $0x180] sm:$0xff] }
   0xe   : > { %10899 = vset.pattern.permute.xlu1 %v14397_v0  ;;  %10897 = vset.pattern.permute.xlu0 %v14397_v0  ;;  %v11406_v7 = vmov 0.0   ;;  %v418_v33 = vlaneseq  ;;  %v257_v38 = vld [vmem:[%s14391_s1] sm:$0xf] }
   0xf   : > { %s14503_s19 = smov (!%p215_p3, %s7203_s19), 1  ;;  %1369 = vst [vmem:[#allocation2] sm:$0xff] %v11406_v7  ;;  %1370 = vst [vmem:[#allocation2 + $0x8] sm:$0xff] %v11406_v7  ;;  %v11631_v58 = vld [vmem:[%s14392_s2] ss:$0 sm:$0xff] }
  0x10   : > { %s7490_s20 = sshll.u32 %s14503_s19, 8  ;;  %1371 = vst [vmem:[#allocation2 + $0x10] sm:$0xff] %v11406_v7  ;;  %1372 = vst [vmem:[#allocation2 + $0x18] sm:$0xff] %v11406_v7  ;;  %v419_v35 = vshrl.u32 %v418_v33, 7  ;;  %v7218_v33 = vld [vmem:[%s14393_s3 + $0x1a8] sm:$0xff] }
  0x11   : > { %s11455_s23 = scalar_lea.vmem %s14390_s0, %s7490_s20  ;;  %1373 = vst [vmem:[#allocation2 + $0x20] sm:$0xff] %v11406_v7  ;;  %1376 = vst [vmem:[#allocation2 + $0x38] sm:$0xff] %v11406_v7 }
  0x12   : > { %v11458_v1 = vld [vmem:[%s11455_s23 + $0x8] sm:$0xff]  ;;  %v225_v2 = vld [vmem:[%s11455_s23] sm:$0xff]  ;;  %v227_v6 = vld [vmem:[%s11455_s23 + $0x10] sm:$0xff]  ;;  %1377 = vst [vmem:[#allocation2 + $0x40] sm:$0xff] %v11406_v7  ;;  %v420_v37 = vsub.s32 0, %v419_v35  ;;  %v616_v41 = vsub.s32 1, %v419_v35 }
  0x13   : > { %265 = vperm.xlu1 %10899, %v11458_v1   ;;  %260 = vperm.xlu0 %10897, %v225_v2   ;;  %1380 = vst [vmem:[#allocation2 + $0x58] sm:$0xff] %v11406_v7  ;;  %1381 = vst [vmem:[#allocation2 + $0x60] sm:$0xff] %v11406_v7  ;;  %v11472_v8 = vld [vmem:[%s11455_s23 + $0x18] sm:$0xff]  ;;  %v229_v9 = vld [vmem:[%s11455_s23 + $0x20] sm:$0xff]  ;;  %v812_v43 = vsub.s32 2, %v419_v35  ;;  %v1008_v44 = vsub.s32 3, %v419_v35 }
  0x14   : > { %1384 = vst [vmem:[#allocation2 + $0x78] sm:$0xff] %v11406_v7  ;;  %1385 = vst [vmem:[#allocation2 + $0x80] sm:$0xff] %v11406_v7  ;;  %v11479_v10 = vld [vmem:[%s11455_s23 + $0x28] sm:$0xff]  ;;  %v231_v11 = vld [vmem:[%s11455_s23 + $0x30] sm:$0xff]  ;;  %v11605_v42 = vrot.slane %v257_v38, %v420_v37  ;;  %v11610_v45 = vrot.slane %v257_v38, %v616_v41 }
  0x15   : > { %1388 = vst [vmem:[#allocation2 + $0x98] sm:$0xff] %v11406_v7  ;;  %1389 = vst [vmem:[#allocation2 + $0xa0] sm:$0xff] %v11406_v7  ;;  %v11487_v12 = vld [vmem:[%s11455_s23 + $0x38] sm:$0xff]  ;;  %v233_v13 = vld [vmem:[%s11455_s23 + $0x40] sm:$0xff]  ;;  %v11617_v50 = vrot.slane %v257_v38, %v812_v43  ;;  %v11619_v51 = vrot.slane %v257_v38, %v1008_v44 }
  0x16   : > { %1392 = vst [vmem:[#allocation2 + $0xb8] sm:$0xff] %v11406_v7  ;;  %1393 = vst [vmem:[#allocation2 + $0xc0] sm:$0xff] %v11406_v7  ;;  %v11493_v14 = vld [vmem:[%s11455_s23 + $0x48] sm:$0xff]  ;;  %v11498_v15 = vld [vmem:[%s11455_s23 + $0x50] sm:$0xff] }
  0x17   : > { %10900 = vset.pattern.permute.xlu1 %v14401_v3  ;;  %10898 = vset.pattern.permute.xlu0 %v14401_v3  ;;  %1396 = vst [vmem:[#allocation2 + $0xd8] sm:$0xff] %v11406_v7  ;;  %1397 = vst [vmem:[#allocation2 + $0xe0] sm:$0xff] %v11406_v7  ;;  %v11504_v16 = vld [vmem:[%s11455_s23 + $0x58] sm:$0xff]  ;;  %v11510_v17 = vld [vmem:[%s11455_s23 + $0x60] sm:$0xff] }
  0x18   : > { %491 = vperm.xlu1 %10900, %v11458_v1   ;;  %487 = vperm.xlu0 %10898, %v225_v2   ;;  %1400 = vst [vmem:[#allocation2 + $0xf8] sm:$0xff] %v11406_v7  ;;  %1401 = vst [vmem:[#allocation2 + $0x100] sm:$0xff] %v11406_v7  ;;  %v11515_v18 = vld [vmem:[%s11455_s23 + $0x68] sm:$0xff]  ;;  %v11519_v19 = vld [vmem:[%s11455_s23 + $0x70] sm:$0xff] }
  0x19   : > { %1404 = vst [vmem:[#allocation2 + $0x118] sm:$0xff] %v11406_v7  ;;  %1405 = vst [vmem:[#allocation2 + $0x120] sm:$0xff] %v11406_v7  ;;  %v11524_v20 = vld [vmem:[%s11455_s23 + $0x78] sm:$0xff]  ;;  %v11529_v21 = vld [vmem:[%s11455_s23 + $0x80] sm:$0xff] }
  0x1a   : > { %1408 = vst [vmem:[#allocation2 + $0x138] sm:$0xff] %v11406_v7  ;;  %1409 = vst [vmem:[#allocation2 + $0x140] sm:$0xff] %v11406_v7  ;;  %v11535_v22 = vld [vmem:[%s11455_s23 + $0x88] sm:$0xff]  ;;  %v11540_v23 = vld [vmem:[%s11455_s23 + $0x90] sm:$0xff] }
  0x1b   : > { %1412 = vst [vmem:[#allocation2 + $0x158] sm:$0xff] %v11406_v7  ;;  %1413 = vst [vmem:[#allocation2 + $0x160] sm:$0xff] %v11406_v7  ;;  %v11545_v24 = vld [vmem:[%s11455_s23 + $0x98] sm:$0xff]  ;;  %v11550_v25 = vld [vmem:[%s11455_s23 + $0xa0] sm:$0xff] }
  0x1c   : > { %10901 = vset.pattern.permute.xlu1 %v14399_v4  ;;  %10904 = vset.pattern.permute.xlu0 %v14396_v5  ;;  %1416 = vst [vmem:[#allocation2 + $0x178] sm:$0xff] %v11406_v7  ;;  %1417 = vst [vmem:[#allocation2 + $0x180] sm:$0xff] %v11406_v7  ;;  %v11555_v26 = vld [vmem:[%s11455_s23 + $0xa8] sm:$0xff]  ;;  %v11560_v27 = vld [vmem:[%s11455_s23 + $0xb0] sm:$0xff] }
  0x1d   : > { %683 = vperm.xlu1 %10901, %v225_v2   ;;  %879 = vperm.xlu0 %10904, %v225_v2   ;;  %1420 = vst [vmem:[#allocation2 + $0x198] sm:$0xff] %v11406_v7  ;;  %1421 = vst [vmem:[#allocation2 + $0x1a0] sm:$0xff] %v11406_v7  ;;  %v11565_v28 = vld [vmem:[%s11455_s23 + $0xb8] sm:$0xff]  ;;  %v11570_v29 = vld [vmem:[%s11455_s23 + $0xc0] sm:$0xff] }
  0x1e   : > { %1424 = vst [vmem:[#allocation2 + $0x1b8] sm:$0xff] %v11406_v7  ;;  %1425 = vst [vmem:[#allocation2 + $0x1c0] sm:$0xff] %v11406_v7  ;;  %v11576_v30 = vld [vmem:[%s11455_s23 + $0xc8] sm:$0xff]  ;;  %v11581_v31 = vld [vmem:[%s11455_s23 + $0xd0] sm:$0xff] }
  0x1f   : > { %1428 = vst [vmem:[#allocation2 + $0x1d8] sm:$0xff] %v11406_v7  ;;  %1429 = vst [vmem:[#allocation2 + $0x1e0] sm:$0xff] %v11406_v7  ;;  %v11587_v32 = vld [vmem:[%s11455_s23 + $0xd8] sm:$0xff]  ;;  %v253_v34 = vld [vmem:[%s11455_s23 + $0xe0] sm:$0xff] }
  0x20   : > { %1432 = vst [vmem:[#allocation2 + $0x1f8] sm:$0xff] %v11406_v7  ;;  %1433 = vst [vmem:[#allocation2 + $0x200] sm:$0xff] %v11406_v7  ;;  %v11594_v36 = vld [vmem:[%s11455_s23 + $0xe8] sm:$0xff]  ;;  %v7220_v37 = vld [vmem:[%s14393_s3 + $0x1b8] sm:$0xff] }
  0x21   : > { %1436 = vst [vmem:[#allocation2 + $0x218] sm:$0xff] %v11406_v7  ;;  %1437 = vst [vmem:[#allocation2 + $0x220] sm:$0xff] %v11406_v7  ;;  %10902 = vset.pattern.permute.xlu1 %v14397_v0  ;;  %883 = vperm.xlu0 %10904, %v11458_v1   ;;  %v7221_v44 = vld [vmem:[%s14393_s3 + $0x1c0] sm:$0xff] }
  0x22   : > { %1438 = vst [vmem:[#allocation2 + $0x228] sm:$0xff] %v11406_v7  ;;  %1439 = vst [vmem:[#allocation2 + $0x230] sm:$0xff] %v11406_v7  ;;  %270 = vperm.xlu1 %10902, %v227_v6  }
  0x23   : > { %1440 = vst [vmem:[#allocation2 + $0x238] sm:$0xff] %v11406_v7 }
  0x25   : > { %887 = vperm.xlu0 %10904, %v227_v6  }
  0x26   : > { %10903 = vset.pattern.permute.xlu1 %v14401_v3 }
  0x27   : > { %495 = vperm.xlu1 %10903, %v227_v6  }
  0x29   : > { %891 = vperm.xlu0 %10904, %v11472_v8  }
  0x2b   : > { %10905 = vset.pattern.permute.xlu1 %v14397_v0 }
  0x2c   : > { %275 = vperm.xlu1 %10905, %v11472_v8  }
  0x2d   : > { %895 = vperm.xlu0 %10904, %v229_v9  }
  0x30   : > { %10906 = vset.pattern.permute.xlu1 %v14401_v3 }
  0x31   : > { %499 = vperm.xlu1 %10906, %v11472_v8   ;;  %899 = vperm.xlu0 %10904, %v11479_v10  }
  0x35   : > { %10907 = vset.pattern.permute.xlu1 %v14399_v4  ;;  %903 = vperm.xlu0 %10904, %v231_v11  }
  0x36   : > { %691 = vperm.xlu1 %10907, %v227_v6  }
  0x39   : > { %907 = vperm.xlu0 %10904, %v11487_v12  }
  0x3a   : > { %10908 = vset.pattern.permute.xlu1 %v14397_v0 }
  0x3b   : > { %280 = vperm.xlu1 %10908, %v229_v9  }
  0x3d   : > { %911 = vperm.xlu0 %10904, %v233_v13  }
  0x3f   : > { %10909 = vset.pattern.permute.xlu1 %v14401_v3 }
  0x40   : > { %503 = vperm.xlu1 %10909, %v229_v9  }
  0x41   : > { %915 = vperm.xlu0 %10904, %v11493_v14  }
  0x44   : > { %10910 = vset.pattern.permute.xlu1 %v14397_v0 }
  0x45   : > { %285 = vperm.xlu1 %10910, %v11479_v10   ;;  %919 = vperm.xlu0 %10904, %v11498_v15  }
  0x49   : > { %10911 = vset.pattern.permute.xlu1 %v14401_v3  ;;  %923 = vperm.xlu0 %10904, %v11504_v16  }
  0x4a   : > { %507 = vperm.xlu1 %10911, %v11479_v10  }
  0x4d   : > { %927 = vperm.xlu0 %10904, %v11510_v17  }
  0x4e   : > { %10912 = vset.pattern.permute.xlu1 %v14399_v4 }
  0x4f   : > { %699 = vperm.xlu1 %10912, %v229_v9  }
  0x51   : > { %931 = vperm.xlu0 %10904, %v11515_v18  }
  0x53   : > { %10913 = vset.pattern.permute.xlu1 %v14397_v0 }
  0x54   : > { %290 = vperm.xlu1 %10913, %v231_v11  }
  0x55   : > { %935 = vperm.xlu0 %10904, %v11519_v19  }
  0x58   : > { %10914 = vset.pattern.permute.xlu1 %v14401_v3 }
  0x59   : > { %511 = vperm.xlu1 %10914, %v231_v11   ;;  %939 = vperm.xlu0 %10904, %v11524_v20  }
  0x5d   : > { %10915 = vset.pattern.permute.xlu1 %v14397_v0  ;;  %943 = vperm.xlu0 %10904, %v11529_v21  }
  0x5e   : > { %295 = vperm.xlu1 %10915, %v11487_v12  }
  0x61   : > { %947 = vperm.xlu0 %10904, %v11535_v22  }
  0x62   : > { %10916 = vset.pattern.permute.xlu1 %v14401_v3 }
  0x63   : > { %515 = vperm.xlu1 %10916, %v11487_v12  }
  0x65   : > { %951 = vperm.xlu0 %10904, %v11540_v23  }
  0x67   : > { %10917 = vset.pattern.permute.xlu1 %v14399_v4 }
  0x68   : > { %707 = vperm.xlu1 %10917, %v231_v11   ;;  %v7216_v11 = vld [vmem:[%s14393_s3 + $0x198] sm:$0xff] }
  0x69   : > { %955 = vperm.xlu0 %10904, %v11545_v24  }
  0x6c   : > { %10918 = vset.pattern.permute.xlu1 %v14397_v0 }
  0x6d   : > { %300 = vperm.xlu1 %10918, %v233_v13   ;;  %959 = vperm.xlu0 %10904, %v11550_v25  }
  0x71   : > { %10919 = vset.pattern.permute.xlu1 %v14401_v3  ;;  %963 = vperm.xlu0 %10904, %v11555_v26  }
  0x72   : > { %519 = vperm.xlu1 %10919, %v233_v13  }
  0x75   : > { %967 = vperm.xlu0 %10904, %v11560_v27  }
  0x76   : > { %10920 = vset.pattern.permute.xlu1 %v14397_v0 }
  0x77   : > { %305 = vperm.xlu1 %10920, %v11493_v14  }
  0x79   : > { %971 = vperm.xlu0 %10904, %v11565_v28  }
  0x7b   : > { %10921 = vset.pattern.permute.xlu1 %v14401_v3 }
  0x7c   : > { %523 = vperm.xlu1 %10921, %v11493_v14  }
  0x7d   : > { %975 = vperm.xlu0 %10904, %v11570_v29  }
  0x80   : > { %10922 = vset.pattern.permute.xlu1 %v14399_v4 }
  0x81   : > { %715 = vperm.xlu1 %10922, %v233_v13   ;;  %979 = vperm.xlu0 %10904, %v11576_v30  }
  0x85   : > { %10923 = vset.pattern.permute.xlu1 %v14397_v0  ;;  %983 = vperm.xlu0 %10904, %v11581_v31  }
  0x86   : > { %310 = vperm.xlu1 %10923, %v11498_v15  }
  0x89   : > { %987 = vperm.xlu0 %10904, %v11587_v32  }
  0x8a   : > { %10924 = vset.pattern.permute.xlu1 %v14401_v3 }
  0x8b   : > { %527 = vperm.xlu1 %10924, %v11498_v15  }
  0x8d   : > { %991 = vperm.xlu0 %10904, %v253_v34  }
  0x8f   : > { %10925 = vset.pattern.permute.xlu1 %v14397_v0 }
  0x90   : > { %315 = vperm.xlu1 %10925, %v11504_v16  }
  0x91   : > { %995 = vperm.xlu0 %10904, %v11594_v36  }
  0x92   : > { %v11602_v39 = vpop.permute.xlu1 %265  ;;  %v261_v40 = vpop.permute.xlu0 %260 }
  0x93   : > { %v422_v46 = vmul.f32 %v11605_v42, %v261_v40 }
  0x94   : > { %10926 = vset.pattern.permute.xlu1 %v14401_v3 }
  0x95   : > { %531 = vperm.xlu1 %10926, %v11504_v16   ;;  %10977 = vset.pattern.permute.xlu0 %v14399_v4 }
  0x96   : > { %687 = vperm.xlu0 %10977, %v11458_v1   ;;  %v7214_v1 = vld [vmem:[%s14393_s3 + $0x188] sm:$0xff] }
  0x97   : > { %v11613_v47 = vpop.permute.xlu1 %491  ;;  %v488_v48 = vpop.permute.xlu0 %487  ;;  %v9796_v6 = vpack.c.bf16 %v7214_v1, %v7213_v63 }
  0x98   : > { %v618_v49 = vmul.f32 %v11610_v45, %v488_v48 }
  0x99   : > { %10927 = vset.pattern.permute.xlu1 %v14399_v4  ;;  %9797 = vmatprep.subr.bf16.mxu0 %v9796_v6 }
  0x9a   : > { %723 = vperm.xlu1 %10927, %v11498_v15   ;;  %695 = vperm.xlu0 %10977, %v11472_v8   ;;  %v650_v52 = vadd.f32 %v618_v49, %v422_v46  ;;  %v7217_v15 = vld [vmem:[%s14393_s3 + $0x1a0] sm:$0xff]  ;;  %v7222_v46 = vld [vmem:[%s14393_s3 + $0x1c8] sm:$0xff] }
  0x9b   : > { %9799 = vmatpush3.bf16.msra.mxu0 %v9796_v6  ;;  %v9804_v35 = vpack.c.bf16 %v7218_v33, %v7217_v15  ;;  %v7227_v33 = vld [vmem:[%s14393_s3 + $0x1f0] sm:$0xff] }
  0x9c   : > { %v684_v53 = vpop.permute.xlu1 %683  ;;  %v880_v54 = vpop.permute.xlu0 %879 }
  0x9d   : > { %v814_v55 = vmul.f32 %v11617_v50, %v684_v53  ;;  %v1010_v56 = vmul.f32 %v11619_v51, %v880_v54  ;;  %v9812_v53 = vpack.c.bf16 %v7222_v46, %v7221_v44 }
  0x9e   : > { %10928 = vset.pattern.permute.xlu1 %v14397_v0  ;;  %703 = vperm.xlu0 %10977, %v11479_v10   ;;  %v7215_v10 = vld [vmem:[%s14393_s3 + $0x190] sm:$0xff] }
  0x9f   : > { %v846_v57 = vadd.f32 %v814_v55, %v650_v52  ;;  %320 = vperm.xlu1 %10928, %v11510_v17   ;;  %v9800_v13 = vpack.c.bf16 %v7216_v11, %v7215_v10 }
  0xa0   : > { %v11633_v59 = vpop.permute.xlu0 %883 }
  0xa1   : > { %v1042_v60 = vadd.f32 %v1010_v56, %v846_v57  ;;  %v271_v61 = vpop.permute.xlu1 %270  ;;  %9801 = vmatprep.subr.bf16.mxu0 %v9800_v13  ;;  %v7223_v57 = vld [vmem:[%s14393_s3 + $0x1d0] sm:$0xff] }
  0xa2   : > { %711 = vperm.xlu0 %10977, %v11487_v12   ;;  %9803 = vmatpush3.bf16.msra.mxu0 %v9800_v13  ;;  %v424_v49 = vmul.f32 %v11605_v42, %v271_v61 }
  0xa3   : > { %v11637_v62 = vadd.f32 %v11631_v58, %v1042_v60  ;;  %10929 = vset.pattern.permute.xlu1 %v14401_v3  ;;  %9805 = vmatprep.subr.bf16.mxu0 %v9804_v35  ;;  %v7224_v60 = vld [vmem:[%s14393_s3 + $0x1d8] sm:$0xff] }
  0xa4   : > { %535 = vperm.xlu1 %10929, %v11510_v17   ;;  %v888_v2 = vpop.permute.xlu0 %887  ;;  %v9816_v1 = vpack.c.bf16 %v7224_v60, %v7223_v57 }
  0xa5   : > { %v1113_v7 = vsub.f32 0.0, %v11637_v62 }
  0xa6   : > { %v496_v8 = vpop.permute.xlu1 %495  ;;  %719 = vperm.xlu0 %10977, %v11493_v14   ;;  %9807 = vmatpush3.bf16.msra.mxu0 %v9804_v35  ;;  %v7228_v35 = vld [vmem:[%s14393_s3 + $0x1f8] sm:$0xff] }
  0xa7   : > { %v1145_v9 = vmul.f32 1.442695, %v1113_v7  ;;  %v620_v43 = vmul.f32 %v11610_v45, %v496_v8  ;;  %v7225_v7 = vld [vmem:[%s14393_s3 + $0x1e0] sm:$0xff]  ;;  %v7226_v8 = vld [vmem:[%s14393_s3 + $0x1e8] sm:$0xff] }
  0xa8   : > { %10930 = vset.pattern.permute.xlu1 %v14397_v0  ;;  %v11656_v12 = vpop.permute.xlu0 %891  ;;  %v9820_v11 = vpack.c.bf16 %v7226_v8, %v7225_v7 }
  0xa9   : > { %10981 = vpow2.f32 %v1145_v9  ;;  %325 = vperm.xlu1 %10930, %v11515_v18   ;;  %v652_v55 = vadd.f32 %v620_v43, %v424_v49  ;;  %v9824_v43 = vpack.c.bf16 %v7228_v35, %v7227_v33 }
  0xaa   : > { %727 = vperm.xlu0 %10977, %v11504_v16   ;;  %v7219_v16 = vld [vmem:[%s14393_s3 + $0x1b0] sm:$0xff] }
  0xab   : > { %v11660_v14 = vpop.permute.xlu1 %275  ;;  %v9808_v41 = vpack.c.bf16 %v7220_v37, %v7219_v16 }
  0xac   : > { %v11668_v34 = vpop.permute.xlu0 %895 }
  0xad   : > { %10931 = vset.pattern.permute.xlu1 %v14401_v3  ;;  %9809 = vmatprep.subr.bf16.mxu0 %v9808_v41  ;;  %v1014_v57 = vmul.f32 %v11619_v51, %v11668_v34 }
  0xae   : > { %539 = vperm.xlu1 %10931, %v11515_v18   ;;  %735 = vperm.xlu0 %10977, %v11515_v18  }
  0xaf   : > { %9811 = vmatpush3.bf16.msra.mxu0 %v9808_v41 }
  0xb0   : > { %v11679_v38 = vpop.permute.xlu1 %499  ;;  %v11681_v40 = vpop.permute.xlu0 %899  ;;  %9813 = vmatprep.subr.bf16.mxu0 %v9812_v53 }
  0xb2   : > { %10932 = vset.pattern.permute.xlu1 %v14399_v4  ;;  %743 = vperm.xlu0 %10977, %v11524_v20  }
  0xb3   : > { %v10982_v18 = vpop.eup %10981  ;;  %731 = vperm.xlu1 %10932, %v11510_v17   ;;  %v1012_v17 = vmul.f32 %v11619_v51, %v888_v2  ;;  %9815 = vmatpush3.bf16.msra.mxu0 %v9812_v53 }
  0xb4   : > { %v1209_v48 = vadd.f32 1.0, %v10982_v18  ;;  %v11694_v52 = vpop.permute.xlu0 %903  ;;  %9817 = vmatprep.subr.bf16.mxu0 %v9816_v1 }
  0xb5   : > { %v692_v54 = vpop.permute.xlu1 %691 }
  0xb6   : > { %10983 = vrcp.f32 %v1209_v48  ;;  %v816_v56 = vmul.f32 %v11617_v50, %v692_v54  ;;  %751 = vperm.xlu0 %10977, %v11535_v22  }
  0xb7   : > { %10933 = vset.pattern.permute.xlu1 %v14397_v0  ;;  %9819 = vmatpush3.bf16.msra.mxu0 %v9816_v1 }
  0xb8   : > { %v848_v61 = vadd.f32 %v816_v56, %v652_v55  ;;  %330 = vperm.xlu1 %10933, %v11519_v19   ;;  %v11707_v63 = vpop.permute.xlu0 %907  ;;  %9821 = vmatprep.subr.bf16.mxu0 %v9820_v11 }
  0xba   : > { %v1044_v2 = vadd.f32 %v1012_v17, %v848_v61  ;;  %v281_v6 = vpop.permute.xlu1 %280  ;;  %759 = vperm.xlu0 %10977, %v11545_v24  }
  0xbb   : > { %9823 = vmatpush3.bf16.msra.mxu0 %v9820_v11 }
  0xbc   : > { %v11717_v9 = vadd.f32 %v11631_v58, %v1044_v2  ;;  %10934 = vset.pattern.permute.xlu1 %v14401_v3  ;;  %v11720_v10 = vpop.permute.xlu0 %911  ;;  %9825 = vmatprep.subr.bf16.mxu0 %v9824_v43 }
  0xbd   : > { %543 = vperm.xlu1 %10934, %v11519_v19  }
  0xbe   : > { %v1115_v13 = vsub.f32 0.0, %v11717_v9  ;;  %767 = vperm.xlu0 %10977, %v11555_v26  }
  0xbf   : > { %v504_v15 = vpop.permute.xlu1 %503  ;;  %9827 = vmatpush3.bf16.msra.mxu0 %v9824_v43 }
  0xc0   : > { %v10984_v16 = vpop.eup %10983  ;;  %v1149_v37 = vmul.f32 1.442695, %v1115_v13  ;;  %v11731_v41 = vpop.permute.xlu0 %915  ;;  %v622_v53 = vmul.f32 %v11610_v45, %v504_v15 }
  0xc1   : > { %v11734_v18 = vmul.f32 %v10984_v16, %v11637_v62  ;;  %10935 = vset.pattern.permute.xlu1 %v14397_v0 }
  0xc2   : > { %10985 = vpow2.f32 %v1149_v37  ;;  %335 = vperm.xlu1 %10935, %v11524_v20   ;;  %775 = vperm.xlu0 %10977, %v11565_v28   ;;  %v11788_v37 = vld [vmem:[%s11455_s23 + $0xf8] sm:$0xff] }
  0xc3   : > { %14434 = vst [vmem:[#allocation4_spill] sm:$0xff] %v11734_v18  ;;  %1442 = vst [vmem:[#allocation2 + $0x28] sm:$0xff] %v11734_v18 }
  0xc4   : > { %v11740_v44 = vpop.permute.xlu1 %285  ;;  %v11742_v46 = vpop.permute.xlu0 %919 }
  0xc6   : > { %10936 = vset.pattern.permute.xlu1 %v14401_v3  ;;  %783 = vperm.xlu0 %10977, %v11576_v30  }
  0xc7   : > { %547 = vperm.xlu1 %10936, %v11524_v20   ;;  %v426_v20 = vmul.f32 %v11605_v42, %v281_v6 }
  0xc8   : > { %v11747_v62 = vpop.permute.xlu0 %923 }
  0xc9   : > { %v11749_v48 = vpop.permute.xlu1 %507 }
  0xca   : > { %v1476_v49 = vld [vmem:[#allocation2 + $0x27] sm:$0xff]  ;;  %791 = vperm.xlu0 %10977, %v11587_v32   ;;  %v654_v32 = vadd.f32 %v622_v53, %v426_v20  ;;  %v1016_v20 = vmul.f32 %v11619_v51, %v11694_v52 }
  0xcb   : > { %10937 = vset.pattern.permute.xlu1 %v14399_v4  ;;  %8388 = vmatprep.mubr.f32.mxu0 %v1476_v49 }
  0xcc   : > { %v10986_v54 = vpop.eup %10985  ;;  %739 = vperm.xlu1 %10937, %v11519_v19   ;;  %v11755_v17 = vpop.permute.xlu0 %927 }
  0xcd   : > { %v1211_v55 = vadd.f32 1.0, %v10986_v54 }
  0xce   : > { %v700_v56 = vpop.permute.xlu1 %699  ;;  %799 = vperm.xlu0 %10977, %v11594_v36  }
  0xcf   : > { %10987 = vrcp.f32 %v1211_v55  ;;  %v818_v60 = vmul.f32 %v11617_v50, %v700_v56 }
  0xd0   : > { %10938 = vset.pattern.permute.xlu1 %v14397_v0  ;;  %v11763_v61 = vpop.permute.xlu0 %931 }
  0xd1   : > { %v850_v19 = vadd.f32 %v818_v60, %v654_v32  ;;  %340 = vperm.xlu1 %10938, %v11529_v21  }
  0xd2   : > { %807 = vperm.xlu0 %10977, %v11788_v37  }
  0xd3   : > { %v1046_v1 = vadd.f32 %v1014_v57, %v850_v19  ;;  %v291_v2 = vpop.permute.xlu1 %290 }
  0xd4   : > { %v11766_v6 = vpop.permute.xlu0 %935  ;;  %v428_v54 = vmul.f32 %v11605_v42, %v291_v2 }
  0xd5   : > { %v1085_v36 = vadd.f32 %v11631_v58, %v1046_v1  ;;  %10939 = vset.pattern.permute.xlu1 %v14401_v3 }
  0xd6   : > { %551 = vperm.xlu1 %10939, %v11529_v21   ;;  %10980 = vset.pattern.permute.xlu0 %v14396_v5 }
  0xd7   : > { %v1117_v34 = vsub.f32 0.0, %v1085_v36 }
  0xd8   : > { %v512_v7 = vpop.permute.xlu1 %511  ;;  %v11771_v8 = vpop.permute.xlu0 %939 }
  0xd9   : > { %v10988_v11 = vpop.eup %10987  ;;  %v1153_v13 = vmul.f32 1.442695, %v1117_v34  ;;  %v624_v43 = vmul.f32 %v11610_v45, %v512_v7 }
  0xda   : > { %v11774_v15 = vmul.f32 %v10988_v11, %v11717_v9  ;;  %10940 = vset.pattern.permute.xlu1 %v14397_v0 }
  0xdb   : > { %10989 = vpow2.f32 %v1153_v13  ;;  %345 = vperm.xlu1 %10940, %v11535_v22   ;;  %v656_v56 = vadd.f32 %v624_v43, %v428_v54 }
  0xdc   : > { %14435 = vst [vmem:[#allocation5_spill] sm:$0xff] %v11774_v15  ;;  %1444 = vst [vmem:[#allocation2 + $0x48] sm:$0xff] %v11774_v15  ;;  %v11779_v33 = vpop.permute.xlu0 %943 }
  0xdd   : > { %v11781_v35 = vpop.permute.xlu1 %295 }
  0xdf   : > { %10941 = vset.pattern.permute.xlu1 %v14401_v3 }
  0xe0   : > { %555 = vperm.xlu1 %10941, %v11535_v22   ;;  %v11785_v16 = vpop.permute.xlu0 %947 }
  0xe2   : > { %v11791_v9 = vpop.permute.xlu1 %515 }
  0xe4   : > { %10942 = vset.pattern.permute.xlu1 %v14399_v4  ;;  %v11795_v49 = vpop.permute.xlu0 %951 }
  0xe5   : > { %v10990_v53 = vpop.eup %10989  ;;  %747 = vperm.xlu1 %10942, %v11529_v21  }
  0xe6   : > { %v1213_v22 = vadd.f32 1.0, %v10990_v53 }
  0xe7   : > { %v708_v55 = vpop.permute.xlu1 %707 }
  0xe8   : > { %10991 = vrcp.f32 %v1213_v22  ;;  %v820_v57 = vmul.f32 %v11617_v50, %v708_v55  ;;  %v11803_v32 = vpop.permute.xlu0 %955 }
  0xe9   : > { %10943 = vset.pattern.permute.xlu1 %v14397_v0 }
  0xea   : > { %v852_v60 = vadd.f32 %v820_v57, %v656_v56  ;;  %350 = vperm.xlu1 %10943, %v11540_v23  }
  0xec   : > { %v1048_v21 = vadd.f32 %v1016_v20, %v852_v60  ;;  %v301_v19 = vpop.permute.xlu1 %300  ;;  %v11807_v1 = vpop.permute.xlu0 %959 }
  0xed   : > { %v430_v60 = vmul.f32 %v11605_v42, %v301_v19 }
  0xee   : > { %v1087_v2 = vadd.f32 %v11631_v58, %v1048_v21  ;;  %10944 = vset.pattern.permute.xlu1 %v14401_v3 }
  0xef   : > { %559 = vperm.xlu1 %10944, %v11540_v23  }
  0xf0   : > { %v1119_v52 = vsub.f32 0.0, %v1087_v2  ;;  %v11812_v34 = vpop.permute.xlu0 %963 }
  0xf1   : > { %v520_v7 = vpop.permute.xlu1 %519 }
  0xf2   : > { %v10992_v11 = vpop.eup %10991  ;;  %v1157_v13 = vmul.f32 1.442695, %v1119_v52  ;;  %v626_v20 = vmul.f32 %v11610_v45, %v520_v7 }
  0xf3   : > { %v11814_v43 = vmul.f32 %v10992_v11, %v1085_v36  ;;  %10945 = vset.pattern.permute.xlu1 %v14397_v0 }
  0xf4   : > { %10993 = vpow2.f32 %v1157_v13  ;;  %355 = vperm.xlu1 %10945, %v11545_v24   ;;  %v11818_v53 = vpop.permute.xlu0 %967  ;;  %v658_v11 = vadd.f32 %v626_v20, %v430_v60 }
  0xf5   : > { %14436 = vst [vmem:[#allocation6_spill] sm:$0xff] %v11814_v43  ;;  %1446 = vst [vmem:[#allocation2 + $0x68] sm:$0xff] %v11814_v43 }
  0xf6   : > { %v11821_v22 = vpop.permute.xlu1 %305 }
  0xf8   : > { %10946 = vset.pattern.permute.xlu1 %v14401_v3  ;;  %v11824_v54 = vpop.permute.xlu0 %971 }
  0xf9   : > { %563 = vperm.xlu1 %10946, %v11545_v24   ;;  %v1018_v24 = vmul.f32 %v11619_v51, %v11720_v10 }
  0xfb   : > { %v11827_v55 = vpop.permute.xlu1 %523 }
  0xfc   : > { %v11829_v36 = vpop.permute.xlu0 %975 }
  0xfd   : > { %10947 = vset.pattern.permute.xlu1 %v14399_v4 }
  0xfe   : > { %v10994_v56 = vpop.eup %10993  ;;  %755 = vperm.xlu1 %10947, %v11540_v23  }
  0xff   : > { %v1215_v57 = vadd.f32 1.0, %v10994_v56 }
 0x100   : > { %v716_v21 = vpop.permute.xlu1 %715  ;;  %v11835_v52 = vpop.permute.xlu0 %979 }
 0x101   : > { %10995 = vrcp.f32 %v1215_v57  ;;  %v822_v13 = vmul.f32 %v11617_v50, %v716_v21 }
 0x102   : > { %10948 = vset.pattern.permute.xlu1 %v14397_v0 }
 0x103   : > { %v854_v7 = vadd.f32 %v822_v13, %v658_v11  ;;  %360 = vperm.xlu1 %10948, %v11550_v25  }
 0x104   : > { %v11842_v5 = vpop.permute.xlu0 %983 }
 0x105   : > { %v1050_v23 = vadd.f32 %v1018_v24, %v854_v7  ;;  %v311_v56 = vpop.permute.xlu1 %310 }
 0x106   : > { %v432_v43 = vmul.f32 %v11605_v42, %v311_v56 }
 0x107   : > { %v11845_v19 = vadd.f32 %v11631_v58, %v1050_v23  ;;  %10949 = vset.pattern.permute.xlu1 %v14401_v3  ;;  %v619_v23 = vmul.f32 %v11610_v45, %v11613_v47  ;;  %v14439_v47 = vmov 2  }
 0x108   : > { %567 = vperm.xlu1 %10949, %v11550_v25   ;;  %v11849_v10 = vpop.permute.xlu0 %987 }
 0x109   : > { %v1121_v20 = vsub.f32 0.0, %v11845_v19 }
 0x10a   : > { %v528_v57 = vpop.permute.xlu1 %527 }
 0x10b   : > { %v10996_v60 = vpop.eup %10995  ;;  %v1161_v21 = vmul.f32 1.442695, %v1121_v20 }
 0x10c   : > { %v11852_v11 = vmul.f32 %v10996_v60, %v1087_v2  ;;  %10950 = vset.pattern.permute.xlu1 %v14397_v0  ;;  %v11855_v24 = vpop.permute.xlu0 %991  ;;  %v423_v2 = vmul.f32 %v11605_v42, %v11602_v39  ;;  %v621_v60 = vmul.f32 %v11610_v45, %v11679_v38  ;;  %v425_v39 = vmul.f32 %v11605_v42, %v11660_v14 }
 0x10d   : > { %14438 = vst [vmem:[#allocation8_spill] sm:$0xff] %v11855_v24  ;;  %10997 = vpow2.f32 %v1161_v21  ;;  %365 = vperm.xlu1 %10950, %v11555_v26   ;;  %v628_v21 = vmul.f32 %v11610_v45, %v528_v57  ;;  %v1013_v38 = vmul.f32 %v11619_v51, %v11656_v12  ;;  %v427_v12 = vmul.f32 %v11605_v42, %v11740_v44 }
 0x10e   : > { %14437 = vst [vmem:[#allocation7_spill] sm:$0xff] %v11852_v11  ;;  %1448 = vst [vmem:[#allocation2 + $0x88] sm:$0xff] %v11852_v11  ;;  %v651_v4 = vadd.f32 %v619_v23, %v423_v2  ;;  %v653_v2 = vadd.f32 %v621_v60, %v425_v39  ;;  %v625_v39 = vmul.f32 %v11610_v45, %v11791_v9 }
 0x10f   : > { %v11859_v13 = vpop.permute.xlu1 %315  ;;  %v660_v15 = vadd.f32 %v628_v21, %v432_v43 }
 0x110   : > { %v11861_v7 = vpop.permute.xlu0 %995 }
 0x111   : > { %10951 = vset.pattern.permute.xlu1 %v14401_v3  ;;  %v1011_v3 = vmul.f32 %v11619_v51, %v11633_v59  ;;  %v1020_v59 = vmul.f32 %v11619_v51, %v11742_v46 }
 0x112   : > { %571 = vperm.xlu1 %10951, %v11555_v26  }
 0x114   : > { %v11869_v20 = vpop.permute.xlu1 %531 }
 0x115   : > { %v688_v0 = vpop.permute.xlu0 %687 }
 0x116   : > { %v815_v11 = vmul.f32 %v11617_v50, %v688_v0  ;;  %10952 = vset.pattern.permute.xlu1 %v14439_v47  ;;  %v623_v0 = vmul.f32 %v11610_v45, %v11749_v48  ;;  %v1015_v48 = vmul.f32 %v11619_v51, %v11681_v40 }
 0x117   : > { %v10998_v26 = vpop.eup %10997  ;;  %763 = vperm.xlu1 %10952, %v11550_v25  }
 0x118   : > { %v1217_v57 = vadd.f32 1.0, %v10998_v26  ;;  %v847_v23 = vadd.f32 %v815_v11, %v651_v4  ;;  %v14440_v4 = vmov 0  }
 0x119   : > { %v724_v18 = vpop.permute.xlu1 %723  ;;  %v696_v24 = vpop.permute.xlu0 %695 }
 0x11a   : > { %10999 = vrcp.f32 %v1217_v57  ;;  %v1043_v14 = vadd.f32 %v1011_v3, %v847_v23  ;;  %v824_v56 = vmul.f32 %v11617_v50, %v724_v18  ;;  %v817_v25 = vmul.f32 %v11617_v50, %v696_v24 }
 0x11b   : > { %10953 = vset.pattern.permute.xlu1 %v14440_v4  ;;  %v655_v3 = vadd.f32 %v623_v0, %v427_v12 }
 0x11c   : > { %v11894_v11 = vadd.f32 %v11631_v58, %v1043_v14  ;;  %v856_v46 = vadd.f32 %v824_v56, %v660_v15  ;;  %v849_v60 = vadd.f32 %v817_v25, %v653_v2  ;;  %370 = vperm.xlu1 %10953, %v11560_v27   ;;  %v14441_v2 = vmov 1  }
 0x11d   : > { %v704_v43 = vpop.permute.xlu0 %703  ;;  %v1017_v25 = vmul.f32 %v11619_v51, %v11707_v63 }
 0x11e   : > { %v1114_v18 = vsub.f32 0.0, %v11894_v11  ;;  %v1052_v24 = vadd.f32 %v1020_v59, %v856_v46  ;;  %v1045_v21 = vadd.f32 %v1013_v38, %v849_v60  ;;  %v819_v44 = vmul.f32 %v11617_v50, %v704_v43  ;;  %v11901_v26 = vpop.permute.xlu1 %320 }
 0x11f   : > { %v429_v38 = vmul.f32 %v11605_v42, %v11781_v35  ;;  %v627_v59 = vmul.f32 %v11610_v45, %v11827_v55  ;;  %v431_v46 = vmul.f32 %v11605_v42, %v11821_v22 }
 0x120   : > { %v1147_v15 = vmul.f32 1.442695, %v1114_v18  ;;  %v11906_v57 = vadd.f32 %v11631_v58, %v1052_v24  ;;  %v11909_v23 = vadd.f32 %v11631_v58, %v1045_v21  ;;  %v851_v40 = vadd.f32 %v819_v44, %v655_v3  ;;  %10954 = vset.pattern.permute.xlu1 %v14441_v2 }
 0x121   : > { %575 = vperm.xlu1 %10954, %v11560_v27   ;;  %v712_v0 = vpop.permute.xlu0 %711  ;;  %v657_v12 = vadd.f32 %v625_v39, %v429_v38  ;;  %v1019_v24 = vmul.f32 %v11619_v51, %v11731_v41  ;;  %v629_v44 = vmul.f32 %v11610_v45, %v11869_v20  ;;  %v1021_v20 = vmul.f32 %v11619_v51, %v11747_v62 }
 0x122   : > { %11001 = vpow2.f32 %v1147_v15  ;;  %v1123_v9 = vsub.f32 0.0, %v11906_v57  ;;  %v1116_v14 = vsub.f32 0.0, %v11909_v23  ;;  %v1047_v56 = vadd.f32 %v1015_v48, %v851_v40 }
 0x123   : > { %v821_v35 = vmul.f32 %v11617_v50, %v712_v0  ;;  %v536_v60 = vpop.permute.xlu1 %535  ;;  %v659_v48 = vadd.f32 %v627_v59, %v431_v46 }
 0x124   : > { %v11000_v55 = vpop.eup %10999  ;;  %v1165_v3 = vmul.f32 1.442695, %v1123_v9  ;;  %v1151_v43 = vmul.f32 1.442695, %v1116_v14  ;;  %v11925_v18 = vadd.f32 %v11631_v58, %v1047_v56 }
 0x125   : > { %v11930_v21 = vmul.f32 %v11000_v55, %v11845_v19  ;;  %v853_v63 = vadd.f32 %v821_v35, %v657_v12  ;;  %10955 = vset.pattern.permute.xlu1 %v14440_v4  ;;  %v720_v22 = vpop.permute.xlu0 %719  ;;  %v433_v19 = vmul.f32 %v11605_v42, %v11859_v13 }
 0x126   : > { %11003 = vpow2.f32 %v1165_v3  ;;  %v1118_v39 = vsub.f32 0.0, %v11925_v18  ;;  %v823_v15 = vmul.f32 %v11617_v50, %v720_v22  ;;  %375 = vperm.xlu1 %10955, %v11565_v28  }
 0x127   : > { %14442 = vst [vmem:[#allocation9_spill] sm:$0xff] %v11930_v21  ;;  %1450 = vst [vmem:[#allocation2 + $0xa8] sm:$0xff] %v11930_v21  ;;  %11005 = vpow2.f32 %v1151_v43  ;;  %v1049_v41 = vadd.f32 %v1017_v25, %v853_v63  ;;  %v661_v14 = vadd.f32 %v629_v44, %v433_v19  ;;  %v4279_v21 = vld [vmem:[#allocation2 + $0xf] sm:$0xff] }
 0x128   : > { %v1155_v40 = vmul.f32 1.442695, %v1118_v39  ;;  %v855_v38 = vadd.f32 %v823_v15, %v659_v48  ;;  %v326_v59 = vpop.permute.xlu1 %325  ;;  %v630_v39 = vmul.f32 %v11610_v45, %v536_v60 }
 0x129   : > { %v11944_v0 = vadd.f32 %v11631_v58, %v1049_v41  ;;  %v728_v9 = vpop.permute.xlu0 %727  ;;  %v435_v3 = vmul.f32 %v11605_v42, %v326_v59 }
 0x12a   : > { %11007 = vpow2.f32 %v1155_v40  ;;  %v1051_v56 = vadd.f32 %v1019_v24, %v855_v38  ;;  %v825_v12 = vmul.f32 %v11617_v50, %v728_v9  ;;  %10956 = vset.pattern.permute.xlu1 %v14441_v2 }
 0x12b   : > { %v1120_v25 = vsub.f32 0.0, %v11944_v0  ;;  %579 = vperm.xlu1 %10956, %v11565_v28   ;;  %v1023_v28 = vmul.f32 %v11619_v51, %v11763_v61 }
 0x12c   : > { %v11002_v13 = vpop.eup %11001  ;;  %v11951_v46 = vadd.f32 %v11631_v58, %v1051_v56  ;;  %v857_v62 = vadd.f32 %v825_v12, %v661_v14  ;;  %v1022_v56 = vmul.f32 %v11619_v51, %v11755_v17 }
 0x12d   : > { %v1210_v35 = vadd.f32 1.0, %v11002_v13  ;;  %v1159_v55 = vmul.f32 1.442695, %v1120_v25  ;;  %v540_v43 = vpop.permute.xlu1 %539  ;;  %v736_v48 = vpop.permute.xlu0 %735 }
 0x12e   : > { %v1122_v24 = vsub.f32 0.0, %v11951_v46  ;;  %v1053_v63 = vadd.f32 %v1021_v20, %v857_v62  ;;  %v631_v22 = vmul.f32 %v11610_v45, %v540_v43  ;;  %v827_v44 = vmul.f32 %v11617_v50, %v736_v48 }
 0x12f   : > { %11009 = vrcp.f32 %v1210_v35  ;;  %10957 = vset.pattern.permute.xlu1 %v14439_v47  ;;  %v434_v20 = vmul.f32 %v11605_v42, %v11901_v26 }
 0x130   : > { %v11004_v15 = vpop.eup %11003  ;;  %11011 = vpow2.f32 %v1159_v55  ;;  %v1163_v41 = vmul.f32 1.442695, %v1122_v24  ;;  %v11962_v19 = vadd.f32 %v11631_v58, %v1053_v63  ;;  %v663_v40 = vadd.f32 %v631_v22, %v435_v3  ;;  %771 = vperm.xlu1 %10957, %v11560_v27  }
 0x131   : > { %v11006_v38 = vpop.eup %11005  ;;  %v1219_v59 = vadd.f32 1.0, %v11004_v15  ;;  %v662_v12 = vadd.f32 %v630_v39, %v434_v20 }
 0x132   : > { %v1212_v61 = vadd.f32 1.0, %v11006_v38  ;;  %11013 = vpow2.f32 %v1163_v41  ;;  %v1124_v60 = vsub.f32 0.0, %v11962_v19  ;;  %v859_v9 = vadd.f32 %v827_v44, %v663_v40  ;;  %v732_v14 = vpop.permute.xlu1 %731 }
 0x133   : > { %11015 = vrcp.f32 %v1219_v59  ;;  %v826_v25 = vmul.f32 %v11617_v50, %v732_v14 }
 0x134   : > { %v11008_v13 = vpop.eup %11007  ;;  %11017 = vrcp.f32 %v1212_v61  ;;  %v1167_v27 = vmul.f32 1.442695, %v1124_v60  ;;  %v1055_v62 = vadd.f32 %v1023_v28, %v859_v9  ;;  %10958 = vset.pattern.permute.xlu1 %v14440_v4 }
 0x135   : > { %v1214_v26 = vadd.f32 1.0, %v11008_v13  ;;  %v858_v35 = vadd.f32 %v826_v25, %v662_v12  ;;  %380 = vperm.xlu1 %10958, %v11570_v29   ;;  %v1478_v12 = vld [vmem:[#allocation2 + $0x47] sm:$0xff]  ;;  %v744_v25 = vpop.permute.xlu0 %743 }
 0x136   : > { %11019 = vpow2.f32 %v1167_v27  ;;  %v11974_v55 = vadd.f32 %v11631_v58, %v1055_v62 }
 0x137   : > { %11021 = vrcp.f32 %v1214_v26  ;;  %v1054_v17 = vadd.f32 %v1022_v56, %v858_v35  ;;  %v11976_v3 = vpop.permute.xlu1 %330 }
 0x138   : > { %v1126_v43 = vsub.f32 0.0, %v11974_v55 }
 0x139   : > { %v11010_v48 = vpop.eup %11009  ;;  %v11980_v24 = vadd.f32 %v11631_v58, %v1054_v17  ;;  %10959 = vset.pattern.permute.xlu1 %v14441_v2  ;;  %v829_v17 = vmul.f32 %v11617_v50, %v744_v25 }
 0x13a   : > { %v11012_v63 = vpop.eup %11011  ;;  %v11984_v22 = vmul.f32 %v11010_v48, %v11894_v11  ;;  %v1171_v44 = vmul.f32 1.442695, %v1126_v43  ;;  %583 = vperm.xlu1 %10959, %v11570_v29  }
 0x13b   : > { %v1216_v28 = vadd.f32 1.0, %v11012_v63  ;;  %v1125_v39 = vsub.f32 0.0, %v11980_v24 }
 0x13c   : > { %v11014_v15 = vpop.eup %11013  ;;  %1443 = vst [vmem:[#allocation2 + $0x30] sm:$0xff] %v11984_v22  ;;  %11023 = vpow2.f32 %v1171_v44  ;;  %v544_v41 = vpop.permute.xlu1 %543  ;;  %v1025_v44 = vmul.f32 %v11619_v51, %v11771_v8 }
 0x13d   : > { %v11016_v40 = vpop.eup %11015  ;;  %11025 = vrcp.f32 %v1216_v28  ;;  %v1218_v38 = vadd.f32 1.0, %v11014_v15  ;;  %v1169_v59 = vmul.f32 1.442695, %v1125_v39  ;;  %v632_v48 = vmul.f32 %v11610_v45, %v544_v41  ;;  %v1480_v39 = vld [vmem:[#allocation2 + $0x67] sm:$0xff] }
 0x13e   : > { %v11018_v20 = vpop.eup %11017  ;;  %v11990_v61 = vmul.f32 %v11016_v40, %v11906_v57  ;;  %10960 = vset.pattern.permute.xlu1 %v14440_v4  ;;  %v436_v41 = vmul.f32 %v11605_v42, %v11976_v3  ;;  %v12027_v3 = vld [vmem:[#allocation2 + $0x87] sm:$0xff] }
 0x13f   : > { %v11994_v11 = vmul.f32 %v11018_v20, %v11909_v23  ;;  %11027 = vrcp.f32 %v1218_v38  ;;  %385 = vperm.xlu1 %10960, %v11576_v30   ;;  %v1024_v20 = vmul.f32 %v11619_v51, %v11766_v6 }
 0x140   : > { %14443 = vst [vmem:[#allocation10_spill] sm:$0xff] %v11990_v61  ;;  %v11020_v60 = vpop.eup %11019  ;;  %1452 = vst [vmem:[#allocation2 + $0xc8] sm:$0xff] %v11990_v61  ;;  %11029 = vpow2.f32 %v1169_v59 }
 0x141   : > { %14444 = vst [vmem:[#allocation11_spill] sm:$0xff] %v11994_v11  ;;  %v11022_v9 = vpop.eup %11021  ;;  %1445 = vst [vmem:[#allocation2 + $0x50] sm:$0xff] %v11994_v11  ;;  %v1220_v14 = vadd.f32 1.0, %v11020_v60  ;;  %v336_v56 = vpop.permute.xlu1 %335 }
 0x142   : > { %v12000_v57 = vmul.f32 %v11022_v9, %v11925_v18  ;;  %v437_v35 = vmul.f32 %v11605_v42, %v336_v56 }
 0x143   : > { %11031 = vrcp.f32 %v1220_v14  ;;  %10961 = vset.pattern.permute.xlu1 %v14441_v2  ;;  %v1477_v23 = vld [vmem:[#allocation2 + $0x2f] sm:$0xff] }
 0x144   : > { %14445 = vst [vmem:[#allocation12_spill] sm:$0xff] %v12000_v57  ;;  %1447 = vst [vmem:[#allocation2 + $0x70] sm:$0xff] %v12000_v57  ;;  %587 = vperm.xlu1 %10961, %v11576_v30   ;;  %8389 = vmatmul.mubr.f32.vlgmr.msra.gmra.mrb[0].mxu0 %v1477_v23  ;;  %v7379_v57 = vld [vmem:[%s14393_s3 + $0x7a8] sm:$0xff] }
 0x145   : > { %8391 = vmatprep.mubr.f32.mxu0 %v1478_v12 }
 0x146   : > { %v11024_v13 = vpop.eup %11023  ;;  %v548_v27 = vpop.permute.xlu1 %547 }
 0x147   : > { %v11026_v62 = vpop.eup %11025  ;;  %v1222_v26 = vadd.f32 1.0, %v11024_v13  ;;  %v633_v18 = vmul.f32 %v11610_v45, %v548_v27 }
 0x148   : > { %v12009_v43 = vmul.f32 %v11026_v62, %v11944_v0  ;;  %10962 = vset.pattern.permute.xlu1 %v14439_v47  ;;  %v1479_v30 = vld [vmem:[#allocation2 + $0x4f] sm:$0xff] }
 0x149   : > { %v11028_v63 = vpop.eup %11027  ;;  %11033 = vrcp.f32 %v1222_v26  ;;  %v665_v28 = vadd.f32 %v633_v18, %v437_v35  ;;  %8392 = vmatmul.mubr.f32.gmra.mrb[2].mxu0 %v1479_v30  ;;  %779 = vperm.xlu1 %10962, %v11570_v29   ;;  %v664_v29 = vadd.f32 %v632_v48, %v436_v41  ;;  %v12058_v30 = vld [vmem:[#allocation2 + $0xc7] sm:$0xff] }
 0x14a   : > { %14446 = vst [vmem:[#allocation13_spill] sm:$0xff] %v12009_v43  ;;  %v11030_v15 = vpop.eup %11029  ;;  %1449 = vst [vmem:[#allocation2 + $0x90] sm:$0xff] %v12009_v43  ;;  %v12018_v0 = vmul.f32 %v11028_v63, %v11951_v46  ;;  %8394 = vmatprep.mubr.f32.mxu0 %v1480_v39  ;;  %v752_v39 = vpop.permute.xlu0 %751  ;;  %v7378_v43 = vld [vmem:[%s14393_s3 + $0x7a0] sm:$0xff] }
 0x14b   : > { %v1221_v40 = vadd.f32 1.0, %v11030_v15  ;;  %v861_v38 = vadd.f32 %v829_v17, %v665_v28  ;;  %v740_v59 = vpop.permute.xlu1 %739  ;;  %v1481_v8 = vld [vmem:[#allocation2 + $0x6f] sm:$0xff]  ;;  %v10156_v11 = vpack.c.bf16 %v7379_v57, %v7378_v43 }
 0x14c   : > { %14447 = vst [vmem:[#allocation14_spill] sm:$0xff] %v12018_v0  ;;  %1451 = vst [vmem:[#allocation2 + $0xb0] sm:$0xff] %v12018_v0  ;;  %v828_v60 = vmul.f32 %v11617_v50, %v740_v59  ;;  %v831_v59 = vmul.f32 %v11617_v50, %v752_v39  ;;  %v7383_v57 = vld [vmem:[%s14393_s3 + $0x7c8] sm:$0xff] }
 0x14d   : > { %v11032_v9 = vpop.eup %11031  ;;  %11035 = vrcp.f32 %v1221_v40  ;;  %v1057_v46 = vadd.f32 %v1025_v44, %v861_v38  ;;  %8395 = vmatmul.mubr.f32.gmra.mrb[4].mxu0 %v1481_v8  ;;  %10963 = vset.pattern.permute.xlu1 %v14440_v4  ;;  %v11365_v44 = vld [vmem:[%s11455_s23 + $0xd8] sm:$0xff] }
 0x14e   : > { %v12030_v14 = vmul.f32 %v11032_v9, %v11962_v19  ;;  %v860_v56 = vadd.f32 %v828_v60, %v664_v29  ;;  %8397 = vmatprep.mubr.f32.mxu0 %v12027_v3  ;;  %390 = vperm.xlu1 %10963, %v11581_v31   ;;  %v12045_v19 = vld [vmem:[#allocation2 + $0xa7] sm:$0xff]  ;;  %v1027_v9 = vmul.f32 %v11619_v51, %v11785_v16 }
 0x14f   : > { %v12035_v6 = vadd.f32 %v11631_v58, %v1057_v46 }
 0x150   : > { %14448 = vst [vmem:[#allocation15_spill] sm:$0xff] %v12030_v14  ;;  %1453 = vst [vmem:[#allocation2 + $0xd0] sm:$0xff] %v12030_v14  ;;  %v1056_v23 = vadd.f32 %v1024_v20, %v860_v56  ;;  %v341_v12 = vpop.permute.xlu1 %340  ;;  %v11366_v56 = vld [vmem:[%s11455_s23 + $0xd0] sm:$0xff] }
 0x151   : > { %v1128_v25 = vsub.f32 0.0, %v12035_v6  ;;  %v12039_v13 = vld [vmem:[#allocation2 + $0x8f] sm:$0xff] }
 0x152   : > { %v12042_v27 = vadd.f32 %v11631_v58, %v1056_v23  ;;  %8398 = vmatmul.mubr.f32.gmra.mrb[6].mxu0 %v12039_v13  ;;  %10964 = vset.pattern.permute.xlu1 %v14441_v2 }
 0x153   : > { %v11034_v62 = vpop.eup %11033  ;;  %v1175_v26 = vmul.f32 1.442695, %v1128_v25  ;;  %8400 = vmatprep.mubr.f32.mxu0 %v12045_v19  ;;  %591 = vperm.xlu1 %10964, %v11581_v31   ;;  %v12050_v35 = vld [vmem:[#allocation2 + $0xaf] sm:$0xff]  ;;  %v438_v25 = vmul.f32 %v11605_v42, %v341_v12  ;;  %v12094_v12 = vld [vmem:[%s14392_s2] ss:$0 sm:$0xff] }
 0x154   : > { %v12053_v18 = vmul.f32 %v11034_v62, %v11974_v55  ;;  %v1127_v58 = vsub.f32 0.0, %v12042_v27 }
 0x155   : > { %11037 = vpow2.f32 %v1175_v26  ;;  %v552_v17 = vpop.permute.xlu1 %551 }
 0x156   : > { %14449 = vst [vmem:[#allocation16_spill] sm:$0xff] %v12053_v18  ;;  %1455 = vst [vmem:[#allocation2 + $0xf0] sm:$0xff] %v12053_v18  ;;  %v1173_v48 = vmul.f32 1.442695, %v1127_v58  ;;  %8401 = vmatmul.mubr.f32.gmra.mrb[8].mxu0 %v12050_v35  ;;  %v634_v8 = vmul.f32 %v11610_v45, %v552_v17  ;;  %v1026_v58 = vmul.f32 %v11619_v51, %v11779_v33 }
 0x157   : > { %v11036_v63 = vpop.eup %11035  ;;  %8403 = vmatprep.mubr.f32.mxu0 %v12058_v30  ;;  %10965 = vset.pattern.permute.xlu1 %v14440_v4  ;;  %v12062_v31 = vld [vmem:[#allocation2 + $0xcf] sm:$0xff] }
 0x158   : > { %v12065_v55 = vmul.f32 %v11036_v63, %v11980_v24  ;;  %11039 = vpow2.f32 %v1173_v48  ;;  %395 = vperm.xlu1 %10965, %v11365_v44   ;;  %v666_v17 = vadd.f32 %v634_v8, %v438_v25 }
 0x15a   : > { %14450 = vst [vmem:[#allocation17_spill] sm:$0xff] %v12065_v55  ;;  %1454 = vst [vmem:[#allocation2 + $0xe8] sm:$0xff] %v12065_v55  ;;  %8404 = vmatmul.mubr.f32.gmra.mrb[10].mxu0 %v12062_v31  ;;  %v346_v28 = vpop.permute.xlu1 %345 }
 0x15b   : > { %v439_v38 = vmul.f32 %v11605_v42, %v346_v28 }
 0x15c   : > { %10966 = vset.pattern.permute.xlu1 %v14441_v2 }
 0x15d   : > { %595 = vperm.xlu1 %10966, %v11365_v44   ;;  %v11367_v44 = vld [vmem:[%s11455_s23 + $0xe0] sm:$0xff] }
 0x15f   : > { %v11038_v15 = vpop.eup %11037  ;;  %v556_v41 = vpop.permute.xlu1 %555 }
 0x160   : > { %v1224_v40 = vadd.f32 1.0, %v11038_v15  ;;  %v635_v24 = vmul.f32 %v11610_v45, %v556_v41 }
 0x161   : > { %10967 = vset.pattern.permute.xlu1 %v14439_v47  ;;  %v12076_v20 = vld [vmem:[#allocation2 + $0xe7] sm:$0xff]  ;;  %v12078_v29 = vld [vmem:[#allocation2 + $0xef] sm:$0xff] }
 0x162   : > { %v11040_v60 = vpop.eup %11039  ;;  %11041 = vrcp.f32 %v1224_v40  ;;  %v667_v46 = vadd.f32 %v635_v24, %v439_v38  ;;  %8406 = vmatprep.mubr.f32.mxu0 %v12076_v20  ;;  %787 = vperm.xlu1 %10967, %v11366_v56   ;;  %v11369_v56 = vld [vmem:[%s11455_s23 + $0xe8] sm:$0xff] }
 0x163   : > { %v1223_v23 = vadd.f32 1.0, %v11040_v60  ;;  %8407 = vmatmul.mubr.f32.gmra.mrb[12].mxu0 %v12078_v29 }
 0x164   : > { %v863_v62 = vadd.f32 %v831_v59, %v667_v46  ;;  %v748_v26 = vpop.permute.xlu1 %747 }
 0x165   : > { %11043 = vrcp.f32 %v1223_v23  ;;  %v830_v16 = vmul.f32 %v11617_v50, %v748_v26  ;;  %v760_v23 = vpop.permute.xlu0 %759 }
 0x166   : > { %v1059_v48 = vadd.f32 %v1027_v9, %v863_v62  ;;  %10968 = vset.pattern.permute.xlu1 %v14440_v4 }
 0x167   : > { %v862_v63 = vadd.f32 %v830_v16, %v666_v17  ;;  %400 = vperm.xlu1 %10968, %v11367_v44   ;;  %v833_v16 = vmul.f32 %v11617_v50, %v760_v23 }
 0x168   : > { %v12097_v28 = vadd.f32 %v12094_v12, %v1059_v48 }
 0x169   : > { %v1058_v39 = vadd.f32 %v1026_v58, %v862_v63  ;;  %v351_v33 = vpop.permute.xlu1 %350 }
 0x16a   : > { %v1130_v15 = vsub.f32 0.0, %v12097_v28 }
 0x16b   : > { %v12101_v41 = vadd.f32 %v12094_v12, %v1058_v39  ;;  %10969 = vset.pattern.permute.xlu1 %v14441_v2 }
 0x16c   : > { %v11042_v40 = vpop.eup %11041  ;;  %v1179_v38 = vmul.f32 1.442695, %v1130_v15  ;;  %599 = vperm.xlu1 %10969, %v11367_v44  }
 0x16d   : > { %v12105_v24 = vmul.f32 %v11042_v40, %v12035_v6  ;;  %v1129_v59 = vsub.f32 0.0, %v12101_v41 }
 0x16e   : > { %11045 = vpow2.f32 %v1179_v38  ;;  %v560_v8 = vpop.permute.xlu1 %559  ;;  %v440_v38 = vmul.f32 %v11605_v42, %v351_v33 }
 0x16f   : > { %14451 = vst [vmem:[#allocation18_spill] sm:$0xff] %v12105_v24  ;;  %v11044_v60 = vpop.eup %11043  ;;  %1457 = vst [vmem:[#allocation2 + $0x110] sm:$0xff] %v12105_v24  ;;  %v1177_v9 = vmul.f32 1.442695, %v1129_v59  ;;  %v636_v63 = vmul.f32 %v11610_v45, %v560_v8  ;;  %v1029_v59 = vmul.f32 %v11619_v51, %v11803_v32  ;;  %v14459_v24 = vld [vmem:[#allocation8_spill] sm:$0xff] }
 0x170   : > { %v12110_v46 = vmul.f32 %v11044_v60, %v12042_v27  ;;  %10970 = vset.pattern.permute.xlu1 %v14440_v4 }
 0x171   : > { %11047 = vpow2.f32 %v1177_v9  ;;  %405 = vperm.xlu1 %10970, %v11369_v56   ;;  %v668_v8 = vadd.f32 %v636_v63, %v440_v38 }
 0x172   : > { %14452 = vst [vmem:[#allocation19_spill] sm:$0xff] %v12110_v46  ;;  %1456 = vst [vmem:[#allocation2 + $0x108] sm:$0xff] %v12110_v46 }
 0x173   : > { %v356_v6 = vpop.permute.xlu1 %355 }
 0x174   : > { %v441_v58 = vmul.f32 %v11605_v42, %v356_v6 }
 0x175   : > { %10971 = vset.pattern.permute.xlu1 %v14441_v2 }
 0x176   : > { %603 = vperm.xlu1 %10971, %v11369_v56   ;;  %v255_v56 = vld [vmem:[%s11455_s23 + $0xf0] sm:$0xff]  ;;  %s14225_s23 = scalar_lea.vmem %s14395_s5, %s7490_s20 }
 0x178   : > { %v11046_v25 = vpop.eup %11045  ;;  %v564_v62 = vpop.permute.xlu1 %563 }
 0x179   : > { %v1226_v26 = vadd.f32 1.0, %v11046_v25  ;;  %v637_v27 = vmul.f32 %v11610_v45, %v564_v62  ;;  %v12118_v17 = vld [vmem:[#allocation2 + $0x107] sm:$0xff]  ;;  %v12121_v48 = vld [vmem:[#allocation2 + $0x10f] sm:$0xff] }
 0x17a   : > { %10972 = vset.pattern.permute.xlu1 %v14439_v47  ;;  %8409 = vmatprep.mubr.f32.mxu0 %v12118_v17 }
 0x17b   : > { %v11048_v39 = vpop.eup %11047  ;;  %11049 = vrcp.f32 %v1226_v26  ;;  %v669_v15 = vadd.f32 %v637_v27, %v441_v58  ;;  %795 = vperm.xlu1 %10972, %v11367_v44   ;;  %8410 = vmatmul.mubr.f32.gmra.mrb[14].mxu0 %v12121_v48  ;;  %v1028_v44 = vmul.f32 %v11619_v51, %v11795_v49 }
 0x17c   : > { %v1225_v40 = vadd.f32 1.0, %v11048_v39 }
 0x17d   : > { %v865_v60 = vadd.f32 %v833_v16, %v669_v15  ;;  %v756_v9 = vpop.permute.xlu1 %755 }
 0x17e   : > { %11051 = vrcp.f32 %v1225_v40  ;;  %v832_v6 = vmul.f32 %v11617_v50, %v756_v9 }
 0x17f   : > { %v1061_v23 = vadd.f32 %v1029_v59, %v865_v60  ;;  %10973 = vset.pattern.permute.xlu1 %v14440_v4  ;;  %v768_v59 = vpop.permute.xlu0 %767 }
 0x180   : > { %v864_v25 = vadd.f32 %v832_v6, %v668_v8  ;;  %410 = vperm.xlu1 %10973, %v255_v56  }
 0x181   : > { %v1100_v33 = vadd.f32 %v12094_v12, %v1061_v23 }
 0x182   : > { %v1060_v62 = vadd.f32 %v1028_v44, %v864_v25  ;;  %v361_v26 = vpop.permute.xlu1 %360 }
 0x183   : > { %v1132_v32 = vsub.f32 0.0, %v1100_v33 }
 0x184   : > { %v12137_v58 = vadd.f32 %v12094_v12, %v1060_v62  ;;  %10974 = vset.pattern.permute.xlu1 %v14441_v2 }
 0x185   : > { %v11050_v27 = vpop.eup %11049  ;;  %v1183_v16 = vmul.f32 1.442695, %v1132_v32  ;;  %607 = vperm.xlu1 %10974, %v255_v56  }
 0x186   : > { %v12141_v63 = vmul.f32 %v11050_v27, %v12097_v28  ;;  %v1131_v49 = vsub.f32 0.0, %v12137_v58  ;;  %v442_v27 = vmul.f32 %v11605_v42, %v361_v26 }
 0x187   : > { %11053 = vpow2.f32 %v1183_v16  ;;  %v568_v39 = vpop.permute.xlu1 %567  ;;  %v1031_v16 = vmul.f32 %v11619_v51, %v11812_v34 }
 0x188   : > { %14453 = vst [vmem:[#allocation20_spill] sm:$0xff] %v12141_v63  ;;  %v11052_v15 = vpop.eup %11051  ;;  %1459 = vst [vmem:[#allocation2 + $0x130] sm:$0xff] %v12141_v63  ;;  %v1181_v40 = vmul.f32 1.442695, %v1131_v49  ;;  %v638_v25 = vmul.f32 %v11610_v45, %v568_v39 }
 0x189   : > { %v12146_v38 = vmul.f32 %v11052_v15, %v12101_v41  ;;  %10975 = vset.pattern.permute.xlu1 %v14440_v4  ;;  %v835_v4 = vmul.f32 %v11617_v50, %v768_v59  ;;  %v1030_v59 = vmul.f32 %v11619_v51, %v11807_v1 }
 0x18a   : > { %11055 = vpow2.f32 %v1181_v40  ;;  %415 = vperm.xlu1 %10975, %v11788_v37   ;;  %v670_v39 = vadd.f32 %v638_v25, %v442_v27 }
 0x18b   : > { %14454 = vst [vmem:[#allocation21_spill] sm:$0xff] %v12146_v38  ;;  %1458 = vst [vmem:[#allocation2 + $0x128] sm:$0xff] %v12146_v38  ;;  %v1036_v38 = vmul.f32 %v11619_v51, %v11842_v5 }
 0x18c   : > { %v366_v28 = vpop.permute.xlu1 %365 }
 0x18d   : > { %v443_v6 = vmul.f32 %v11605_v42, %v366_v28  ;;  %v14455_v28 = vmov 3  }
 0x18e   : > { %10976 = vset.pattern.permute.xlu1 %v14441_v2 }
 0x18f   : > { %611 = vperm.xlu1 %10976, %v11788_v37  }
 0x191   : > { %v11054_v60 = vpop.eup %11053  ;;  %v572_v9 = vpop.permute.xlu1 %571 }
 0x192   : > { %v1228_v8 = vadd.f32 1.0, %v11054_v60  ;;  %v639_v41 = vmul.f32 %v11610_v45, %v572_v9  ;;  %v12155_v23 = vld [vmem:[#allocation2 + $0x127] sm:$0xff]  ;;  %v12158_v44 = vld [vmem:[#allocation2 + $0x12f] sm:$0xff] }
 0x193   : > { %10978 = vset.pattern.permute.xlu1 %v14439_v47  ;;  %8412 = vmatprep.mubr.f32.mxu0 %v12155_v23 }
 0x194   : > { %v11056_v2 = vpop.eup %11055  ;;  %11057 = vrcp.f32 %v1228_v8  ;;  %v671_v62 = vadd.f32 %v639_v41, %v443_v6  ;;  %803 = vperm.xlu1 %10978, %v255_v56   ;;  %8413 = vmatmul.mubr.f32.gmra.mrb[16].mxu0 %v12158_v44 }
 0x195   : > { %v1227_v32 = vadd.f32 1.0, %v11056_v2 }
 0x196   : > { %v867_v49 = vadd.f32 %v835_v4, %v671_v62  ;;  %v764_v15 = vpop.permute.xlu1 %763 }
 0x197   : > { %11059 = vrcp.f32 %v1227_v32  ;;  %v834_v47 = vmul.f32 %v11617_v50, %v764_v15  ;;  %v1510_v32 = vld [vmem:[%s14393_s3] sm:$0xff] }
 0x198   : > { %v1063_v40 = vadd.f32 %v1031_v16, %v867_v49  ;;  %10979 = vset.pattern.permute.xlu1 %v14455_v28  ;;  %v1513_v49 = vld [vmem:[%s14393_s3 + $0x18] sm:$0xff] }
 0x199   : > { %v866_v60 = vadd.f32 %v834_v47, %v670_v39  ;;  %999 = vperm.xlu1 %10979, %v255_v56   ;;  %v776_v47 = vpop.permute.xlu0 %775 }
 0x19a   : > { %v12172_v9 = vadd.f32 %v12094_v12, %v1063_v40 }
 0x19b   : > { %v1062_v26 = vadd.f32 %v1030_v59, %v866_v60  ;;  %v371_v8 = vpop.permute.xlu1 %370 }
 0x19c   : > { %v1134_v34 = vsub.f32 0.0, %v12172_v9 }
 0x19d   : > { %v12176_v6 = vadd.f32 %v12094_v12, %v1062_v26  ;;  %1003 = vperm.xlu1 %10979, %v11788_v37   ;;  %v1511_v37 = vld [vmem:[%s14393_s3 + $0x8] sm:$0xff] }
 0x19e   : > { %v11058_v41 = vpop.eup %11057  ;;  %v1187_v4 = vmul.f32 1.442695, %v1134_v34  ;;  %v9828_v16 = vpack.c.bf16 %v1511_v37, %v1510_v32  ;;  %v837_v34 = vmul.f32 %v11617_v50, %v776_v47  ;;  %v444_v32 = vmul.f32 %v11605_v42, %v371_v8  ;;  %v1515_v8 = vld [vmem:[%s14393_s3 + $0x28] sm:$0xff] }
 0x19f   : > { %v12179_v25 = vmul.f32 %v11058_v41, %v1100_v33  ;;  %v1133_v1 = vsub.f32 0.0, %v12176_v6  ;;  %v1512_v33 = vld [vmem:[%s14393_s3 + $0x10] sm:$0xff]  ;;  %v1033_v37 = vmul.f32 %v11619_v51, %v11824_v54  ;;  %v1514_v54 = vld [vmem:[%s14393_s3 + $0x20] sm:$0xff] }
 0x1a0   : > { %11061 = vpow2.f32 %v1187_v4  ;;  %v576_v56 = vpop.permute.xlu1 %575  ;;  %v9832_v15 = vpack.c.bf16 %v1513_v49, %v1512_v33  ;;  %9829 = vmatprep.subr.bf16.mxu0 %v9828_v16 }
 0x1a1   : > { %14456 = vst [vmem:[#allocation22_spill] sm:$0xff] %v12179_v25  ;;  %v11060_v2 = vpop.eup %11059  ;;  %1461 = vst [vmem:[#allocation2 + $0x150] sm:$0xff] %v12179_v25  ;;  %v1185_v62 = vmul.f32 1.442695, %v1133_v1  ;;  %9831 = vmatpush3.bf16.msra.mxu0 %v9828_v16  ;;  %v640_v4 = vmul.f32 %v11610_v45, %v576_v56 }
 0x1a2   : > { %v12193_v27 = vmul.f32 %v11060_v2, %v12137_v58  ;;  %9833 = vmatprep.subr.bf16.mxu0 %v9832_v15 }
 0x1a3   : > { %11063 = vpow2.f32 %v1185_v62  ;;  %v672_v49 = vadd.f32 %v640_v4, %v444_v32  ;;  %v1517_v32 = vld [vmem:[%s14393_s3 + $0x38] sm:$0xff] }
 0x1a4   : > { %1460 = vst [vmem:[#allocation2 + $0x148] sm:$0xff] %v12193_v27 }
 0x1a5   : > { %v376_v39 = vpop.permute.xlu1 %375  ;;  %9835 = vmatpush3.bf16.msra.mxu0 %v9832_v15 }
 0x1a6   : > { %v445_v58 = vmul.f32 %v11605_v42, %v376_v39  ;;  %v1032_v39 = vmul.f32 %v11619_v51, %v11818_v53 }
 0x1aa   : > { %v11062_v40 = vpop.eup %11061  ;;  %v580_v28 = vpop.permute.xlu1 %579 }
 0x1ab   : > { %v1230_v59 = vadd.f32 1.0, %v11062_v40  ;;  %v641_v60 = vmul.f32 %v11610_v45, %v580_v28  ;;  %v12201_v26 = vld [vmem:[#allocation2 + $0x147] sm:$0xff]  ;;  %v12204_v41 = vld [vmem:[#allocation2 + $0x14f] sm:$0xff] }
 0x1ac   : > { %8415 = vmatprep.mubr.f32.mxu0 %v12201_v26 }
 0x1ad   : > { %v11064_v1 = vpop.eup %11063  ;;  %11065 = vrcp.f32 %v1230_v59  ;;  %v673_v2 = vadd.f32 %v641_v60, %v445_v58  ;;  %8416 = vmatmul.mubr.f32.gmra.mrb[18].mxu0 %v12204_v41  ;;  %v9836_v60 = vpack.c.bf16 %v1515_v8, %v1514_v54  ;;  %v784_v54 = vpop.permute.xlu0 %783 }
 0x1ae   : > { %v1229_v62 = vadd.f32 1.0, %v11064_v1 }
 0x1af   : > { %v869_v33 = vadd.f32 %v837_v34, %v673_v2  ;;  %v772_v16 = vpop.permute.xlu1 %771  ;;  %9837 = vmatprep.subr.bf16.mxu0 %v9836_v60 }
 0x1b0   : > { %11067 = vrcp.f32 %v1229_v62  ;;  %v836_v15 = vmul.f32 %v11617_v50, %v772_v16  ;;  %9839 = vmatpush3.bf16.msra.mxu0 %v9836_v60  ;;  %v1516_v62 = vld [vmem:[%s14393_s3 + $0x30] sm:$0xff]  ;;  %v1523_v60 = vld [vmem:[%s14393_s3 + $0x68] sm:$0xff] }
 0x1b1   : > { %v1065_v56 = vadd.f32 %v1033_v37, %v869_v33  ;;  %v9840_v33 = vpack.c.bf16 %v1517_v32, %v1516_v62 }
 0x1b2   : > { %v868_v47 = vadd.f32 %v836_v15, %v672_v49  ;;  %v1518_v15 = vld [vmem:[%s14393_s3 + $0x40] sm:$0xff] }
 0x1b3   : > { %v12216_v40 = vadd.f32 %v12094_v12, %v1065_v56  ;;  %9841 = vmatprep.subr.bf16.mxu0 %v9840_v33  ;;  %v1519_v56 = vld [vmem:[%s14393_s3 + $0x48] sm:$0xff] }
 0x1b4   : > { %v1064_v28 = vadd.f32 %v1032_v39, %v868_v47  ;;  %v381_v59 = vpop.permute.xlu1 %380  ;;  %9843 = vmatpush3.bf16.msra.mxu0 %v9840_v33  ;;  %v9844_v39 = vpack.c.bf16 %v1519_v56, %v1518_v15  ;;  %v839_v56 = vmul.f32 %v11617_v50, %v784_v54  ;;  %v1035_v54 = vmul.f32 %v11619_v51, %v11835_v52 }
 0x1b5   : > { %v1136_v58 = vsub.f32 0.0, %v12216_v40  ;;  %v1034_v52 = vmul.f32 %v11619_v51, %v11829_v36 }
 0x1b6   : > { %v12226_v34 = vadd.f32 %v12094_v12, %v1064_v28  ;;  %9845 = vmatprep.subr.bf16.mxu0 %v9844_v39  ;;  %v1521_v28 = vld [vmem:[%s14393_s3 + $0x58] sm:$0xff] }
 0x1b7   : > { %v11066_v53 = vpop.eup %11065  ;;  %v1191_v4 = vmul.f32 1.442695, %v1136_v58  ;;  %v1522_v58 = vld [vmem:[%s14393_s3 + $0x60] sm:$0xff] }
 0x1b8   : > { %v12229_v1 = vmul.f32 %v11066_v53, %v12172_v9  ;;  %v1135_v2 = vsub.f32 0.0, %v12226_v34  ;;  %9847 = vmatpush3.bf16.msra.mxu0 %v9844_v39  ;;  %v9852_v53 = vpack.c.bf16 %v1523_v60, %v1522_v58 }
 0x1b9   : > { %11069 = vpow2.f32 %v1191_v4  ;;  %v584_v37 = vpop.permute.xlu1 %583  ;;  %v1524_v4 = vld [vmem:[%s14393_s3 + $0x70] sm:$0xff] }
 0x1ba   : > { %v11068_v16 = vpop.eup %11067  ;;  %1463 = vst [vmem:[#allocation2 + $0x170] sm:$0xff] %v12229_v1  ;;  %v1189_v49 = vmul.f32 1.442695, %v1135_v2  ;;  %v1525_v2 = vld [vmem:[%s14393_s3 + $0x78] sm:$0xff] }
 0x1bb   : > { %v12240_v9 = vmul.f32 %v11068_v16, %v12176_v6  ;;  %v1520_v6 = vld [vmem:[%s14393_s3 + $0x50] sm:$0xff] }
 0x1bc   : > { %11071 = vpow2.f32 %v1189_v49  ;;  %v9848_v8 = vpack.c.bf16 %v1521_v28, %v1520_v6  ;;  %v642_v6 = vmul.f32 %v11610_v45, %v584_v37  ;;  %v9856_v28 = vpack.c.bf16 %v1525_v2, %v1524_v4  ;;  %v7229_v2 = vld [vmem:[%s14393_s3 + $0x300] sm:$0xff] }
 0x1bd   : > { %1462 = vst [vmem:[#allocation2 + $0x168] sm:$0xff] %v12240_v9 }
 0x1be   : > { %v386_v47 = vpop.permute.xlu1 %385  ;;  %9849 = vmatprep.subr.bf16.mxu0 %v9848_v8 }
 0x1bf   : > { %v447_v16 = vmul.f32 %v11605_v42, %v386_v47  ;;  %9851 = vmatpush3.bf16.msra.mxu0 %v9848_v8 }
 0x1c0   : > { %9853 = vmatprep.subr.bf16.mxu0 %v9852_v53 }
 0x1c3   : > { %v11070_v62 = vpop.eup %11069  ;;  %v588_v32 = vpop.permute.xlu1 %587  ;;  %9855 = vmatpush3.bf16.msra.mxu0 %v9852_v53 }
 0x1c4   : > { %v1232_v33 = vadd.f32 1.0, %v11070_v62  ;;  %v643_v49 = vmul.f32 %v11610_v45, %v588_v32  ;;  %v12269_v15 = vld [vmem:[#allocation2 + $0x167] sm:$0xff]  ;;  %v12272_v39 = vld [vmem:[#allocation2 + $0x16f] sm:$0xff]  ;;  %v446_v62 = vmul.f32 %v11605_v42, %v381_v59  ;;  %9857 = vmatprep.subr.bf16.mxu0 %v9856_v28 }
 0x1c5   : > { %8418 = vmatprep.mubr.f32.mxu0 %v12269_v15  ;;  %v7230_v59 = vld [vmem:[%s14393_s3 + $0x308] sm:$0xff] }
 0x1c6   : > { %v11072_v58 = vpop.eup %11071  ;;  %11073 = vrcp.f32 %v1232_v33  ;;  %v675_v60 = vadd.f32 %v643_v49, %v447_v16  ;;  %8419 = vmatmul.mubr.f32.gmra.mrb[20].mxu0 %v12272_v39  ;;  %v674_v37 = vadd.f32 %v642_v6, %v446_v62  ;;  %v12289_v16 = vpack.c.bf16 %v7230_v59, %v7229_v2 }
 0x1c7   : > { %v1231_v47 = vadd.f32 1.0, %v11072_v58  ;;  %9859 = vmatpush3.bf16.msra.mxu0 %v9856_v28 }
 0x1c8   : > { %v871_v32 = vadd.f32 %v839_v56, %v675_v60  ;;  %v780_v25 = vpop.permute.xlu1 %779  ;;  %9861 = vmatprep.subr.bf16.mxu0 %v12289_v16 }
 0x1c9   : > { %11075 = vrcp.f32 %v1231_v47  ;;  %v838_v8 = vmul.f32 %v11617_v50, %v780_v25 }
 0x1ca   : > { %v1067_v4 = vadd.f32 %v1035_v54, %v871_v32 }
 0x1cb   : > { %v870_v33 = vadd.f32 %v838_v8, %v674_v37 }
 0x1cc   : > { %v1106_v53 = vadd.f32 %v12094_v12, %v1067_v4  ;;  %v792_v4 = vpop.permute.xlu0 %791 }
 0x1cd   : > { %v1066_v25 = vadd.f32 %v1034_v52, %v870_v33  ;;  %v391_v49 = vpop.permute.xlu1 %390 }
 0x1ce   : > { %v1138_v56 = vsub.f32 0.0, %v1106_v53 }
 0x1cf   : > { %v1105_v6 = vadd.f32 %v12094_v12, %v1066_v25 }
 0x1d0   : > { %v11074_v58 = vpop.eup %11073  ;;  %v1195_v60 = vmul.f32 1.442695, %v1138_v56 }
 0x1d1   : > { %v12295_v47 = vmul.f32 %v11074_v58, %v12216_v40  ;;  %v1137_v62 = vsub.f32 0.0, %v1105_v6  ;;  %v841_v40 = vmul.f32 %v11617_v50, %v792_v4 }
 0x1d2   : > { %11077 = vpow2.f32 %v1195_v60  ;;  %v592_v36 = vpop.permute.xlu1 %591 }
 0x1d3   : > { %v11076_v54 = vpop.eup %11075  ;;  %1465 = vst [vmem:[#allocation2 + $0x190] sm:$0xff] %v12295_v47  ;;  %v1193_v32 = vmul.f32 1.442695, %v1137_v62 }
 0x1d4   : > { %v12299_v28 = vmul.f32 %v11076_v54, %v12226_v34  ;;  %v644_v34 = vmul.f32 %v11610_v45, %v592_v36  ;;  %v448_v54 = vmul.f32 %v11605_v42, %v391_v49 }
 0x1d5   : > { %11079 = vpow2.f32 %v1193_v32  ;;  %v1037_v32 = vmul.f32 %v11619_v51, %v11849_v10 }
 0x1d6   : > { %1464 = vst [vmem:[#allocation2 + $0x188] sm:$0xff] %v12299_v28  ;;  %v676_v4 = vadd.f32 %v644_v34, %v448_v54 }
 0x1d7   : > { %v396_v37 = vpop.permute.xlu1 %395 }
 0x1d8   : > { %v449_v52 = vmul.f32 %v11605_v42, %v396_v37 }
 0x1dc   : > { %v11078_v8 = vpop.eup %11077  ;;  %v596_v2 = vpop.permute.xlu1 %595 }
 0x1dd   : > { %v1234_v59 = vadd.f32 1.0, %v11078_v8  ;;  %v645_v33 = vmul.f32 %v11610_v45, %v596_v2  ;;  %v12305_v25 = vld [vmem:[#allocation2 + $0x187] sm:$0xff]  ;;  %v12307_v56 = vld [vmem:[#allocation2 + $0x18f] sm:$0xff] }
 0x1de   : > { %8421 = vmatprep.mubr.f32.mxu0 %v12305_v25 }
 0x1df   : > { %v11080_v58 = vpop.eup %11079  ;;  %11081 = vrcp.f32 %v1234_v59  ;;  %v677_v60 = vadd.f32 %v645_v33, %v449_v52  ;;  %8422 = vmatmul.mubr.f32.gmra.mrb[22].mxu0 %v12307_v56 }
 0x1e0   : > { %v1233_v62 = vadd.f32 1.0, %v11080_v58 }
 0x1e1   : > { %v873_v37 = vadd.f32 %v841_v40, %v677_v60  ;;  %v788_v8 = vpop.permute.xlu1 %787 }
 0x1e2   : > { %11083 = vrcp.f32 %v1233_v62  ;;  %v840_v2 = vmul.f32 %v11617_v50, %v788_v8 }
 0x1e3   : > { %v1069_v36 = vadd.f32 %v1037_v32, %v873_v37 }
 0x1e4   : > { %v872_v59 = vadd.f32 %v840_v2, %v676_v4  ;;  %v800_v2 = vpop.permute.xlu0 %799 }
 0x1e5   : > { %v1108_v52 = vadd.f32 %v12094_v12, %v1069_v36 }
 0x1e6   : > { %v1068_v33 = vadd.f32 %v1036_v38, %v872_v59  ;;  %v401_v58 = vpop.permute.xlu1 %400  ;;  %v843_v59 = vmul.f32 %v11617_v50, %v800_v2  ;;  %v1038_v2 = vmul.f32 %v11619_v51, %v14459_v24 }
 0x1e7   : > { %v1140_v63 = vsub.f32 0.0, %v1108_v52 }
 0x1e8   : > { %v1107_v49 = vadd.f32 %v12094_v12, %v1068_v33 }
 0x1e9   : > { %v11082_v46 = vpop.eup %11081  ;;  %v1199_v10 = vmul.f32 1.442695, %v1140_v63 }
 0x1ea   : > { %v12320_v40 = vmul.f32 %v11082_v46, %v1106_v53  ;;  %v1139_v60 = vsub.f32 0.0, %v1107_v49 }
 0x1eb   : > { %11085 = vpow2.f32 %v1199_v10  ;;  %v600_v34 = vpop.permute.xlu1 %599 }
 0x1ec   : > { %14457 = vst [vmem:[#allocation23_spill] sm:$0xff] %v12320_v40  ;;  %v11084_v62 = vpop.eup %11083  ;;  %1467 = vst [vmem:[#allocation2 + $0x1b0] sm:$0xff] %v12320_v40  ;;  %v1197_v54 = vmul.f32 1.442695, %v1139_v60  ;;  %v646_v36 = vmul.f32 %v11610_v45, %v600_v34  ;;  %v450_v60 = vmul.f32 %v11605_v42, %v401_v58 }
 0x1ed   : > { %v12323_v5 = vmul.f32 %v11084_v62, %v1105_v6  ;;  %v1039_v62 = vmul.f32 %v11619_v51, %v11861_v7 }
 0x1ee   : > { %11087 = vpow2.f32 %v1197_v54 }
 0x1ef   : > { %14458 = vst [vmem:[#allocation24_spill] sm:$0xff] %v12323_v5  ;;  %1466 = vst [vmem:[#allocation2 + $0x1a8] sm:$0xff] %v12323_v5 }
 0x1f0   : > { %v406_v38 = vpop.permute.xlu1 %405 }
 0x1f1   : > { %v451_v63 = vmul.f32 %v11605_v42, %v406_v38 }
 0x1f5   : > { %v11086_v32 = vpop.eup %11085  ;;  %v604_v37 = vpop.permute.xlu1 %603 }
 0x1f6   : > { %v1236_v8 = vadd.f32 1.0, %v11086_v32  ;;  %v647_v46 = vmul.f32 %v11610_v45, %v604_v37  ;;  %v12328_v53 = vld [vmem:[#allocation2 + $0x1a7] sm:$0xff]  ;;  %v12330_v4 = vld [vmem:[#allocation2 + $0x1af] sm:$0xff]  ;;  %v678_v32 = vadd.f32 %v646_v36, %v450_v60 }
 0x1f7   : > { %8424 = vmatprep.mubr.f32.mxu0 %v12328_v53 }
 0x1f8   : > { %v11088_v6 = vpop.eup %11087  ;;  %11089 = vrcp.f32 %v1236_v8  ;;  %v679_v33 = vadd.f32 %v647_v46, %v451_v63  ;;  %8425 = vmatmul.mubr.f32.gmra.mrb[24].mxu0 %v12330_v4 }
 0x1f9   : > { %v1235_v10 = vadd.f32 1.0, %v11088_v6 }
 0x1fa   : > { %v875_v54 = vadd.f32 %v843_v59, %v679_v33  ;;  %v796_v38 = vpop.permute.xlu1 %795 }
 0x1fb   : > { %11091 = vrcp.f32 %v1235_v10  ;;  %v842_v34 = vmul.f32 %v11617_v50, %v796_v38 }
 0x1fc   : > { %v1071_v37 = vadd.f32 %v1039_v62, %v875_v54 }
 0x1fd   : > { %v874_v8 = vadd.f32 %v842_v34, %v678_v32 }
 0x1fe   : > { %v1110_v63 = vadd.f32 %v12094_v12, %v1071_v37 }
 0x1ff   : > { %v1070_v46 = vadd.f32 %v1038_v2, %v874_v8  ;;  %v411_v6 = vpop.permute.xlu1 %410 }
 0x200   : > { %v1142_v55 = vsub.f32 0.0, %v1110_v63  ;;  %v452_v2 = vmul.f32 %v11605_v42, %v411_v6 }
 0x201   : > { %v1109_v58 = vadd.f32 %v12094_v12, %v1070_v46 }
 0x202   : > { %v11090_v18 = vpop.eup %11089  ;;  %v1203_v7 = vmul.f32 1.442695, %v1142_v55 }
 0x203   : > { %v12344_v59 = vmul.f32 %v11090_v18, %v1108_v52  ;;  %v1141_v33 = vsub.f32 0.0, %v1109_v58 }
 0x204   : > { %11093 = vpow2.f32 %v1203_v7  ;;  %v608_v36 = vpop.permute.xlu1 %607 }
 0x205   : > { %14460 = vst [vmem:[#allocation8_spill] sm:$0xff] %v12344_v59  ;;  %v11092_v10 = vpop.eup %11091  ;;  %1469 = vst [vmem:[#allocation2 + $0x1d0] sm:$0xff] %v12344_v59  ;;  %v1201_v60 = vmul.f32 1.442695, %v1141_v33 }
 0x206   : > { %v12347_v24 = vmul.f32 %v11092_v10, %v1107_v49  ;;  %v648_v49 = vmul.f32 %v11610_v45, %v608_v36  ;;  %v808_v10 = vpop.permute.xlu0 %807 }
 0x207   : > { %11095 = vpow2.f32 %v1201_v60  ;;  %v845_v36 = vmul.f32 %v11617_v50, %v808_v10 }
 0x208   : > { %14461 = vst [vmem:[#allocation25_spill] sm:$0xff] %v12347_v24  ;;  %1468 = vst [vmem:[#allocation2 + $0x1c8] sm:$0xff] %v12347_v24  ;;  %v680_v7 = vadd.f32 %v648_v49, %v452_v2 }
 0x209   : > { %v416_v62 = vpop.permute.xlu1 %415 }
 0x20a   : > { %v453_v33 = vmul.f32 %v11605_v42, %v416_v62 }
 0x20e   : > { %v11094_v54 = vpop.eup %11093  ;;  %v612_v38 = vpop.permute.xlu1 %611 }
 0x20f   : > { %v1238_v32 = vadd.f32 1.0, %v11094_v54  ;;  %v12350_v34 = vld [vmem:[#allocation2 + $0x1c7] sm:$0xff]  ;;  %v12352_v18 = vld [vmem:[#allocation2 + $0x1cf] sm:$0xff]  ;;  %v649_v8 = vmul.f32 %v11610_v45, %v612_v38 }
 0x210   : > { %8427 = vmatprep.mubr.f32.mxu0 %v12350_v34 }
 0x211   : > { %v11096_v55 = vpop.eup %11095  ;;  %11097 = vrcp.f32 %v1238_v32  ;;  %8428 = vmatmul.mubr.f32.gmra.mrb[26].mxu0 %v12352_v18  ;;  %v681_v54 = vadd.f32 %v649_v8, %v453_v33 }
 0x212   : > { %v1237_v52 = vadd.f32 1.0, %v11096_v55 }
 0x213   : > { %v804_v37 = vpop.permute.xlu1 %803  ;;  %v877_v38 = vadd.f32 %v845_v36, %v681_v54 }
 0x214   : > { %11099 = vrcp.f32 %v1237_v52  ;;  %v844_v46 = vmul.f32 %v11617_v50, %v804_v37 }
 0x216   : > { %v876_v32 = vadd.f32 %v844_v46, %v680_v7 }
 0x218   : > { %v1000_v60 = vpop.permute.xlu1 %999 }
 0x219   : > { %v1040_v61 = vmul.f32 %v11619_v51, %v1000_v60 }
 0x21b   : > { %v11098_v55 = vpop.eup %11097  ;;  %v1072_v14 = vadd.f32 %v1040_v61, %v876_v32 }
 0x21c   : > { %v12363_v52 = vmul.f32 %v11098_v55, %v1110_v63  ;;  %v1004_v6 = vpop.permute.xlu1 %1003  ;;  %v1474_v55 = vld [vmem:[#allocation2 + $0x7] sm:$0xff] }
 0x21d   : > { %v1111_v45 = vadd.f32 %v12094_v12, %v1072_v14  ;;  %v1041_v49 = vmul.f32 %v11619_v51, %v1004_v6  ;;  %v7231_v6 = vld [vmem:[%s14393_s3 + $0x310] sm:$0xff] }
 0x21e   : > { %14462 = vst [vmem:[#allocation26_spill] sm:$0xff] %v12363_v52  ;;  %v11100_v37 = vpop.eup %11099  ;;  %1471 = vst [vmem:[#allocation2 + $0x1f0] sm:$0xff] %v12363_v52 }
 0x21f   : > { %v12368_v42 = vmul.f32 %v11100_v37, %v1109_v58  ;;  %v1143_v62 = vsub.f32 0.0, %v1111_v45  ;;  %v1073_v2 = vadd.f32 %v1041_v49, %v877_v38  ;;  %v1475_v38 = vld [vmem:[#allocation2 + $0xf] sm:$0xff]  ;;  %v7233_v37 = vld [vmem:[%s14393_s3 + $0x320] sm:$0xff] }
 0x221   : > { %14463 = vst [vmem:[#allocation27_spill] sm:$0xff] %v12368_v42  ;;  %1470 = vst [vmem:[#allocation2 + $0x1e8] sm:$0xff] %v12368_v42  ;;  %v1205_v8 = vmul.f32 1.442695, %v1143_v62  ;;  %v1112_v50 = vadd.f32 %v12094_v12, %v1073_v2  ;;  %v7234_v62 = vld [vmem:[%s14393_s3 + $0x328] sm:$0xff] }
 0x222   : > { %v11370_v2 = vld [vmem:[#allocation2 + $0x27] sm:$0xff] }
 0x223   : > { %11101 = vpow2.f32 %v1205_v8  ;;  %v1144_v61 = vsub.f32 0.0, %v1112_v50  ;;  %v9868_v8 = vpack.c.bf16 %v7234_v62, %v7233_v37  ;;  %v7242_v37 = vld [vmem:[%s14393_s3 + $0x368] sm:$0xff] }
 0x225   : > { %v1207_v63 = vmul.f32 1.442695, %v1144_v61  ;;  %v7236_v61 = vld [vmem:[%s14393_s3 + $0x338] sm:$0xff] }
 0x227   : > { %11103 = vpow2.f32 %v1207_v63  ;;  %v11371_v63 = vld [vmem:[#allocation2 + $0x2f] sm:$0xff] }
 0x228   : > { %v12372_v14 = vld [vmem:[#allocation2 + $0x1e7] sm:$0xff]  ;;  %v12374_v46 = vld [vmem:[#allocation2 + $0x1ef] sm:$0xff] }
 0x229   : > { %8430 = vmatprep.mubr.f32.mxu0 %v12372_v14 }
 0x22a   : > { %8431 = vmatmul.mubr.f32.gmra.mrb[28].mxu0 %v12374_v46 }
 0x22d   : > { %v11102_v51 = vpop.eup %11101 }
 0x22e   : > { %v1239_v58 = vadd.f32 1.0, %v11102_v51  ;;  %v12409_v51 = vld [vmem:[#allocation2 + $0x47] sm:$0xff] }
 0x230   : > { %11105 = vrcp.f32 %v1239_v58  ;;  %v7237_v58 = vld [vmem:[%s14393_s3 + $0x340] sm:$0xff] }
 0x231   : > { %v11104_v7 = vpop.eup %11103 }
 0x232   : > { %v1240_v33 = vadd.f32 1.0, %v11104_v7  ;;  %v7238_v7 = vld [vmem:[%s14393_s3 + $0x348] sm:$0xff] }
 0x234   : > { %11107 = vrcp.f32 %v1240_v33  ;;  %v11373_v33 = vld [vmem:[#allocation2 + $0x4f] sm:$0xff] }
 0x23a   : > { %v11106_v10 = vpop.eup %11105 }
 0x23b   : > { %v12378_v12 = vmul.f32 %v11106_v10, %v1111_v45  ;;  %v7232_v45 = vld [vmem:[%s14393_s3 + $0x318] sm:$0xff]  ;;  %v11374_v10 = vld [vmem:[#allocation2 + $0x67] sm:$0xff] }
 0x23c   : > { %v9864_v49 = vpack.c.bf16 %v7232_v45, %v7231_v6  ;;  %v7240_v6 = vld [vmem:[%s14393_s3 + $0x358] sm:$0xff]  ;;  %v11375_v45 = vld [vmem:[#allocation2 + $0x6f] sm:$0xff] }
 0x23d   : > { %14464 = vst [vmem:[#allocation28_spill] sm:$0xff] %v12378_v12  ;;  %1472 = vst [vmem:[#allocation2 + $0x208] sm:$0xff] %v12378_v12 }
 0x23e   : > { %v11108_v60 = vpop.eup %11107 }
 0x23f   : > { %v12381_v54 = vmul.f32 %v11108_v60, %v1112_v50  ;;  %v7235_v50 = vld [vmem:[%s14393_s3 + $0x330] sm:$0xff]  ;;  %v9876_v60 = vpack.c.bf16 %v7238_v7, %v7237_v58  ;;  %v7253_v7 = vld [vmem:[%s14393_s3 + $0xc0] sm:$0xff] }
 0x241   : > { %14465 = vst [vmem:[#allocation29_spill] sm:$0xff] %v12381_v54  ;;  %1473 = vst [vmem:[#allocation2 + $0x210] sm:$0xff] %v12381_v54 }
 0x244   : > { %v12384_v32 = vld [vmem:[#allocation2 + $0x207] sm:$0xff] }
 0x245   : > { %8433 = vmatprep.mubr.f32.mxu0 %v12384_v32 }
 0x248   : > { %v12387_v36 = vld [vmem:[#allocation2 + $0x20f] sm:$0xff] }
 0x249   : > { %8434 = vmatmul.mubr.f32.gmra.mrb[30].mxu0 %v12387_v36 }
 0x24a   : > { %8468 = vmatprep.mubr.f32.mxu0 %v1474_v55  ;;  %v7239_v55 = vld [vmem:[%s14393_s3 + $0x350] sm:$0xff] }
 0x24d   : > { %8469 = vmatmul.mubr.f32.vlgmr.msra.gmra.mrb[0].mxu0 %v1475_v38  ;;  %v9880_v38 = vpack.c.bf16 %v7240_v6, %v7239_v55  ;;  %v7255_v6 = vld [vmem:[%s14393_s3 + $0xd0] sm:$0xff] }
 0x24e   : > { %9863 = vmatpush3.bf16.msra.mxu0 %v12289_v16  ;;  %8471 = vmatprep.mubr.f32.mxu0 %v11370_v2  ;;  %v9872_v16 = vpack.c.bf16 %v7236_v61, %v7235_v50  ;;  %v7244_v2 = vld [vmem:[%s14393_s3 + $0x378] sm:$0xff]  ;;  %v7250_v50 = vld [vmem:[%s14393_s3 + $0xa8] sm:$0xff] }
 0x24f   : > { %9865 = vmatprep.subr.bf16.mxu0 %v9864_v49 }
 0x251   : > { %8472 = vmatmul.mubr.f32.gmra.mrb[2].mxu0 %v11371_v63  ;;  %v7251_v63 = vld [vmem:[%s14393_s3 + $0xb0] sm:$0xff] }
 0x252   : > { %8474 = vmatprep.mubr.f32.mxu0 %v12409_v51  ;;  %9867 = vmatpush3.bf16.msra.mxu0 %v9864_v49  ;;  %v7241_v49 = vld [vmem:[%s14393_s3 + $0x360] sm:$0xff] }
 0x253   : > { %9869 = vmatprep.subr.bf16.mxu0 %v9868_v8  ;;  %v9884_v62 = vpack.c.bf16 %v7242_v37, %v7241_v49  ;;  %v11380_v49 = vld [vmem:[#allocation2 + $0xc7] sm:$0xff] }
 0x255   : > { %8475 = vmatmul.mubr.f32.gmra.mrb[4].mxu0 %v11373_v33 }
 0x256   : > { %8477 = vmatprep.mubr.f32.mxu0 %v11374_v10  ;;  %9871 = vmatpush3.bf16.msra.mxu0 %v9868_v8  ;;  %v7246_v8 = vld [vmem:[%s14393_s3 + $0x88] sm:$0xff] }
 0x257   : > { %9873 = vmatprep.subr.bf16.mxu0 %v9872_v16 }
 0x259   : > { %8478 = vmatmul.mubr.f32.gmra.mrb[6].mxu0 %v11375_v45 }
 0x25a   : > { %8480 = vmatprep.mubr.f32.mxu0 %v12027_v3  ;;  %9875 = vmatpush3.bf16.msra.mxu0 %v9872_v16  ;;  %v7243_v3 = vld [vmem:[%s14393_s3 + $0x370] sm:$0xff]  ;;  %v11376_v16 = vld [vmem:[#allocation2 + $0x87] sm:$0xff] }
 0x25b   : > { %9877 = vmatprep.subr.bf16.mxu0 %v9876_v60 }
 0x25d   : > { %8481 = vmatmul.mubr.f32.gmra.mrb[8].mxu0 %v12039_v13  ;;  %v9888_v13 = vpack.c.bf16 %v7244_v2, %v7243_v3  ;;  %v7258_v3 = vld [vmem:[%s14393_s3 + $0xe8] sm:$0xff] }
 0x25e   : > { %8483 = vmatprep.mubr.f32.mxu0 %v12045_v19  ;;  %9879 = vmatpush3.bf16.msra.mxu0 %v9876_v60  ;;  %v7245_v19 = vld [vmem:[%s14393_s3 + $0x80] sm:$0xff]  ;;  %v11381_v2 = vld [vmem:[#allocation2 + $0xcf] sm:$0xff] }
 0x25f   : > { %9881 = vmatprep.subr.bf16.mxu0 %v9880_v38  ;;  %v11378_v60 = vld [vmem:[#allocation2 + $0xa7] sm:$0xff] }
 0x261   : > { %8484 = vmatmul.mubr.f32.gmra.mrb[10].mxu0 %v12050_v35  ;;  %v9892_v35 = vpack.c.bf16 %v7246_v8, %v7245_v19  ;;  %v7259_v8 = vld [vmem:[%s14393_s3 + $0xf0] sm:$0xff] }
 0x262   : > { %8486 = vmatprep.mubr.f32.mxu0 %v12058_v30  ;;  %9883 = vmatpush3.bf16.msra.mxu0 %v9880_v38  ;;  %v7247_v30 = vld [vmem:[%s14393_s3 + $0x90] sm:$0xff] }
 0x263   : > { %9885 = vmatprep.subr.bf16.mxu0 %v9884_v62  ;;  %v11379_v38 = vld [vmem:[#allocation2 + $0xaf] sm:$0xff] }
 0x265   : > { %8487 = vmatmul.mubr.f32.gmra.mrb[12].mxu0 %v12062_v31  ;;  %v7248_v31 = vld [vmem:[%s14393_s3 + $0x98] sm:$0xff] }
 0x266   : > { %8489 = vmatprep.mubr.f32.mxu0 %v12076_v20  ;;  %9887 = vmatpush3.bf16.msra.mxu0 %v9884_v62  ;;  %v9896_v20 = vpack.c.bf16 %v7248_v31, %v7247_v30  ;;  %v7257_v62 = vld [vmem:[%s14393_s3 + $0xe0] sm:$0xff]  ;;  %v11383_v30 = vld [vmem:[#allocation2 + $0xef] sm:$0xff] }
 0x267   : > { %9889 = vmatprep.subr.bf16.mxu0 %v9888_v13  ;;  %v9916_v19 = vpack.c.bf16 %v7258_v3, %v7257_v62  ;;  %v12609_v62 = vld [vmem:[#allocation2 + $0xc8] sm:$0xff] }
 0x269   : > { %8490 = vmatmul.mubr.f32.gmra.mrb[14].mxu0 %v12078_v29  ;;  %v7249_v29 = vld [vmem:[%s14393_s3 + $0xa0] sm:$0xff] }
 0x26a   : > { %8492 = vmatprep.mubr.f32.mxu0 %v12118_v17  ;;  %9891 = vmatpush3.bf16.msra.mxu0 %v9888_v13  ;;  %v9900_v61 = vpack.c.bf16 %v7250_v50, %v7249_v29  ;;  %v11382_v13 = vld [vmem:[#allocation2 + $0xe7] sm:$0xff] }
 0x26b   : > { %9893 = vmatprep.subr.bf16.mxu0 %v9892_v35  ;;  %v7262_v29 = vld [vmem:[%s14393_s3 + $0x208] sm:$0xff] }
 0x26d   : > { %8493 = vmatmul.mubr.f32.gmra.mrb[16].mxu0 %v12121_v48 }
 0x26e   : > { %8495 = vmatprep.mubr.f32.mxu0 %v12155_v23 }
 0x271   : > { %8496 = vmatmul.mubr.f32.gmra.mrb[18].mxu0 %v12158_v44 }
 0x272   : > { %8498 = vmatprep.mubr.f32.mxu0 %v12201_v26 }
 0x275   : > { %8499 = vmatmul.mubr.f32.gmra.mrb[20].mxu0 %v12204_v41 }
 0x276   : > { %8501 = vmatprep.mubr.f32.mxu0 %v12269_v15 }
 0x279   : > { %8502 = vmatmul.mubr.f32.gmra.mrb[22].mxu0 %v12272_v39 }
 0x27a   : > { %8504 = vmatprep.mubr.f32.mxu0 %v12305_v25 }
 0x27d   : > { %8505 = vmatmul.mubr.f32.gmra.mrb[24].mxu0 %v12307_v56 }
 0x27e   : > { %8507 = vmatprep.mubr.f32.mxu0 %v12328_v53 }
 0x281   : > { %8508 = vmatmul.mubr.f32.gmra.mrb[26].mxu0 %v12330_v4 }
 0x282   : > { %8510 = vmatprep.mubr.f32.mxu0 %v12350_v34 }
 0x285   : > { %8511 = vmatmul.mubr.f32.gmra.mrb[28].mxu0 %v12352_v18 }
 0x286   : > { %8513 = vmatprep.mubr.f32.mxu0 %v12372_v14 }
 0x289   : > { %8514 = vmatmul.mubr.f32.gmra.mrb[30].mxu0 %v12374_v46 }
 0x28a   : > { %8548 = vmatprep.mubr.f32.mxu0 %v12409_v51  ;;  %v7252_v51 = vld [vmem:[%s14393_s3 + $0xb8] sm:$0xff] }
 0x28b   : > { %v9904_v58 = vpack.c.bf16 %v7252_v51, %v7251_v63  ;;  %v12576_v51 = vld [vmem:[#allocation2 + $0x70] sm:$0xff] }
 0x28d   : > { %8549 = vmatmul.mubr.f32.vlgmr.msra.gmra.mrb[0].mxu0 %v11373_v33  ;;  %v7254_v33 = vld [vmem:[%s14393_s3 + $0xc8] sm:$0xff] }
 0x28e   : > { %9895 = vmatpush3.bf16.msra.mxu0 %v9892_v35  ;;  %8551 = vmatprep.mubr.f32.mxu0 %v11374_v10  ;;  %v11377_v10 = vld [vmem:[#allocation2 + $0x8f] sm:$0xff]  ;;  %v9908_v55 = vpack.c.bf16 %v7254_v33, %v7253_v7  ;;  %v7260_v35 = vld [vmem:[%s14393_s3 + $0xf8] sm:$0xff] }
 0x28f   : > { %9897 = vmatprep.subr.bf16.mxu0 %v9896_v20  ;;  %v9920_v31 = vpack.c.bf16 %v7260_v35, %v7259_v8  ;;  %v12585_v7 = vld [vmem:[#allocation2 + $0x88] sm:$0xff] }
 0x290   : > { %v12621_v8 = vld [vmem:[#allocation2 + $0xe8] sm:$0xff] }
 0x291   : > { %8552 = vmatmul.mubr.f32.gmra.mrb[2].mxu0 %v11375_v45  ;;  %v7256_v45 = vld [vmem:[%s14393_s3 + $0xd8] sm:$0xff] }
 0x292   : > { %8554 = vmatprep.mubr.f32.mxu0 %v11376_v16  ;;  %9899 = vmatpush3.bf16.msra.mxu0 %v9896_v20  ;;  %v9912_v37 = vpack.c.bf16 %v7256_v45, %v7255_v6  ;;  %v7261_v20 = vld [vmem:[%s14393_s3 + $0x200] sm:$0xff]  ;;  %v7271_v16 = vld [vmem:[%s14393_s3 + $0x250] sm:$0xff]  ;;  %v12597_v6 = vld [vmem:[#allocation2 + $0xa8] sm:$0xff] }
 0x293   : > { %9901 = vmatprep.subr.bf16.mxu0 %v9900_v61  ;;  %v9924_v50 = vpack.c.bf16 %v7262_v29, %v7261_v20  ;;  %v12630_v20 = vld [vmem:[#allocation2 + $0x110] sm:$0xff]  ;;  %v12633_v29 = vld [vmem:[#allocation2 + $0x128] sm:$0xff] }
 0x295   : > { %8555 = vmatmul.mubr.f32.gmra.mrb[4].mxu0 %v11377_v10  ;;  %v12588_v10 = vld [vmem:[#allocation2 + $0x90] sm:$0xff] }
 0x296   : > { %8557 = vmatprep.mubr.f32.mxu0 %v11378_v60  ;;  %9903 = vmatpush3.bf16.msra.mxu0 %v9900_v61  ;;  %v12573_v61 = vld [vmem:[#allocation2 + $0x68] sm:$0xff]  ;;  %v7273_v60 = vld [vmem:[%s14393_s3 + $0x260] sm:$0xff] }
 0x297   : > { %9905 = vmatprep.subr.bf16.mxu0 %v9904_v58 }
 0x299   : > { %8558 = vmatmul.mubr.f32.gmra.mrb[6].mxu0 %v11379_v38  ;;  %v12600_v38 = vld [vmem:[#allocation2 + $0xb0] sm:$0xff] }
 0x29a   : > { %8560 = vmatprep.mubr.f32.mxu0 %v11380_v49  ;;  %9907 = vmatpush3.bf16.msra.mxu0 %v9904_v58  ;;  %v7272_v58 = vld [vmem:[%s14393_s3 + $0x258] sm:$0xff]  ;;  %v7275_v49 = vld [vmem:[%s14393_s3 + $0x270] sm:$0xff] }
 0x29b   : > { %9909 = vmatprep.subr.bf16.mxu0 %v9908_v55  ;;  %v9944_v33 = vpack.c.bf16 %v7272_v58, %v7271_v16  ;;  %v7291_v16 = vld [vmem:[%s14393_s3 + $0x3f0] sm:$0xff]  ;;  %v7292_v58 = vld [vmem:[%s14393_s3 + $0x3f8] sm:$0xff] }
 0x29d   : > { %8561 = vmatmul.mubr.f32.gmra.mrb[8].mxu0 %v11381_v2  ;;  %v12612_v2 = vld [vmem:[#allocation2 + $0xd0] sm:$0xff] }
 0x29e   : > { %8563 = vmatprep.mubr.f32.mxu0 %v11382_v13  ;;  %9911 = vmatpush3.bf16.msra.mxu0 %v9908_v55  ;;  %v7274_v55 = vld [vmem:[%s14393_s3 + $0x268] sm:$0xff]  ;;  %v7277_v13 = vld [vmem:[%s14393_s3 + $0x380] sm:$0xff] }
 0x29f   : > { %9913 = vmatprep.subr.bf16.mxu0 %v9912_v37  ;;  %v9948_v45 = vpack.c.bf16 %v7274_v55, %v7273_v60  ;;  %v7293_v60 = vld [vmem:[%s14393_s3 + $0x100] sm:$0xff]  ;;  %v7294_v55 = vld [vmem:[%s14393_s3 + $0x108] sm:$0xff] }
 0x2a1   : > { %8564 = vmatmul.mubr.f32.gmra.mrb[10].mxu0 %v11383_v30  ;;  %v12624_v30 = vld [vmem:[#allocation2 + $0xf0] sm:$0xff] }
 0x2a2   : > { %8566 = vmatprep.mubr.f32.mxu0 %v12118_v17  ;;  %9915 = vmatpush3.bf16.msra.mxu0 %v9912_v37  ;;  %v1508_v17 = vld [vmem:[#allocation2 + $0x227] sm:$0xff]  ;;  %v7276_v37 = vld [vmem:[%s14393_s3 + $0x278] sm:$0xff] }
 0x2a3   : > { %9917 = vmatprep.subr.bf16.mxu0 %v9916_v19  ;;  %v9952_v3 = vpack.c.bf16 %v7276_v37, %v7275_v49  ;;  %v12719_v49 = vld [vmem:[#allocation2 + $0x148] sm:$0xff] }
 0x2a4   : > { %14466 = vst [vmem:[#allocation30_spill] sm:$0xff] %v12719_v49  ;;  %v12723_v37 = vld [vmem:[#allocation2 + $0x168] sm:$0xff] }
 0x2a5   : > { %8567 = vmatmul.mubr.f32.gmra.mrb[12].mxu0 %v12121_v48  ;;  %v1509_v48 = vld [vmem:[#allocation2 + $0x22f] sm:$0xff]  ;;  %14467 = vst [vmem:[#allocation31_spill] sm:$0xff] %v12723_v37 }
 0x2a6   : > { %8569 = vmatprep.mubr.f32.mxu0 %v12155_v23  ;;  %9919 = vmatpush3.bf16.msra.mxu0 %v9916_v19  ;;  %v7263_v23 = vld [vmem:[%s14393_s3 + $0x210] sm:$0xff]  ;;  %v7278_v19 = vld [vmem:[%s14393_s3 + $0x388] sm:$0xff] }
 0x2a7   : > { %9921 = vmatprep.subr.bf16.mxu0 %v9920_v31  ;;  %v9956_v35 = vpack.c.bf16 %v7278_v19, %v7277_v13  ;;  %v7297_v19 = vld [vmem:[%s14393_s3 + $0x120] sm:$0xff] }
 0x2a9   : > { %8570 = vmatmul.mubr.f32.gmra.mrb[14].mxu0 %v12158_v44  ;;  %v7264_v44 = vld [vmem:[%s14393_s3 + $0x218] sm:$0xff] }
 0x2aa   : > { %8572 = vmatprep.mubr.f32.mxu0 %v12201_v26  ;;  %9923 = vmatpush3.bf16.msra.mxu0 %v9920_v31  ;;  %v12539_v26 = vld [vmem:[#allocation2] sm:$0xff]  ;;  %v12627_v31 = vld [vmem:[#allocation2 + $0x108] sm:$0xff] }
 0x2ab   : > { %9925 = vmatprep.subr.bf16.mxu0 %v9924_v50 }
 0x2ad   : > { %8573 = vmatmul.mubr.f32.gmra.mrb[16].mxu0 %v12204_v41  ;;  %v9928_v41 = vpack.c.bf16 %v7264_v44, %v7263_v23  ;;  %v7282_v23 = vld [vmem:[%s14393_s3 + $0x3a8] sm:$0xff] }
 0x2ae   : > { %8575 = vmatprep.mubr.f32.mxu0 %v12269_v15  ;;  %v7265_v15 = vld [vmem:[%s14393_s3 + $0x220] sm:$0xff] }
 0x2b1   : > { %8576 = vmatmul.mubr.f32.gmra.mrb[18].mxu0 %v12272_v39  ;;  %v7266_v39 = vld [vmem:[%s14393_s3 + $0x228] sm:$0xff] }
 0x2b2   : > { %8578 = vmatprep.mubr.f32.mxu0 %v12305_v25  ;;  %v12549_v25 = vld [vmem:[#allocation2 + $0x28] sm:$0xff] }
 0x2b5   : > { %8579 = vmatmul.mubr.f32.gmra.mrb[20].mxu0 %v12307_v56  ;;  %v9932_v56 = vpack.c.bf16 %v7266_v39, %v7265_v15  ;;  %v7284_v15 = vld [vmem:[%s14393_s3 + $0x3b8] sm:$0xff] }
 0x2b6   : > { %8581 = vmatprep.mubr.f32.mxu0 %v12328_v53  ;;  %v12552_v53 = vld [vmem:[#allocation2 + $0x30] sm:$0xff] }
 0x2b9   : > { %8582 = vmatmul.mubr.f32.gmra.mrb[22].mxu0 %v12330_v4  ;;  %v7267_v4 = vld [vmem:[%s14393_s3 + $0x230] sm:$0xff] }
 0x2ba   : > { %8584 = vmatprep.mubr.f32.mxu0 %v12350_v34  ;;  %v7268_v34 = vld [vmem:[%s14393_s3 + $0x238] sm:$0xff] }
 0x2bd   : > { %8585 = vmatmul.mubr.f32.gmra.mrb[24].mxu0 %v12352_v18  ;;  %v12561_v18 = vld [vmem:[#allocation2 + $0x48] sm:$0xff] }
 0x2be   : > { %8587 = vmatprep.mubr.f32.mxu0 %v12372_v14  ;;  %v9936_v14 = vpack.c.bf16 %v7268_v34, %v7267_v4  ;;  %v7287_v4 = vld [vmem:[%s14393_s3 + $0x3d0] sm:$0xff]  ;;  %v7288_v34 = vld [vmem:[%s14393_s3 + $0x3d8] sm:$0xff] }
 0x2c1   : > { %8588 = vmatmul.mubr.f32.gmra.mrb[26].mxu0 %v12374_v46  ;;  %v12564_v46 = vld [vmem:[#allocation2 + $0x50] sm:$0xff] }
 0x2c2   : > { %8590 = vmatprep.mubr.f32.mxu0 %v12384_v32  ;;  %v7269_v32 = vld [vmem:[%s14393_s3 + $0x240] sm:$0xff] }
 0x2c5   : > { %8591 = vmatmul.mubr.f32.gmra.mrb[28].mxu0 %v12387_v36  ;;  %v7270_v36 = vld [vmem:[%s14393_s3 + $0x248] sm:$0xff] }
 0x2c6   : > { %8593 = vmatprep.mubr.f32.mxu0 %v1508_v17  ;;  %v9940_v63 = vpack.c.bf16 %v7270_v36, %v7269_v32  ;;  %v12640_v17 = vld [vmem:[#allocation2 + $0x150] sm:$0xff]  ;;  %v7289_v32 = vld [vmem:[%s14393_s3 + $0x3e0] sm:$0xff]  ;;  %v7290_v36 = vld [vmem:[%s14393_s3 + $0x3e8] sm:$0xff] }
 0x2c9   : > { %8594 = vmatmul.mubr.f32.gmra.mrb[30].mxu0 %v1509_v48  ;;  %v7281_v48 = vld [vmem:[%s14393_s3 + $0x3a0] sm:$0xff] }
 0x2ca   : > { %8628 = vmatprep.mubr.f32.mxu0 %v12539_v26  ;;  %v9964_v44 = vpack.c.bf16 %v7282_v23, %v7281_v48  ;;  %v7304_v48 = vld [vmem:[%s14393_s3 + $0x158] sm:$0xff]  ;;  %v7306_v23 = vld [vmem:[%s14393_s3 + $0x168] sm:$0xff] }
 0x2cd   : > { %8629 = vmatmul.mubr.f32.vlgmr.msra.gmra.mrb[0].mxu0 %v12539_v26 }
 0x2ce   : > { %9927 = vmatpush3.bf16.msra.mxu0 %v9924_v50  ;;  %8631 = vmatprep.mubr.f32.mxu0 %v12549_v25  ;;  %v12636_v50 = vld [vmem:[#allocation2 + $0x130] sm:$0xff] }
 0x2cf   : > { %9929 = vmatprep.subr.bf16.mxu0 %v9928_v41 }
 0x2d1   : > { %8632 = vmatmul.mubr.f32.gmra.mrb[2].mxu0 %v12552_v53 }
 0x2d2   : > { %8634 = vmatprep.mubr.f32.mxu0 %v12561_v18  ;;  %9931 = vmatpush3.bf16.msra.mxu0 %v9928_v41  ;;  %v7283_v41 = vld [vmem:[%s14393_s3 + $0x3b0] sm:$0xff] }
 0x2d3   : > { %9933 = vmatprep.subr.bf16.mxu0 %v9932_v56  ;;  %v9968_v39 = vpack.c.bf16 %v7284_v15, %v7283_v41  ;;  %v7310_v41 = vld [vmem:[%s14393_s3 + $0x288] sm:$0xff]  ;;  %v3126_v15 = vld [vmem:[#allocation2 + $0x11] sm:$0xff] }
 0x2d5   : > { %8635 = vmatmul.mubr.f32.gmra.mrb[4].mxu0 %v12564_v46 }
 0x2d6   : > { %8637 = vmatprep.mubr.f32.mxu0 %v12573_v61  ;;  %9935 = vmatpush3.bf16.msra.mxu0 %v9932_v56  ;;  %v7286_v56 = vld [vmem:[%s14393_s3 + $0x3c8] sm:$0xff] }
 0x2d7   : > { %9937 = vmatprep.subr.bf16.mxu0 %v9936_v14 }
 0x2d9   : > { %8638 = vmatmul.mubr.f32.gmra.mrb[6].mxu0 %v12576_v51 }
 0x2da   : > { %8640 = vmatprep.mubr.f32.mxu0 %v12585_v7  ;;  %9939 = vmatpush3.bf16.msra.mxu0 %v9936_v14  ;;  %v9976_v14 = vpack.c.bf16 %v7288_v34, %v7287_v4  ;;  %v7315_v34 = vld [vmem:[%s14393_s3 + $0x2b0] sm:$0xff] }
 0x2db   : > { %9941 = vmatprep.subr.bf16.mxu0 %v9940_v63 }
 0x2dd   : > { %8641 = vmatmul.mubr.f32.gmra.mrb[8].mxu0 %v12588_v10 }
 0x2de   : > { %8643 = vmatprep.mubr.f32.mxu0 %v12597_v6  ;;  %9943 = vmatpush3.bf16.msra.mxu0 %v9940_v63  ;;  %v9980_v63 = vpack.c.bf16 %v7290_v36, %v7289_v32  ;;  %v12847_v32 = vld [vmem:[#allocation2 + $0x49] sm:$0xff] }
 0x2df   : > { %9945 = vmatprep.subr.bf16.mxu0 %v9944_v33 }
 0x2e1   : > { %8644 = vmatmul.mubr.f32.gmra.mrb[10].mxu0 %v12600_v38 }
 0x2e2   : > { %8646 = vmatprep.mubr.f32.mxu0 %v12609_v62  ;;  %9947 = vmatpush3.bf16.msra.mxu0 %v9944_v33  ;;  %v9984_v33 = vpack.c.bf16 %v7292_v58, %v7291_v16  ;;  %v7317_v16 = vld [vmem:[%s14393_s3 + $0x2c0] sm:$0xff]  ;;  %v7318_v58 = vld [vmem:[%s14393_s3 + $0x2c8] sm:$0xff] }
 0x2e3   : > { %9949 = vmatprep.subr.bf16.mxu0 %v9948_v45 }
 0x2e5   : > { %8647 = vmatmul.mubr.f32.gmra.mrb[12].mxu0 %v12612_v2 }
 0x2e6   : > { %8649 = vmatprep.mubr.f32.mxu0 %v12621_v8  ;;  %9951 = vmatpush3.bf16.msra.mxu0 %v9948_v45  ;;  %v9988_v45 = vpack.c.bf16 %v7294_v55, %v7293_v60  ;;  %v10036_v60 = vpack.c.bf16 %v7318_v58, %v7317_v16  ;;  %v12862_v55 = vld [vmem:[#allocation2 + $0x71] sm:$0xff] }
 0x2e7   : > { %9953 = vmatprep.subr.bf16.mxu0 %v9952_v3  ;;  %v7327_v16 = vld [vmem:[%s14393_s3 + $0x410] sm:$0xff]  ;;  %v7328_v58 = vld [vmem:[%s14393_s3 + $0x418] sm:$0xff] }
 0x2e9   : > { %8650 = vmatmul.mubr.f32.gmra.mrb[14].mxu0 %v12624_v30 }
 0x2ea   : > { %8652 = vmatprep.mubr.f32.mxu0 %v12627_v31  ;;  %9955 = vmatpush3.bf16.msra.mxu0 %v9952_v3  ;;  %v12726_v3 = vld [vmem:[#allocation2 + $0x170] sm:$0xff] }
 0x2eb   : > { %9957 = vmatprep.subr.bf16.mxu0 %v9956_v35  ;;  %14468 = vst [vmem:[#allocation32_spill] sm:$0xff] %v12726_v3 }
 0x2ed   : > { %8653 = vmatmul.mubr.f32.gmra.mrb[16].mxu0 %v12630_v20 }
 0x2ee   : > { %8655 = vmatprep.mubr.f32.mxu0 %v12633_v29 }
 0x2f1   : > { %8656 = vmatmul.mubr.f32.gmra.mrb[18].mxu0 %v12636_v50 }
 0x2f2   : > { %8658 = vmatprep.mubr.f32.mxu0 %v12193_v27  ;;  %v7279_v27 = vld [vmem:[%s14393_s3 + $0x390] sm:$0xff] }
 0x2f5   : > { %8659 = vmatmul.mubr.f32.gmra.mrb[20].mxu0 %v12640_v17 }
 0x2f6   : > { %8661 = vmatprep.mubr.f32.mxu0 %v12240_v9 }
 0x2f9   : > { %8662 = vmatmul.mubr.f32.gmra.mrb[22].mxu0 %v12229_v1  ;;  %v7280_v1 = vld [vmem:[%s14393_s3 + $0x398] sm:$0xff] }
 0x2fa   : > { %8664 = vmatprep.mubr.f32.mxu0 %v12299_v28  ;;  %v9960_v9 = vpack.c.bf16 %v7280_v1, %v7279_v27  ;;  %v7300_v1 = vld [vmem:[%s14393_s3 + $0x138] sm:$0xff] }
 0x2fd   : > { %8665 = vmatmul.mubr.f32.gmra.mrb[24].mxu0 %v12295_v47 }
 0x2fe   : > { %8667 = vmatprep.mubr.f32.mxu0 %v12323_v5 }
 0x301   : > { %8668 = vmatmul.mubr.f32.gmra.mrb[26].mxu0 %v12320_v40 }
 0x302   : > { %8670 = vmatprep.mubr.f32.mxu0 %v12347_v24 }
 0x305   : > { %8671 = vmatmul.mubr.f32.gmra.mrb[28].mxu0 %v12344_v59 }
 0x306   : > { %8673 = vmatprep.mubr.f32.mxu0 %v12368_v42 }
 0x309   : > { %8674 = vmatmul.mubr.f32.gmra.mrb[30].mxu0 %v12363_v52 }
 0x30a   : > { %8708 = vmatprep.mubr.f32.mxu0 %v12549_v25  ;;  %v7285_v25 = vld [vmem:[%s14393_s3 + $0x3c0] sm:$0xff] }
 0x30d   : > { %8709 = vmatmul.mubr.f32.vlgmr.msra.gmra.mrb[0].mxu0 %v12552_v53  ;;  %v9972_v53 = vpack.c.bf16 %v7286_v56, %v7285_v25  ;;  %v7313_v25 = vld [vmem:[%s14393_s3 + $0x2a0] sm:$0xff]  ;;  %v7314_v56 = vld [vmem:[%s14393_s3 + $0x2a8] sm:$0xff] }
 0x30e   : > { %9959 = vmatpush3.bf16.msra.mxu0 %v9956_v35  ;;  %8711 = vmatprep.mubr.f32.mxu0 %v12561_v18  ;;  %v7298_v35 = vld [vmem:[%s14393_s3 + $0x128] sm:$0xff]  ;;  %v10028_v4 = vpack.c.bf16 %v7314_v56, %v7313_v25  ;;  %v12946_v56 = vld [vmem:[#allocation2 + $0x1b1] sm:$0xff] }
 0x30f   : > { %9961 = vmatprep.subr.bf16.mxu0 %v9960_v9  ;;  %v9996_v27 = vpack.c.bf16 %v7298_v35, %v7297_v19  ;;  %v12874_v19 = vld [vmem:[#allocation2 + $0x91] sm:$0xff]  ;;  %v7321_v35 = vld [vmem:[%s14393_s3 + $0x2e0] sm:$0xff]  ;;  %v12943_v25 = vld [vmem:[#allocation2 + $0x1a9] sm:$0xff] }
 0x311   : > { %8712 = vmatmul.mubr.f32.gmra.mrb[2].mxu0 %v12564_v46 }
 0x312   : > { %8714 = vmatprep.mubr.f32.mxu0 %v12573_v61  ;;  %9963 = vmatpush3.bf16.msra.mxu0 %v9960_v9  ;;  %v7302_v9 = vld [vmem:[%s14393_s3 + $0x148] sm:$0xff] }
 0x313   : > { %9965 = vmatprep.subr.bf16.mxu0 %v9964_v44 }
 0x315   : > { %8715 = vmatmul.mubr.f32.gmra.mrb[4].mxu0 %v12576_v51 }
 0x316   : > { %8717 = vmatprep.mubr.f32.mxu0 %v12585_v7  ;;  %9967 = vmatpush3.bf16.msra.mxu0 %v9964_v44  ;;  %v7308_v44 = vld [vmem:[%s14393_s3 + $0x178] sm:$0xff] }
 0x317   : > { %9969 = vmatprep.subr.bf16.mxu0 %v9968_v39 }
 0x319   : > { %8718 = vmatmul.mubr.f32.gmra.mrb[6].mxu0 %v12588_v10 }
 0x31a   : > { %8720 = vmatprep.mubr.f32.mxu0 %v12597_v6  ;;  %9971 = vmatpush3.bf16.msra.mxu0 %v9968_v39 }
 0x31b   : > { %9973 = vmatprep.subr.bf16.mxu0 %v9972_v53 }
 0x31d   : > { %8721 = vmatmul.mubr.f32.gmra.mrb[8].mxu0 %v12600_v38 }
 0x31e   : > { %8723 = vmatprep.mubr.f32.mxu0 %v12609_v62  ;;  %9975 = vmatpush3.bf16.msra.mxu0 %v9972_v53  ;;  %v12835_v53 = vld [vmem:[#allocation2 + $0x29] sm:$0xff] }
 0x31f   : > { %9977 = vmatprep.subr.bf16.mxu0 %v9976_v14 }
 0x321   : > { %8724 = vmatmul.mubr.f32.gmra.mrb[10].mxu0 %v12612_v2 }
 0x322   : > { %8726 = vmatprep.mubr.f32.mxu0 %v12621_v8  ;;  %9979 = vmatpush3.bf16.msra.mxu0 %v9976_v14  ;;  %v7316_v14 = vld [vmem:[%s14393_s3 + $0x2b8] sm:$0xff] }
 0x323   : > { %9981 = vmatprep.subr.bf16.mxu0 %v9980_v63  ;;  %v10032_v36 = vpack.c.bf16 %v7316_v14, %v7315_v34  ;;  %v12952_v34 = vld [vmem:[#allocation2 + $0x1d1] sm:$0xff]  ;;  %v12955_v14 = vld [vmem:[#allocation2 + $0x1e9] sm:$0xff] }
 0x325   : > { %8727 = vmatmul.mubr.f32.gmra.mrb[12].mxu0 %v12624_v30 }
 0x326   : > { %8729 = vmatprep.mubr.f32.mxu0 %v12627_v31  ;;  %9983 = vmatpush3.bf16.msra.mxu0 %v9980_v63  ;;  %v12850_v63 = vld [vmem:[#allocation2 + $0x51] sm:$0xff] }
 0x327   : > { %9985 = vmatprep.subr.bf16.mxu0 %v9984_v33 }
 0x329   : > { %8730 = vmatmul.mubr.f32.gmra.mrb[14].mxu0 %v12630_v20 }
 0x32a   : > { %8732 = vmatprep.mubr.f32.mxu0 %v12633_v29  ;;  %9987 = vmatpush3.bf16.msra.mxu0 %v9984_v33  ;;  %v12859_v33 = vld [vmem:[#allocation2 + $0x69] sm:$0xff] }
 0x32b   : > { %9989 = vmatprep.subr.bf16.mxu0 %v9988_v45 }
 0x32d   : > { %8733 = vmatmul.mubr.f32.gmra.mrb[16].mxu0 %v12636_v50 }
 0x32e   : > { %8735 = vmatprep.mubr.f32.mxu0 %v12719_v49 }
 0x331   : > { %8736 = vmatmul.mubr.f32.gmra.mrb[18].mxu0 %v12640_v17 }
 0x332   : > { %8738 = vmatprep.mubr.f32.mxu0 %v12723_v37 }
 0x335   : > { %8739 = vmatmul.mubr.f32.gmra.mrb[20].mxu0 %v12726_v3 }
 0x336   : > { %8741 = vmatprep.mubr.f32.mxu0 %v12299_v28  ;;  %v7295_v28 = vld [vmem:[%s14393_s3 + $0x110] sm:$0xff] }
 0x339   : > { %8742 = vmatmul.mubr.f32.gmra.mrb[22].mxu0 %v12295_v47  ;;  %v7296_v47 = vld [vmem:[%s14393_s3 + $0x118] sm:$0xff] }
 0x33a   : > { %8744 = vmatprep.mubr.f32.mxu0 %v12323_v5  ;;  %v9992_v13 = vpack.c.bf16 %v7296_v47, %v7295_v28  ;;  %v7320_v28 = vld [vmem:[%s14393_s3 + $0x2d8] sm:$0xff]  ;;  %v12871_v47 = vld [vmem:[#allocation2 + $0x89] sm:$0xff] }
 0x33d   : > { %8745 = vmatmul.mubr.f32.gmra.mrb[24].mxu0 %v12320_v40 }
 0x33e   : > { %8747 = vmatprep.mubr.f32.mxu0 %v12347_v24 }
 0x341   : > { %8748 = vmatmul.mubr.f32.gmra.mrb[26].mxu0 %v12344_v59 }
 0x342   : > { %8750 = vmatprep.mubr.f32.mxu0 %v12368_v42 }
 0x345   : > { %8751 = vmatmul.mubr.f32.gmra.mrb[28].mxu0 %v12363_v52 }
 0x346   : > { %8753 = vmatprep.mubr.f32.mxu0 %v12378_v12 }
 0x349   : > { %8754 = vmatmul.mubr.f32.gmra.mrb[30].mxu0 %v12381_v54 }
 0x34a   : > { %8788 = vmatprep.mubr.f32.mxu0 %v12561_v18  ;;  %v7299_v18 = vld [vmem:[%s14393_s3 + $0x130] sm:$0xff] }
 0x34d   : > { %8789 = vmatmul.mubr.f32.vlgmr.msra.gmra.mrb[0].mxu0 %v12564_v46  ;;  %v10000_v46 = vpack.c.bf16 %v7300_v1, %v7299_v18  ;;  %v12883_v18 = vld [vmem:[#allocation2 + $0xa9] sm:$0xff] }
 0x34e   : > { %9991 = vmatpush3.bf16.msra.mxu0 %v9988_v45  ;;  %8791 = vmatprep.mubr.f32.mxu0 %v12573_v61  ;;  %v7301_v61 = vld [vmem:[%s14393_s3 + $0x140] sm:$0xff]  ;;  %v7319_v45 = vld [vmem:[%s14393_s3 + $0x2d0] sm:$0xff] }
 0x34f   : > { %9993 = vmatprep.subr.bf16.mxu0 %v9992_v13 }
 0x351   : > { %8792 = vmatmul.mubr.f32.gmra.mrb[2].mxu0 %v12576_v51  ;;  %v10004_v51 = vpack.c.bf16 %v7302_v9, %v7301_v61  ;;  %v7323_v61 = vld [vmem:[%s14393_s3 + $0x2f0] sm:$0xff]  ;;  %v7324_v9 = vld [vmem:[%s14393_s3 + $0x2f8] sm:$0xff] }
 0x352   : > { %8794 = vmatprep.mubr.f32.mxu0 %v12585_v7  ;;  %9995 = vmatpush3.bf16.msra.mxu0 %v9992_v13  ;;  %v7303_v7 = vld [vmem:[%s14393_s3 + $0x150] sm:$0xff]  ;;  %v10040_v13 = vpack.c.bf16 %v7320_v28, %v7319_v45  ;;  %v7329_v45 = vld [vmem:[%s14393_s3 + $0x420] sm:$0xff]  ;;  %v7330_v28 = vld [vmem:[%s14393_s3 + $0x428] sm:$0xff] }
 0x353   : > { %9997 = vmatprep.subr.bf16.mxu0 %v9996_v27 }
 0x355   : > { %8795 = vmatmul.mubr.f32.gmra.mrb[4].mxu0 %v12588_v10  ;;  %v10008_v10 = vpack.c.bf16 %v7304_v48, %v7303_v7  ;;  %v10048_v7 = vpack.c.bf16 %v7324_v9, %v7323_v61  ;;  %v12898_v48 = vld [vmem:[#allocation2 + $0xd1] sm:$0xff] }
 0x356   : > { %8797 = vmatprep.mubr.f32.mxu0 %v12597_v6  ;;  %9999 = vmatpush3.bf16.msra.mxu0 %v9996_v27  ;;  %v7305_v6 = vld [vmem:[%s14393_s3 + $0x160] sm:$0xff]  ;;  %v7322_v27 = vld [vmem:[%s14393_s3 + $0x2e8] sm:$0xff]  ;;  %v7335_v9 = vld [vmem:[%s14393_s3 + $0x450] sm:$0xff] }
 0x357   : > { %10001 = vmatprep.subr.bf16.mxu0 %v10000_v46  ;;  %v10044_v1 = vpack.c.bf16 %v7322_v27, %v7321_v35  ;;  %v7332_v35 = vld [vmem:[%s14393_s3 + $0x438] sm:$0xff]  ;;  %v7333_v27 = vld [vmem:[%s14393_s3 + $0x440] sm:$0xff] }
 0x359   : > { %8798 = vmatmul.mubr.f32.gmra.mrb[6].mxu0 %v12600_v38  ;;  %v10012_v38 = vpack.c.bf16 %v7306_v23, %v7305_v6  ;;  %v7326_v6 = vld [vmem:[%s14393_s3 + $0x408] sm:$0xff] }
 0x35a   : > { %8800 = vmatprep.mubr.f32.mxu0 %v12609_v62  ;;  %10003 = vmatpush3.bf16.msra.mxu0 %v10000_v46  ;;  %v7307_v62 = vld [vmem:[%s14393_s3 + $0x170] sm:$0xff] }
 0x35b   : > { %10005 = vmatprep.subr.bf16.mxu0 %v10004_v51  ;;  %v12886_v46 = vld [vmem:[#allocation2 + $0xb1] sm:$0xff]  ;;  %v12907_v23 = vld [vmem:[#allocation2 + $0xe9] sm:$0xff] }
 0x35d   : > { %8801 = vmatmul.mubr.f32.gmra.mrb[8].mxu0 %v12612_v2  ;;  %v10016_v2 = vpack.c.bf16 %v7308_v44, %v7307_v62  ;;  %v12910_v62 = vld [vmem:[#allocation2 + $0xf1] sm:$0xff]  ;;  %v12913_v44 = vld [vmem:[#allocation2 + $0x109] sm:$0xff] }
 0x35e   : > { %8803 = vmatprep.mubr.f32.mxu0 %v12621_v8  ;;  %10007 = vmatpush3.bf16.msra.mxu0 %v10004_v51  ;;  %v7309_v8 = vld [vmem:[%s14393_s3 + $0x280] sm:$0xff]  ;;  %v12895_v51 = vld [vmem:[#allocation2 + $0xc9] sm:$0xff] }
 0x35f   : > { %10009 = vmatprep.subr.bf16.mxu0 %v10008_v10 }
 0x361   : > { %8804 = vmatmul.mubr.f32.gmra.mrb[10].mxu0 %v12624_v30  ;;  %v10020_v30 = vpack.c.bf16 %v7310_v41, %v7309_v8  ;;  %v12919_v8 = vld [vmem:[#allocation2 + $0x129] sm:$0xff]  ;;  %v12922_v41 = vld [vmem:[#allocation2 + $0x131] sm:$0xff] }
 0x362   : > { %8806 = vmatprep.mubr.f32.mxu0 %v12627_v31  ;;  %10011 = vmatpush3.bf16.msra.mxu0 %v10008_v10  ;;  %v12807_v31 = vld [vmem:[#allocation2 + $0x188] sm:$0xff]  ;;  %v7325_v10 = vld [vmem:[%s14393_s3 + $0x400] sm:$0xff] }
 0x363   : > { %10013 = vmatprep.subr.bf16.mxu0 %v10012_v38  ;;  %14469 = vst [vmem:[#allocation33_spill] sm:$0xff] %v12807_v31 }
 0x365   : > { %8807 = vmatmul.mubr.f32.gmra.mrb[12].mxu0 %v12630_v20  ;;  %v12810_v20 = vld [vmem:[#allocation2 + $0x190] sm:$0xff] }
 0x366   : > { %8809 = vmatprep.mubr.f32.mxu0 %v12633_v29  ;;  %10015 = vmatpush3.bf16.msra.mxu0 %v10012_v38  ;;  %14470 = vst [vmem:[#allocation34_spill] sm:$0xff] %v12810_v20  ;;  %v3125_v29 = vld [vmem:[#allocation2 + $0x9] sm:$0xff]  ;;  %v10052_v38 = vpack.c.bf16 %v7326_v6, %v7325_v10  ;;  %v7337_v6 = vld [vmem:[%s14393_s3 + $0x460] sm:$0xff] }
 0x367   : > { %10017 = vmatprep.subr.bf16.mxu0 %v10016_v2 }
 0x369   : > { %8810 = vmatmul.mubr.f32.gmra.mrb[14].mxu0 %v12636_v50  ;;  %v7311_v50 = vld [vmem:[%s14393_s3 + $0x290] sm:$0xff] }
 0x36a   : > { %8812 = vmatprep.mubr.f32.mxu0 %v12719_v49  ;;  %10019 = vmatpush3.bf16.msra.mxu0 %v10016_v2  ;;  %v12916_v2 = vld [vmem:[#allocation2 + $0x111] sm:$0xff] }
 0x36b   : > { %10021 = vmatprep.subr.bf16.mxu0 %v10020_v30  ;;  %v7377_v49 = vld [vmem:[%s14393_s3 + $0x798] sm:$0xff] }
 0x36d   : > { %8813 = vmatmul.mubr.f32.gmra.mrb[16].mxu0 %v12640_v17  ;;  %v7312_v17 = vld [vmem:[%s14393_s3 + $0x298] sm:$0xff] }
 0x36e   : > { %8815 = vmatprep.mubr.f32.mxu0 %v12723_v37  ;;  %v10024_v39 = vpack.c.bf16 %v7312_v17, %v7311_v50  ;;  %v12931_v50 = vld [vmem:[#allocation2 + $0x169] sm:$0xff]  ;;  %v12934_v17 = vld [vmem:[#allocation2 + $0x171] sm:$0xff] }
 0x371   : > { %8816 = vmatmul.mubr.f32.gmra.mrb[18].mxu0 %v12726_v3  ;;  %v7376_v3 = vld [vmem:[%s14393_s3 + $0x790] sm:$0xff] }
 0x372   : > { %8818 = vmatprep.mubr.f32.mxu0 %v12807_v31  ;;  %v10152_v0 = vpack.c.bf16 %v7377_v49, %v7376_v3  ;;  %v7381_v49 = vld [vmem:[%s14393_s3 + $0x7b8] sm:$0xff]  ;;  %v7382_v3 = vld [vmem:[%s14393_s3 + $0x7c0] sm:$0xff] }
 0x373   : > { %v10164_v43 = vpack.c.bf16 %v7383_v57, %v7382_v3  ;;  %v7390_v57 = vld [vmem:[%s14393_s3 + $0x500] sm:$0xff] }
 0x375   : > { %8819 = vmatmul.mubr.f32.gmra.mrb[20].mxu0 %v12810_v20 }
 0x376   : > { %8821 = vmatprep.mubr.f32.mxu0 %v12323_v5 }
 0x379   : > { %8822 = vmatmul.mubr.f32.gmra.mrb[22].mxu0 %v12320_v40 }
 0x37a   : > { %8824 = vmatprep.mubr.f32.mxu0 %v12347_v24 }
 0x37d   : > { %8825 = vmatmul.mubr.f32.gmra.mrb[24].mxu0 %v12344_v59 }
 0x37e   : > { %8827 = vmatprep.mubr.f32.mxu0 %v12368_v42 }
 0x381   : > { %8828 = vmatmul.mubr.f32.gmra.mrb[26].mxu0 %v12363_v52 }
 0x382   : > { %8830 = vmatprep.mubr.f32.mxu0 %v12378_v12 }
 0x385   : > { %8831 = vmatmul.mubr.f32.gmra.mrb[28].mxu0 %v12381_v54 }
 0x386   : > { %8833 = vmatprep.mubr.f32.mxu0 %v12539_v26 }
 0x389   : > { %8834 = vmatmul.mubr.f32.gmra.mrb[30].mxu0 %v12539_v26  ;;  %v12838_v26 = vld [vmem:[#allocation2 + $0x31] sm:$0xff] }
 0x38a   : > { %8868 = vmatprep.mubr.f32.mxu0 %v3125_v29  ;;  %v12928_v29 = vld [vmem:[#allocation2 + $0x151] sm:$0xff] }
 0x38d   : > { %8869 = vmatmul.mubr.f32.vlgmr.msra.gmra.mrb[0].mxu0 %v3126_v15  ;;  %v12937_v15 = vld [vmem:[#allocation2 + $0x189] sm:$0xff] }
 0x38e   : > { %10023 = vmatpush3.bf16.msra.mxu0 %v10020_v30  ;;  %8871 = vmatprep.mubr.f32.mxu0 %v12835_v53  ;;  %v12925_v30 = vld [vmem:[#allocation2 + $0x149] sm:$0xff] }
 0x38f   : > { %10025 = vmatprep.subr.bf16.mxu0 %v10024_v39 }
 0x391   : > { %8872 = vmatmul.mubr.f32.gmra.mrb[2].mxu0 %v12838_v26 }
 0x392   : > { %8874 = vmatprep.mubr.f32.mxu0 %v12847_v32  ;;  %10027 = vmatpush3.bf16.msra.mxu0 %v10024_v39  ;;  %v12940_v39 = vld [vmem:[#allocation2 + $0x191] sm:$0xff] }
 0x393   : > { %10029 = vmatprep.subr.bf16.mxu0 %v10028_v4 }
 0x395   : > { %8875 = vmatmul.mubr.f32.gmra.mrb[4].mxu0 %v12850_v63 }
 0x396   : > { %8877 = vmatprep.mubr.f32.mxu0 %v12859_v33  ;;  %10031 = vmatpush3.bf16.msra.mxu0 %v10028_v4  ;;  %v12949_v4 = vld [vmem:[#allocation2 + $0x1c9] sm:$0xff] }
 0x397   : > { %10033 = vmatprep.subr.bf16.mxu0 %v10032_v36 }
 0x399   : > { %8878 = vmatmul.mubr.f32.gmra.mrb[6].mxu0 %v12862_v55 }
 0x39a   : > { %8880 = vmatprep.mubr.f32.mxu0 %v12871_v47  ;;  %10035 = vmatpush3.bf16.msra.mxu0 %v10032_v36  ;;  %v12958_v36 = vld [vmem:[#allocation2 + $0x1f1] sm:$0xff] }
 0x39b   : > { %10037 = vmatprep.subr.bf16.mxu0 %v10036_v60 }
 0x39d   : > { %8881 = vmatmul.mubr.f32.gmra.mrb[8].mxu0 %v12874_v19 }
 0x39e   : > { %8883 = vmatprep.mubr.f32.mxu0 %v12883_v18  ;;  %10039 = vmatpush3.bf16.msra.mxu0 %v10036_v60  ;;  %v10056_v60 = vpack.c.bf16 %v7328_v58, %v7327_v16  ;;  %v7339_v58 = vld [vmem:[%s14393_s3 + $0x470] sm:$0xff] }
 0x39f   : > { %10041 = vmatprep.subr.bf16.mxu0 %v10040_v13 }
 0x3a1   : > { %8884 = vmatmul.mubr.f32.gmra.mrb[10].mxu0 %v12886_v46 }
 0x3a2   : > { %8886 = vmatprep.mubr.f32.mxu0 %v12895_v51  ;;  %10043 = vmatpush3.bf16.msra.mxu0 %v10040_v13  ;;  %v10060_v13 = vpack.c.bf16 %v7330_v28, %v7329_v45  ;;  %v3157_v28 = vld [vmem:[#allocation2 + $0x209] sm:$0xff] }
 0x3a3   : > { %10045 = vmatprep.subr.bf16.mxu0 %v10044_v1 }
 0x3a5   : > { %8887 = vmatmul.mubr.f32.gmra.mrb[12].mxu0 %v12898_v48 }
 0x3a6   : > { %8889 = vmatprep.mubr.f32.mxu0 %v12907_v23  ;;  %10047 = vmatpush3.bf16.msra.mxu0 %v10044_v1  ;;  %v7334_v1 = vld [vmem:[%s14393_s3 + $0x448] sm:$0xff] }
 0x3a7   : > { %10049 = vmatprep.subr.bf16.mxu0 %v10048_v7  ;;  %v10068_v61 = vpack.c.bf16 %v7334_v1, %v7333_v27 }
 0x3a9   : > { %8890 = vmatmul.mubr.f32.gmra.mrb[14].mxu0 %v12910_v62 }
 0x3aa   : > { %8892 = vmatprep.mubr.f32.mxu0 %v12913_v44  ;;  %10051 = vmatpush3.bf16.msra.mxu0 %v10048_v7  ;;  %v7336_v7 = vld [vmem:[%s14393_s3 + $0x458] sm:$0xff] }
 0x3ab   : > { %10053 = vmatprep.subr.bf16.mxu0 %v10052_v38  ;;  %v10072_v10 = vpack.c.bf16 %v7336_v7, %v7335_v9 }
 0x3ad   : > { %8893 = vmatmul.mubr.f32.gmra.mrb[16].mxu0 %v12916_v2 }
 0x3ae   : > { %8895 = vmatprep.mubr.f32.mxu0 %v12919_v8 }
 0x3b1   : > { %8896 = vmatmul.mubr.f32.gmra.mrb[18].mxu0 %v12922_v41 }
 0x3b2   : > { %8898 = vmatprep.mubr.f32.mxu0 %v12925_v30 }
 0x3b5   : > { %8899 = vmatmul.mubr.f32.gmra.mrb[20].mxu0 %v12928_v29 }
 0x3b6   : > { %8901 = vmatprep.mubr.f32.mxu0 %v12931_v50 }
 0x3b9   : > { %8902 = vmatmul.mubr.f32.gmra.mrb[22].mxu0 %v12934_v17 }
 0x3ba   : > { %8904 = vmatprep.mubr.f32.mxu0 %v12937_v15 }
 0x3bd   : > { %8905 = vmatmul.mubr.f32.gmra.mrb[24].mxu0 %v12940_v39 }
 0x3be   : > { %8907 = vmatprep.mubr.f32.mxu0 %v12943_v25 }
 0x3c1   : > { %8908 = vmatmul.mubr.f32.gmra.mrb[26].mxu0 %v12946_v56 }
 0x3c2   : > { %8910 = vmatprep.mubr.f32.mxu0 %v12949_v4 }
 0x3c5   : > { %8911 = vmatmul.mubr.f32.gmra.mrb[28].mxu0 %v12952_v34 }
 0x3c6   : > { %8913 = vmatprep.mubr.f32.mxu0 %v12955_v14 }
 0x3c9   : > { %8914 = vmatmul.mubr.f32.gmra.mrb[30].mxu0 %v12958_v36 }
 0x3ca   : > { %8948 = vmatprep.mubr.f32.mxu0 %v12835_v53  ;;  %v7331_v53 = vld [vmem:[%s14393_s3 + $0x430] sm:$0xff] }
 0x3cd   : > { %8949 = vmatmul.mubr.f32.vlgmr.msra.gmra.mrb[0].mxu0 %v12838_v26  ;;  %v10064_v26 = vpack.c.bf16 %v7332_v35, %v7331_v53  ;;  %v13121_v35 = vld [vmem:[%s14394_s4] ss:$0 sm:$0xff] }
 0x3ce   : > { %10055 = vmatpush3.bf16.msra.mxu0 %v10052_v38  ;;  %8951 = vmatprep.mubr.f32.mxu0 %v12847_v32  ;;  %v7338_v38 = vld [vmem:[%s14393_s3 + $0x468] sm:$0xff] }
 0x3cf   : > { %10057 = vmatprep.subr.bf16.mxu0 %v10056_v60  ;;  %v10076_v16 = vpack.c.bf16 %v7338_v38, %v7337_v6 }
 0x3d1   : > { %8952 = vmatmul.mubr.f32.gmra.mrb[2].mxu0 %v12850_v63 }
 0x3d2   : > { %8954 = vmatprep.mubr.f32.mxu0 %v12859_v33  ;;  %10059 = vmatpush3.bf16.msra.mxu0 %v10056_v60  ;;  %v7340_v60 = vld [vmem:[%s14393_s3 + $0x478] sm:$0xff] }
 0x3d3   : > { %10061 = vmatprep.subr.bf16.mxu0 %v10060_v13  ;;  %v10080_v45 = vpack.c.bf16 %v7340_v60, %v7339_v58 }
 0x3d5   : > { %8955 = vmatmul.mubr.f32.gmra.mrb[4].mxu0 %v12862_v55 }
 0x3d6   : > { %8957 = vmatprep.mubr.f32.mxu0 %v12871_v47  ;;  %10063 = vmatpush3.bf16.msra.mxu0 %v10060_v13  ;;  %v3158_v13 = vld [vmem:[#allocation2 + $0x211] sm:$0xff] }
 0x3d7   : > { %10065 = vmatprep.subr.bf16.mxu0 %v10064_v26 }
 0x3d9   : > { %8958 = vmatmul.mubr.f32.gmra.mrb[6].mxu0 %v12874_v19 }
 0x3da   : > { %8960 = vmatprep.mubr.f32.mxu0 %v12883_v18  ;;  %10067 = vmatpush3.bf16.msra.mxu0 %v10064_v26 }
 0x3db   : > { %10069 = vmatprep.subr.bf16.mxu0 %v10068_v61 }
 0x3dd   : > { %8961 = vmatmul.mubr.f32.gmra.mrb[8].mxu0 %v12886_v46 }
 0x3de   : > { %8963 = vmatprep.mubr.f32.mxu0 %v12895_v51  ;;  %10071 = vmatpush3.bf16.msra.mxu0 %v10068_v61 }
 0x3df   : > { %10073 = vmatprep.subr.bf16.mxu0 %v10072_v10 }
 0x3e1   : > { %8964 = vmatmul.mubr.f32.gmra.mrb[10].mxu0 %v12898_v48 }
 0x3e2   : > { %8966 = vmatprep.mubr.f32.mxu0 %v12907_v23  ;;  %10075 = vmatpush3.bf16.msra.mxu0 %v10072_v10 }
 0x3e3   : > { %10077 = vmatprep.subr.bf16.mxu0 %v10076_v16 }
 0x3e5   : > { %8967 = vmatmul.mubr.f32.gmra.mrb[12].mxu0 %v12910_v62 }
 0x3e6   : > { %8969 = vmatprep.mubr.f32.mxu0 %v12913_v44  ;;  %10079 = vmatpush3.bf16.msra.mxu0 %v10076_v16 }
 0x3e7   : > { %10081 = vmatprep.subr.bf16.mxu0 %v10080_v45 }
 0x3e9   : > { %8970 = vmatmul.mubr.f32.gmra.mrb[14].mxu0 %v12916_v2 }
 0x3ea   : > { %8972 = vmatprep.mubr.f32.mxu0 %v12919_v8  ;;  %10083 = vmatpush3.bf16.msra.mxu0 %v10080_v45 }
 0x3ed   : > { %8973 = vmatmul.mubr.f32.gmra.mrb[16].mxu0 %v12922_v41 }
 0x3ee   : > { %8975 = vmatprep.mubr.f32.mxu0 %v12925_v30 }
 0x3f1   : > { %8976 = vmatmul.mubr.f32.gmra.mrb[18].mxu0 %v12928_v29 }
 0x3f2   : > { %8978 = vmatprep.mubr.f32.mxu0 %v12931_v50 }
 0x3f5   : > { %8979 = vmatmul.mubr.f32.gmra.mrb[20].mxu0 %v12934_v17 }
 0x3f6   : > { %8981 = vmatprep.mubr.f32.mxu0 %v12937_v15 }
 0x3f9   : > { %8982 = vmatmul.mubr.f32.gmra.mrb[22].mxu0 %v12940_v39 }
 0x3fa   : > { %8984 = vmatprep.mubr.f32.mxu0 %v12943_v25 }
 0x3fd   : > { %8985 = vmatmul.mubr.f32.gmra.mrb[24].mxu0 %v12946_v56 }
 0x3fe   : > { %8987 = vmatprep.mubr.f32.mxu0 %v12949_v4 }
 0x401   : > { %8988 = vmatmul.mubr.f32.gmra.mrb[26].mxu0 %v12952_v34 }
 0x402   : > { %8990 = vmatprep.mubr.f32.mxu0 %v12955_v14 }
 0x405   : > { %8991 = vmatmul.mubr.f32.gmra.mrb[28].mxu0 %v12958_v36 }
 0x406   : > { %8993 = vmatprep.mubr.f32.mxu0 %v3157_v28 }
 0x409   : > { %8994 = vmatmul.mubr.f32.gmra.mrb[30].mxu0 %v3158_v13 }
 0x40a   : > { %9028 = vmatprep.mubr.f32.mxu0 %v12847_v32  ;;  %v3159_v32 = vld [vmem:[#allocation2 + $0x229] sm:$0xff] }
 0x40d   : > { %9029 = vmatmul.mubr.f32.vlgmr.msra.gmra.mrb[0].mxu0 %v12850_v63  ;;  %v3160_v63 = vld [vmem:[#allocation2 + $0x231] sm:$0xff] }
 0x40e   : > { %9031 = vmatprep.mubr.f32.mxu0 %v12859_v33  ;;  %v7358_v33 = vld [vmem:[%s14393_s3 + $0x600] sm:$0xff] }
 0x411   : > { %9032 = vmatmul.mubr.f32.gmra.mrb[2].mxu0 %v12862_v55  ;;  %v7359_v55 = vld [vmem:[%s14393_s3 + $0x608] sm:$0xff] }
 0x412   : > { %9034 = vmatprep.mubr.f32.mxu0 %v12871_v47  ;;  %v10084_v47 = vpack.c.bf16 %v7359_v55, %v7358_v33 }
 0x414   : > { %10085 = vmatprep.subr.bf16.mxu1 %v10084_v47 }
 0x415   : > { %9035 = vmatmul.mubr.f32.gmra.mrb[4].mxu0 %v12874_v19  ;;  %10087 = vmatpush3.bf16.msra.mxu1 %v10084_v47  ;;  %v7360_v19 = vld [vmem:[%s14393_s3 + $0x610] sm:$0xff] }
 0x416   : > { %9037 = vmatprep.mubr.f32.mxu0 %v12883_v18  ;;  %v7361_v18 = vld [vmem:[%s14393_s3 + $0x618] sm:$0xff] }
 0x419   : > { %9038 = vmatmul.mubr.f32.gmra.mrb[6].mxu0 %v12886_v46  ;;  %v10088_v46 = vpack.c.bf16 %v7361_v18, %v7360_v19 }
 0x41a   : > { %9040 = vmatprep.mubr.f32.mxu0 %v12895_v51  ;;  %v7362_v51 = vld [vmem:[%s14393_s3 + $0x620] sm:$0xff] }
 0x41b   : > { %10089 = vmatprep.subr.bf16.mxu1 %v10088_v46 }
 0x41c   : > { %10091 = vmatpush3.bf16.msra.mxu1 %v10088_v46 }
 0x41d   : > { %9041 = vmatmul.mubr.f32.gmra.mrb[8].mxu0 %v12898_v48  ;;  %v7363_v48 = vld [vmem:[%s14393_s3 + $0x628] sm:$0xff] }
 0x41e   : > { %9043 = vmatprep.mubr.f32.mxu0 %v12907_v23  ;;  %v10092_v23 = vpack.c.bf16 %v7363_v48, %v7362_v51 }
 0x420   : > { %10093 = vmatprep.subr.bf16.mxu1 %v10092_v23 }
 0x421   : > { %9044 = vmatmul.mubr.f32.gmra.mrb[10].mxu0 %v12910_v62  ;;  %10095 = vmatpush3.bf16.msra.mxu1 %v10092_v23  ;;  %v7364_v62 = vld [vmem:[%s14393_s3 + $0x630] sm:$0xff] }
 0x422   : > { %9046 = vmatprep.mubr.f32.mxu0 %v12913_v44  ;;  %v7365_v44 = vld [vmem:[%s14393_s3 + $0x638] sm:$0xff] }
 0x425   : > { %9047 = vmatmul.mubr.f32.gmra.mrb[12].mxu0 %v12916_v2  ;;  %v10096_v2 = vpack.c.bf16 %v7365_v44, %v7364_v62 }
 0x426   : > { %9049 = vmatprep.mubr.f32.mxu0 %v12919_v8  ;;  %v7366_v8 = vld [vmem:[%s14393_s3 + $0x640] sm:$0xff] }
 0x427   : > { %10097 = vmatprep.subr.bf16.mxu1 %v10096_v2 }
 0x428   : > { %10099 = vmatpush3.bf16.msra.mxu1 %v10096_v2 }
 0x429   : > { %9050 = vmatmul.mubr.f32.gmra.mrb[14].mxu0 %v12922_v41  ;;  %v7367_v41 = vld [vmem:[%s14393_s3 + $0x648] sm:$0xff] }
 0x42a   : > { %9052 = vmatprep.mubr.f32.mxu0 %v12925_v30  ;;  %v10100_v30 = vpack.c.bf16 %v7367_v41, %v7366_v8 }
 0x42c   : > { %10101 = vmatprep.subr.bf16.mxu1 %v10100_v30 }
 0x42d   : > { %9053 = vmatmul.mubr.f32.gmra.mrb[16].mxu0 %v12928_v29  ;;  %10103 = vmatpush3.bf16.msra.mxu1 %v10100_v30  ;;  %v7368_v29 = vld [vmem:[%s14393_s3 + $0x650] sm:$0xff] }
 0x42e   : > { %9055 = vmatprep.mubr.f32.mxu0 %v12931_v50  ;;  %v7369_v50 = vld [vmem:[%s14393_s3 + $0x658] sm:$0xff] }
 0x431   : > { %9056 = vmatmul.mubr.f32.gmra.mrb[18].mxu0 %v12934_v17  ;;  %v10104_v17 = vpack.c.bf16 %v7369_v50, %v7368_v29 }
 0x432   : > { %9058 = vmatprep.mubr.f32.mxu0 %v12937_v15  ;;  %v7370_v15 = vld [vmem:[%s14393_s3 + $0x660] sm:$0xff] }
 0x433   : > { %10105 = vmatprep.subr.bf16.mxu1 %v10104_v17 }
 0x434   : > { %10107 = vmatpush3.bf16.msra.mxu1 %v10104_v17 }
 0x435   : > { %9059 = vmatmul.mubr.f32.gmra.mrb[20].mxu0 %v12940_v39  ;;  %v7371_v39 = vld [vmem:[%s14393_s3 + $0x668] sm:$0xff] }
 0x436   : > { %9061 = vmatprep.mubr.f32.mxu0 %v12943_v25  ;;  %v10108_v25 = vpack.c.bf16 %v7371_v39, %v7370_v15 }
 0x438   : > { %10109 = vmatprep.subr.bf16.mxu1 %v10108_v25 }
 0x439   : > { %9062 = vmatmul.mubr.f32.gmra.mrb[22].mxu0 %v12946_v56  ;;  %10111 = vmatpush3.bf16.msra.mxu1 %v10108_v25  ;;  %v7372_v56 = vld [vmem:[%s14393_s3 + $0x670] sm:$0xff] }
 0x43a   : > { %9064 = vmatprep.mubr.f32.mxu0 %v12949_v4  ;;  %v7373_v4 = vld [vmem:[%s14393_s3 + $0x678] sm:$0xff] }
 0x43d   : > { %9065 = vmatmul.mubr.f32.gmra.mrb[24].mxu0 %v12952_v34  ;;  %v10112_v34 = vpack.c.bf16 %v7373_v4, %v7372_v56 }
 0x43e   : > { %9067 = vmatprep.mubr.f32.mxu0 %v12955_v14  ;;  %v7342_v14 = vld [vmem:[%s14393_s3 + $0x480] sm:$0xff] }
 0x43f   : > { %10113 = vmatprep.subr.bf16.mxu1 %v10112_v34 }
 0x440   : > { %10115 = vmatpush3.bf16.msra.mxu1 %v10112_v34 }
 0x441   : > { %9068 = vmatmul.mubr.f32.gmra.mrb[26].mxu0 %v12958_v36  ;;  %v7343_v36 = vld [vmem:[%s14393_s3 + $0x488] sm:$0xff] }
 0x442   : > { %9070 = vmatprep.mubr.f32.mxu0 %v3157_v28  ;;  %v13115_v53 = vpack.c.bf16 %v7343_v36, %v7342_v14 }
 0x444   : > { %10117 = vmatprep.subr.bf16.mxu1 %v13115_v53 }
 0x445   : > { %9071 = vmatmul.mubr.f32.gmra.mrb[28].mxu0 %v3158_v13 }
 0x446   : > { %9073 = vmatprep.mubr.f32.mxu0 %v3159_v32 }
 0x449   : > { %9074 = vmatmul.mubr.f32.gmra.mrb[30].mxu0 %v3160_v63 }
 0x4e0   : > { %v9030_v26 = vpop.f32.mrb[0].mxu0 }
 0x4e1   : > { %v13124_v27 = vadd.f32 %v9030_v26, %v13121_v35  ;;  %v3792_v1 = vpop.f32.mrb[1].mxu0 }
 0x4e2   : > { %v13127_v61 = vadd.f32 %v13121_v35, %v3792_v1 }
 0x4e3   : > { %v4023_v9 = vsub.f32 0.0, %v13124_v27 }
 0x4e4   : > { %v4022_v7 = vsub.f32 0.0, %v13127_v61  ;;  %v9033_v10 = vpop.f32.mrb[2].mxu0 }
 0x4e5   : > { %v4056_v6 = vmul.f32 1.442695, %v4023_v9  ;;  %v13132_v38 = vadd.f32 %v9033_v10, %v13121_v35  ;;  %v3802_v16 = vpop.f32.mrb[3].mxu0 }
 0x4e6   : > { %v4054_v58 = vmul.f32 1.442695, %v4022_v7  ;;  %v13135_v60 = vadd.f32 %v13121_v35, %v3802_v16 }
 0x4e7   : > { %11109 = vpow2.f32 %v4056_v6  ;;  %v4025_v45 = vsub.f32 0.0, %v13132_v38 }
 0x4e8   : > { %11111 = vpow2.f32 %v4054_v58  ;;  %v4024_v28 = vsub.f32 0.0, %v13135_v60  ;;  %v9036_v13 = vpop.f32.mrb[4].mxu0 }
 0x4e9   : > { %v4060_v32 = vmul.f32 1.442695, %v4025_v45  ;;  %v13140_v63 = vadd.f32 %v9036_v13, %v13121_v35  ;;  %v3812_v33 = vpop.f32.mrb[5].mxu0 }
 0x4ea   : > { %v4058_v55 = vmul.f32 1.442695, %v4024_v28  ;;  %v13143_v47 = vadd.f32 %v13121_v35, %v3812_v33 }
 0x4eb   : > { %11113 = vpow2.f32 %v4060_v32  ;;  %v4027_v19 = vsub.f32 0.0, %v13140_v63 }
 0x4ec   : > { %11115 = vpow2.f32 %v4058_v55  ;;  %v4026_v18 = vsub.f32 0.0, %v13143_v47  ;;  %v9039_v46 = vpop.f32.mrb[6].mxu0 }
 0x4ed   : > { %v4064_v51 = vmul.f32 1.442695, %v4027_v19  ;;  %v13148_v48 = vadd.f32 %v9039_v46, %v13121_v35  ;;  %v3822_v23 = vpop.f32.mrb[7].mxu0 }
 0x4ee   : > { %v4062_v62 = vmul.f32 1.442695, %v4026_v18  ;;  %v13151_v44 = vadd.f32 %v13121_v35, %v3822_v23 }
 0x4ef   : > { %11117 = vpow2.f32 %v4064_v51  ;;  %v4029_v2 = vsub.f32 0.0, %v13148_v48 }
 0x4f0   : > { %11119 = vpow2.f32 %v4062_v62  ;;  %v4028_v8 = vsub.f32 0.0, %v13151_v44  ;;  %v9042_v41 = vpop.f32.mrb[8].mxu0 }
 0x4f1   : > { %v11110_v30 = vpop.eup %11109  ;;  %v4068_v29 = vmul.f32 1.442695, %v4029_v2  ;;  %v13156_v50 = vadd.f32 %v9042_v41, %v13121_v35  ;;  %v3832_v17 = vpop.f32.mrb[9].mxu0 }
 0x4f2   : > { %v11112_v15 = vpop.eup %11111  ;;  %v4119_v39 = vadd.f32 1.0, %v11110_v30  ;;  %v4066_v25 = vmul.f32 1.442695, %v4028_v8  ;;  %v13159_v56 = vadd.f32 %v13121_v35, %v3832_v17 }
 0x4f3   : > { %v4118_v4 = vadd.f32 1.0, %v11112_v15  ;;  %11121 = vpow2.f32 %v4068_v29  ;;  %v4031_v34 = vsub.f32 0.0, %v13156_v50 }
 0x4f4   : > { %11123 = vrcp.f32 %v4119_v39  ;;  %v4030_v14 = vsub.f32 0.0, %v13159_v56  ;;  %v9045_v36 = vpop.f32.mrb[10].mxu0 }
 0x4f5   : > { %v11114_v26 = vpop.eup %11113  ;;  %11125 = vrcp.f32 %v4118_v4  ;;  %v4072_v1 = vmul.f32 1.442695, %v4031_v34  ;;  %v13164_v9 = vadd.f32 %v9045_v36, %v13121_v35  ;;  %v3842_v7 = vpop.f32.mrb[11].mxu0 }
 0x4f6   : > { %v11116_v10 = vpop.eup %11115  ;;  %v4121_v6 = vadd.f32 1.0, %v11114_v26  ;;  %11127 = vpow2.f32 %v4066_v25  ;;  %v4070_v16 = vmul.f32 1.442695, %v4030_v14  ;;  %v13167_v58 = vadd.f32 %v13121_v35, %v3842_v7 }
 0x4f7   : > { %v4120_v45 = vadd.f32 1.0, %v11116_v10  ;;  %11129 = vpow2.f32 %v4072_v1  ;;  %v4033_v28 = vsub.f32 0.0, %v13164_v9 }
 0x4f8   : > { %11131 = vrcp.f32 %v4121_v6  ;;  %v4032_v13 = vsub.f32 0.0, %v13167_v58  ;;  %v9048_v32 = vpop.f32.mrb[12].mxu0 }
 0x4f9   : > { %v11118_v33 = vpop.eup %11117  ;;  %11133 = vrcp.f32 %v4120_v45  ;;  %v4076_v55 = vmul.f32 1.442695, %v4033_v28  ;;  %v13172_v19 = vadd.f32 %v9048_v32, %v13121_v35  ;;  %v3852_v18 = vpop.f32.mrb[13].mxu0 }
 0x4fa   : > { %v11120_v46 = vpop.eup %11119  ;;  %v4123_v51 = vadd.f32 1.0, %v11118_v33  ;;  %11135 = vpow2.f32 %v4070_v16  ;;  %v4074_v23 = vmul.f32 1.442695, %v4032_v13  ;;  %v13175_v62 = vadd.f32 %v13121_v35, %v3852_v18 }
 0x4fb   : > { %v4122_v2 = vadd.f32 1.0, %v11120_v46  ;;  %11137 = vpow2.f32 %v4076_v55  ;;  %v4035_v8 = vsub.f32 0.0, %v13172_v19 }
 0x4fc   : > { %11139 = vrcp.f32 %v4123_v51  ;;  %v4034_v41 = vsub.f32 0.0, %v13175_v62  ;;  %v9051_v30 = vpop.f32.mrb[14].mxu0 }
 0x4fd   : > { %v11122_v29 = vpop.eup %11121  ;;  %11141 = vrcp.f32 %v4122_v2  ;;  %v4080_v17 = vmul.f32 1.442695, %v4035_v8  ;;  %v13180_v15 = vadd.f32 %v9051_v30, %v13121_v35  ;;  %v3862_v39 = vpop.f32.mrb[15].mxu0 }
 0x4fe   : > { %v11124_v25 = vpop.eup %11123  ;;  %v4125_v4 = vadd.f32 1.0, %v11122_v29  ;;  %11143 = vpow2.f32 %v4074_v23  ;;  %v4078_v34 = vmul.f32 1.442695, %v4034_v41  ;;  %v13183_v14 = vadd.f32 %v13121_v35, %v3862_v39 }
 0x4ff   : > { %v11126_v36 = vpop.eup %11125  ;;  %v4215_v26 = vmul.f32 %v11124_v25, %v13124_v27  ;;  %11145 = vpow2.f32 %v4080_v17  ;;  %v4037_v1 = vsub.f32 0.0, %v13180_v15 }
 0x500   : > { %v11128_v7 = vpop.eup %11127  ;;  %v4214_v10 = vmul.f32 %v11126_v36, %v13127_v61  ;;  %11147 = vrcp.f32 %v4125_v4  ;;  %v4036_v6 = vsub.f32 0.0, %v13183_v14  ;;  %v9054_v16 = vpop.f32.mrb[16].mxu0 }
 0x501   : > { %v11130_v45 = vpop.eup %11129  ;;  %4247 = vst [vmem:[#allocation2 + $0x30] sm:$0xff] %v4215_v26  ;;  %v4124_v28 = vadd.f32 1.0, %v11128_v7  ;;  %11149 = vpow2.f32 %v4078_v34  ;;  %v4084_v13 = vmul.f32 1.442695, %v4037_v1  ;;  %v13190_v32 = vadd.f32 %v9054_v16, %v13121_v35  ;;  %v3872_v33 = vpop.f32.mrb[17].mxu0 }
 0x502   : > { %v11132_v27 = vpop.eup %11131  ;;  %4246 = vst [vmem:[#allocation2 + $0x28] sm:$0xff] %v4214_v10  ;;  %v4127_v55 = vadd.f32 1.0, %v11130_v45  ;;  %v4082_v18 = vmul.f32 1.442695, %v4036_v6  ;;  %v13193_v46 = vadd.f32 %v13121_v35, %v3872_v33 }
 0x503   : > { %v11134_v61 = vpop.eup %11133  ;;  %v4217_v51 = vmul.f32 %v11132_v27, %v13132_v38  ;;  %11151 = vrcp.f32 %v4124_v28  ;;  %v4039_v23 = vsub.f32 0.0, %v13190_v32  ;;  %v7344_v38 = vld [vmem:[%s14393_s3 + $0x490] sm:$0xff] }
 0x504   : > { %v11136_v2 = vpop.eup %11135  ;;  %v4216_v8 = vmul.f32 %v11134_v61, %v13135_v60  ;;  %11153 = vrcp.f32 %v4127_v55  ;;  %v4038_v41 = vsub.f32 0.0, %v13193_v46  ;;  %v9057_v30 = vpop.f32.mrb[18].mxu0  ;;  %v7345_v60 = vld [vmem:[%s14393_s3 + $0x498] sm:$0xff] }
 0x505   : > { %v11138_v29 = vpop.eup %11137  ;;  %4249 = vst [vmem:[#allocation2 + $0x50] sm:$0xff] %v4217_v51  ;;  %v4126_v17 = vadd.f32 1.0, %v11136_v2  ;;  %11155 = vpow2.f32 %v4084_v13  ;;  %v4088_v39 = vmul.f32 1.442695, %v4039_v23  ;;  %v13200_v25 = vadd.f32 %v9057_v30, %v13121_v35  ;;  %v3882_v4 = vpop.f32.mrb[19].mxu0  ;;  %v7347_v30 = vld [vmem:[%s14393_s3 + $0x4a8] sm:$0xff] }
 0x506   : > { %v11140_v34 = vpop.eup %11139  ;;  %4248 = vst [vmem:[#allocation2 + $0x48] sm:$0xff] %v4216_v8  ;;  %v4129_v36 = vadd.f32 1.0, %v11138_v29  ;;  %11157 = vpow2.f32 %v4082_v18  ;;  %v4086_v26 = vmul.f32 1.442695, %v4038_v41  ;;  %v13209_v1 = vadd.f32 %v13121_v35, %v3882_v4  ;;  %v7346_v41 = vld [vmem:[%s14393_s3 + $0x4a0] sm:$0xff] }
 0x507   : > { %v11142_v7 = vpop.eup %11141  ;;  %v4219_v10 = vmul.f32 %v11140_v34, %v13140_v63  ;;  %11159 = vrcp.f32 %v4126_v17  ;;  %v4041_v6 = vsub.f32 0.0, %v13200_v25  ;;  %v10120_v33 = vpack.c.bf16 %v7345_v60, %v7344_v38 }
 0x508   : > { %v11144_v16 = vpop.eup %11143  ;;  %v4218_v45 = vmul.f32 %v11142_v7, %v13143_v47  ;;  %11161 = vrcp.f32 %v4129_v36  ;;  %v4040_v28 = vsub.f32 0.0, %v13209_v1  ;;  %v9060_v13 = vpop.f32.mrb[20].mxu0  ;;  %v7348_v36 = vld [vmem:[%s14393_s3 + $0x4b0] sm:$0xff] }
 0x509   : > { %v11146_v27 = vpop.eup %11145  ;;  %4251 = vst [vmem:[#allocation2 + $0x70] sm:$0xff] %v4219_v10  ;;  %v4128_v55 = vadd.f32 1.0, %v11144_v16  ;;  %11163 = vpow2.f32 %v4088_v39  ;;  %v4092_v18 = vmul.f32 1.442695, %v4041_v6  ;;  %v13216_v61 = vadd.f32 %v9060_v13, %v13121_v35  ;;  %v3892_v63 = vpop.f32.mrb[21].mxu0  ;;  %v13218_v51 = vld [vmem:[#allocation2 + $0x27] sm:$0xff] }
 0x50a   : > { %v13220_v23 = vld [vmem:[#allocation2 + $0x2f] sm:$0xff]  ;;  %v11148_v2 = vpop.eup %11147  ;;  %4250 = vst [vmem:[#allocation2 + $0x68] sm:$0xff] %v4218_v45  ;;  %v4131_v47 = vadd.f32 1.0, %v11146_v27  ;;  %11165 = vpow2.f32 %v4086_v26  ;;  %v13223_v8 = vadd.f32 %v13121_v35, %v3892_v63  ;;  %9108 = vmatprep.mubr.f32.mxu1 %v13218_v51  ;;  %v4090_v39 = vmul.f32 1.442695, %v4040_v28 }
 0x50b   : > { %v11150_v29 = vpop.eup %11149  ;;  %v4221_v17 = vmul.f32 %v11148_v2, %v13148_v48  ;;  %11167 = vrcp.f32 %v4128_v55  ;;  %v4043_v4 = vsub.f32 0.0, %v13216_v61  ;;  %9109 = vmatmul.mubr.f32.vlgmr.msra.gmra.mrb[0].mxu1 %v13220_v23  ;;  %v10124_v45 = vpack.c.bf16 %v7347_v30, %v7346_v41 }
 0x50c   : > { %11169 = vrcp.f32 %v4131_v47  ;;  %v4130_v38 = vadd.f32 1.0, %v11150_v29  ;;  %v4042_v60 = vsub.f32 0.0, %v13223_v8  ;;  %10119 = vmatpush3.bf16.msra.mxu1 %v13115_v53  ;;  %v9063_v34 = vpop.f32.mrb[22].mxu0  ;;  %v7349_v53 = vld [vmem:[%s14393_s3 + $0x4b8] sm:$0xff] }
 0x50d   : > { %v11152_v26 = vpop.eup %11151  ;;  %4253 = vst [vmem:[#allocation2 + $0x90] sm:$0xff] %v4221_v17  ;;  %11171 = vpow2.f32 %v4092_v18  ;;  %v4096_v48 = vmul.f32 1.442695, %v4043_v4  ;;  %v13241_v7 = vadd.f32 %v9063_v34, %v13121_v35  ;;  %v3902_v10 = vpop.f32.mrb[23].mxu0  ;;  %v13243_v6 = vld [vmem:[#allocation2 + $0x47] sm:$0xff]  ;;  %v13245_v16 = vld [vmem:[#allocation2 + $0x4f] sm:$0xff]  ;;  %10121 = vmatprep.subr.bf16.mxu1 %v10120_v33  ;;  %v10128_v29 = vpack.c.bf16 %v7349_v53, %v7348_v36 }
 0x50e   : > { %v11154_v28 = vpop.eup %11153  ;;  %v4220_v13 = vmul.f32 %v11152_v26, %v13151_v44  ;;  %11173 = vrcp.f32 %v4130_v38  ;;  %v4094_v27 = vmul.f32 1.442695, %v4042_v60  ;;  %v13252_v55 = vadd.f32 %v13121_v35, %v3902_v10  ;;  %9111 = vmatprep.mubr.f32.mxu1 %v13243_v6  ;;  %v7350_v17 = vld [vmem:[%s14393_s3 + $0x4c0] sm:$0xff] }
 0x50f   : > { %v11156_v18 = vpop.eup %11155  ;;  %v4223_v63 = vmul.f32 %v11154_v28, %v13156_v50  ;;  %11175 = vpow2.f32 %v4090_v39  ;;  %v4045_v2 = vsub.f32 0.0, %v13241_v7  ;;  %9112 = vmatmul.mubr.f32.gmra.mrb[2].mxu1 %v13245_v16  ;;  %v7351_v50 = vld [vmem:[%s14393_s3 + $0x4c8] sm:$0xff] }
 0x510   : > { %v11158_v47 = vpop.eup %11157  ;;  %4252 = vst [vmem:[#allocation2 + $0x88] sm:$0xff] %v4220_v13  ;;  %v4133_v41 = vadd.f32 1.0, %v11156_v18  ;;  %11177 = vpow2.f32 %v4096_v48  ;;  %v4044_v44 = vsub.f32 0.0, %v13252_v55  ;;  %v9066_v30 = vpop.f32.mrb[24].mxu0  ;;  %10123 = vmatpush3.bf16.msra.mxu1 %v10120_v33 }
 0x511   : > { %v11160_v39 = vpop.eup %11159  ;;  %4255 = vst [vmem:[#allocation2 + $0xb0] sm:$0xff] %v4223_v63  ;;  %v4132_v4 = vadd.f32 1.0, %v11158_v47  ;;  %11179 = vpow2.f32 %v4094_v27  ;;  %v4100_v38 = vmul.f32 1.442695, %v4045_v2  ;;  %v13266_v60 = vadd.f32 %v9066_v30, %v13121_v35  ;;  %v3912_v34 = vpop.f32.mrb[25].mxu0  ;;  %v13268_v26 = vld [vmem:[#allocation2 + $0x67] sm:$0xff]  ;;  %10125 = vmatprep.subr.bf16.mxu1 %v10124_v45 }
 0x512   : > { %v13270_v33 = vld [vmem:[#allocation2 + $0x6f] sm:$0xff]  ;;  %v11162_v36 = vpop.eup %11161  ;;  %v4222_v48 = vmul.f32 %v11160_v39, %v13159_v56  ;;  %11181 = vrcp.f32 %v4133_v41  ;;  %v4098_v10 = vmul.f32 1.442695, %v4044_v44  ;;  %v13274_v53 = vadd.f32 %v13121_v35, %v3912_v34  ;;  %9114 = vmatprep.mubr.f32.mxu1 %v13268_v26 }
 0x513   : > { %v11164_v28 = vpop.eup %11163  ;;  %v13278_v13 = vmul.f32 %v11162_v36, %v13164_v9  ;;  %11183 = vrcp.f32 %v4132_v4  ;;  %v4047_v27 = vsub.f32 0.0, %v13266_v60  ;;  %9115 = vmatmul.mubr.f32.gmra.mrb[4].mxu1 %v13270_v33  ;;  %v10132_v47 = vpack.c.bf16 %v7351_v50, %v7350_v17  ;;  %v7352_v4 = vld [vmem:[%s14393_s3 + $0x4d0] sm:$0xff] }
 0x514   : > { %v11166_v18 = vpop.eup %11165  ;;  %4254 = vst [vmem:[#allocation2 + $0xa8] sm:$0xff] %v4222_v48  ;;  %v4135_v63 = vadd.f32 1.0, %v11164_v28  ;;  %11185 = vpow2.f32 %v4100_v38  ;;  %v4046_v56 = vsub.f32 0.0, %v13274_v53  ;;  %v9069_v2 = vpop.f32.mrb[26].mxu0  ;;  %10127 = vmatpush3.bf16.msra.mxu1 %v10124_v45  ;;  %v7353_v45 = vld [vmem:[%s14393_s3 + $0x4d8] sm:$0xff] }
 0x515   : > { %v11168_v41 = vpop.eup %11167  ;;  %4257 = vst [vmem:[#allocation2 + $0xd0] sm:$0xff] %v13278_v13  ;;  %v4134_v44 = vadd.f32 1.0, %v11166_v18  ;;  %11187 = vpow2.f32 %v4098_v10  ;;  %v4104_v9 = vmul.f32 1.442695, %v4047_v27  ;;  %v13285_v30 = vadd.f32 %v9069_v2, %v13121_v35  ;;  %v3922_v39 = vpop.f32.mrb[27].mxu0  ;;  %10129 = vmatprep.subr.bf16.mxu1 %v10128_v29 }
 0x516   : > { %v11170_v17 = vpop.eup %11169  ;;  %v13294_v50 = vmul.f32 %v11168_v41, %v13167_v58  ;;  %11189 = vrcp.f32 %v4135_v63  ;;  %v4102_v38 = vmul.f32 1.442695, %v4046_v56  ;;  %v13297_v34 = vadd.f32 %v13121_v35, %v3922_v39 }
 0x517   : > { %v11172_v36 = vpop.eup %11171  ;;  %v13300_v48 = vmul.f32 %v11170_v17, %v13172_v19  ;;  %11191 = vrcp.f32 %v4134_v44  ;;  %v4049_v10 = vsub.f32 0.0, %v13285_v30  ;;  %v13303_v28 = vld [vmem:[#allocation2 + $0x87] sm:$0xff]  ;;  %v13305_v27 = vld [vmem:[#allocation2 + $0x8f] sm:$0xff]  ;;  %v10136_v19 = vpack.c.bf16 %v7353_v45, %v7352_v4 }
 0x518   : > { %v11174_v18 = vpop.eup %11173  ;;  %4256 = vst [vmem:[#allocation2 + $0xc8] sm:$0xff] %v13294_v50  ;;  %v4137_v58 = vadd.f32 1.0, %v11172_v36  ;;  %11193 = vpow2.f32 %v4104_v9  ;;  %v4048_v63 = vsub.f32 0.0, %v13297_v34  ;;  %9117 = vmatprep.mubr.f32.mxu1 %v13303_v28  ;;  %v9072_v56 = vpop.f32.mrb[28].mxu0  ;;  %10131 = vmatpush3.bf16.msra.mxu1 %v10128_v29  ;;  %v7354_v29 = vld [vmem:[%s14393_s3 + $0x4e0] sm:$0xff]  ;;  %v7355_v4 = vld [vmem:[%s14393_s3 + $0x4e8] sm:$0xff] }
 0x519   : > { %v11176_v2 = vpop.eup %11175  ;;  %4259 = vst [vmem:[#allocation2 + $0xf0] sm:$0xff] %v13300_v48  ;;  %v13312_v41 = vmul.f32 %v11174_v18, %v13175_v62  ;;  %11195 = vpow2.f32 %v4102_v38  ;;  %v4108_v44 = vmul.f32 1.442695, %v4049_v10  ;;  %9118 = vmatmul.mubr.f32.gmra.mrb[6].mxu1 %v13305_v27  ;;  %v13316_v39 = vadd.f32 %v9072_v56, %v13121_v35  ;;  %v3932_v9 = vpop.f32.mrb[29].mxu0  ;;  %10133 = vmatprep.subr.bf16.mxu1 %v10132_v47 }
 0x51a   : > { %v11178_v45 = vpop.eup %11177  ;;  %11197 = vrcp.f32 %v4137_v58  ;;  %v4136_v62 = vadd.f32 1.0, %v11176_v2  ;;  %v13325_v17 = vadd.f32 %v13121_v35, %v3932_v9  ;;  %v4106_v10 = vmul.f32 1.442695, %v4048_v63 }
 0x51b   : > { %v11180_v38 = vpop.eup %11179  ;;  %4258 = vst [vmem:[#allocation2 + $0xe8] sm:$0xff] %v13312_v41  ;;  %v4139_v36 = vadd.f32 1.0, %v11178_v45  ;;  %11199 = vpow2.f32 %v4108_v44  ;;  %v4051_v18 = vsub.f32 0.0, %v13316_v39  ;;  %v13329_v56 = vld [vmem:[#allocation2 + $0xa7] sm:$0xff]  ;;  %v13331_v12 = vld [vmem:[#allocation2 + $0xaf] sm:$0xff]  ;;  %v10140_v9 = vpack.c.bf16 %v7355_v4, %v7354_v29 }
 0x51c   : > { %v11182_v54 = vpop.eup %11181  ;;  %11201 = vrcp.f32 %v4136_v62  ;;  %v4138_v42 = vadd.f32 1.0, %v11180_v38  ;;  %v4050_v58 = vsub.f32 0.0, %v13325_v17  ;;  %9120 = vmatprep.mubr.f32.mxu1 %v13329_v56  ;;  %v9075_v2 = vpop.f32.mrb[30].mxu0  ;;  %10135 = vmatpush3.bf16.msra.mxu1 %v10132_v47 }
 0x51d   : > { %v11184_v52 = vpop.eup %11183  ;;  %v13336_v44 = vmul.f32 %v11182_v54, %v13180_v15  ;;  %11203 = vrcp.f32 %v4139_v36  ;;  %v4112_v63 = vmul.f32 1.442695, %v4051_v18  ;;  %9121 = vmatmul.mubr.f32.gmra.mrb[8].mxu1 %v13331_v12  ;;  %v13340_v45 = vadd.f32 %v9075_v2, %v13121_v35  ;;  %v3942_v62 = vpop.f32.mrb[31].mxu0  ;;  %10137 = vmatprep.subr.bf16.mxu1 %v10136_v19  ;;  %v7356_v54 = vld [vmem:[%s14393_s3 + $0x4f0] sm:$0xff]  ;;  %v7357_v15 = vld [vmem:[%s14393_s3 + $0x4f8] sm:$0xff] }
 0x51e   : > { %v11186_v38 = vpop.eup %11185  ;;  %v13343_v24 = vmul.f32 %v11184_v52, %v13183_v14  ;;  %11205 = vrcp.f32 %v4138_v42  ;;  %v13346_v47 = vadd.f32 %v13121_v35, %v3942_v62  ;;  %v4110_v36 = vmul.f32 1.442695, %v4050_v58 }
 0x51f   : > { %v11188_v29 = vpop.eup %11187  ;;  %4261 = vst [vmem:[#allocation2 + $0x110] sm:$0xff] %v13336_v44  ;;  %v4141_v4 = vadd.f32 1.0, %v11186_v38  ;;  %11207 = vpow2.f32 %v4106_v10  ;;  %v4053_v52 = vsub.f32 0.0, %v13340_v45  ;;  %v13356_v42 = vld [vmem:[#allocation2 + $0xc7] sm:$0xff]  ;;  %v13358_v35 = vld [vmem:[#allocation2 + $0xcf] sm:$0xff]  ;;  %v10144_v38 = vpack.c.bf16 %v7357_v15, %v7356_v54 }
 0x520   : > { %v11190_v14 = vpop.eup %11189  ;;  %4260 = vst [vmem:[#allocation2 + $0x108] sm:$0xff] %v13343_v24  ;;  %v4140_v18 = vadd.f32 1.0, %v11188_v29  ;;  %11209 = vpow2.f32 %v4112_v63  ;;  %v4052_v2 = vsub.f32 0.0, %v13346_v47  ;;  %9123 = vmatprep.mubr.f32.mxu1 %v13356_v42  ;;  %10139 = vmatpush3.bf16.msra.mxu1 %v10136_v19  ;;  %v7374_v29 = vld [vmem:[%s14393_s3 + $0x780] sm:$0xff] }
 0x521   : > { %v11192_v62 = vpop.eup %11191  ;;  %v13364_v10 = vmul.f32 %v11190_v14, %v13190_v32  ;;  %11211 = vrcp.f32 %v4141_v4  ;;  %v4116_v58 = vmul.f32 1.442695, %v4053_v52  ;;  %9124 = vmatmul.mubr.f32.gmra.mrb[10].mxu1 %v13358_v35  ;;  %10141 = vmatprep.subr.bf16.mxu1 %v10140_v9  ;;  %v7375_v32 = vld [vmem:[%s14393_s3 + $0x788] sm:$0xff] }
 0x522   : > { %v11194_v63 = vpop.eup %11193  ;;  %v13371_v59 = vmul.f32 %v11192_v62, %v13193_v46  ;;  %11213 = vrcp.f32 %v4140_v18  ;;  %v13373_v19 = vld [vmem:[#allocation2 + $0xe7] sm:$0xff]  ;;  %v13375_v5 = vld [vmem:[#allocation2 + $0xef] sm:$0xff]  ;;  %v4114_v15 = vmul.f32 1.442695, %v4052_v2  ;;  %v13387_v62 = vpack.c.bf16 %v7375_v32, %v7374_v29 }
 0x523   : > { %v11196_v4 = vpop.eup %11195  ;;  %4263 = vst [vmem:[#allocation2 + $0x130] sm:$0xff] %v13364_v10  ;;  %v4143_v54 = vadd.f32 1.0, %v11194_v63  ;;  %11215 = vpow2.f32 %v4110_v36  ;;  %9126 = vmatprep.mubr.f32.mxu1 %v13373_v19 }
 0x524   : > { %v11198_v52 = vpop.eup %11197  ;;  %4262 = vst [vmem:[#allocation2 + $0x128] sm:$0xff] %v13371_v59  ;;  %v4142_v46 = vadd.f32 1.0, %v11196_v4  ;;  %11217 = vpow2.f32 %v4116_v58  ;;  %10143 = vmatpush3.bf16.msra.mxu1 %v10140_v9 }
 0x525   : > { %v11200_v14 = vpop.eup %11199  ;;  %v13384_v18 = vmul.f32 %v11198_v52, %v13200_v25  ;;  %11219 = vrcp.f32 %v4143_v54  ;;  %9127 = vmatmul.mubr.f32.gmra.mrb[12].mxu1 %v13375_v5  ;;  %10145 = vmatprep.subr.bf16.mxu1 %v10144_v38 }
 0x526   : > { %v11202_v36 = vpop.eup %11201  ;;  %11221 = vrcp.f32 %v4142_v46  ;;  %v4145_v2 = vadd.f32 1.0, %v11200_v14 }
 0x527   : > { %v11204_v63 = vpop.eup %11203  ;;  %4265 = vst [vmem:[#allocation2 + $0x150] sm:$0xff] %v13384_v18  ;;  %v13391_v4 = vmul.f32 %v11202_v36, %v13209_v1  ;;  %11223 = vpow2.f32 %v4114_v15  ;;  %v13393_v9 = vld [vmem:[#allocation2 + $0x107] sm:$0xff]  ;;  %v13395_v25 = vld [vmem:[#allocation2 + $0x10f] sm:$0xff] }
 0x528   : > { %v11206_v58 = vpop.eup %11205  ;;  %v13398_v54 = vmul.f32 %v11204_v63, %v13216_v61  ;;  %11225 = vrcp.f32 %v4145_v2  ;;  %9129 = vmatprep.mubr.f32.mxu1 %v13393_v9  ;;  %10147 = vmatpush3.bf16.msra.mxu1 %v10144_v38 }
 0x529   : > { %v11208_v29 = vpop.eup %11207  ;;  %4264 = vst [vmem:[#allocation2 + $0x148] sm:$0xff] %v13391_v4  ;;  %v13403_v32 = vmul.f32 %v11206_v58, %v13223_v8  ;;  %9130 = vmatmul.mubr.f32.gmra.mrb[14].mxu1 %v13395_v25  ;;  %10149 = vmatprep.subr.bf16.mxu1 %v13387_v62 }
 0x52a   : > { %v11210_v1 = vpop.eup %11209  ;;  %4267 = vst [vmem:[#allocation2 + $0x170] sm:$0xff] %v13398_v54  ;;  %v4144_v15 = vadd.f32 1.0, %v11208_v29 }
 0x52b   : > { %v11212_v61 = vpop.eup %11211  ;;  %4266 = vst [vmem:[#allocation2 + $0x168] sm:$0xff] %v13403_v32  ;;  %v4147_v52 = vadd.f32 1.0, %v11210_v1  ;;  %v13409_v46 = vld [vmem:[#allocation2 + $0x127] sm:$0xff]  ;;  %v13411_v38 = vld [vmem:[#allocation2 + $0x12f] sm:$0xff] }
 0x52c   : > { %v11214_v14 = vpop.eup %11213  ;;  %v13414_v8 = vmul.f32 %v11212_v61, %v13241_v7  ;;  %11227 = vrcp.f32 %v4144_v15  ;;  %9132 = vmatprep.mubr.f32.mxu1 %v13409_v46 }
 0x52d   : > { %v11216_v36 = vpop.eup %11215  ;;  %v13418_v2 = vmul.f32 %v11214_v14, %v13252_v55  ;;  %11229 = vrcp.f32 %v4147_v52  ;;  %9133 = vmatmul.mubr.f32.gmra.mrb[16].mxu1 %v13411_v38 }
 0x52e   : > { %v11218_v63 = vpop.eup %11217  ;;  %4269 = vst [vmem:[#allocation2 + $0x190] sm:$0xff] %v13414_v8  ;;  %v4146_v58 = vadd.f32 1.0, %v11216_v36 }
 0x52f   : > { %v11220_v29 = vpop.eup %11219  ;;  %4268 = vst [vmem:[#allocation2 + $0x188] sm:$0xff] %v13418_v2  ;;  %v4149_v1 = vadd.f32 1.0, %v11218_v63 }
 0x530   : > { %v11222_v7 = vpop.eup %11221  ;;  %v13424_v15 = vmul.f32 %v11220_v29, %v13266_v60  ;;  %11231 = vrcp.f32 %v4146_v58  ;;  %v13426_v61 = vld [vmem:[#allocation2 + $0x147] sm:$0xff]  ;;  %v13428_v55 = vld [vmem:[#allocation2 + $0x14f] sm:$0xff] }
 0x531   : > { %v11224_v52 = vpop.eup %11223  ;;  %v13431_v14 = vmul.f32 %v11222_v7, %v13274_v53  ;;  %11233 = vrcp.f32 %v4149_v1  ;;  %9135 = vmatprep.mubr.f32.mxu1 %v13426_v61 }
 0x532   : > { %v11226_v36 = vpop.eup %11225  ;;  %4271 = vst [vmem:[#allocation2 + $0x1b0] sm:$0xff] %v13424_v15  ;;  %v4148_v63 = vadd.f32 1.0, %v11224_v52  ;;  %9136 = vmatmul.mubr.f32.gmra.mrb[18].mxu1 %v13428_v55  ;;  %v13436_v60 = vld [vmem:[#allocation2 + $0x167] sm:$0xff]  ;;  %v13443_v53 = vld [vmem:[#allocation2 + $0x16f] sm:$0xff] }
 0x533   : > { %4270 = vst [vmem:[#allocation2 + $0x1a8] sm:$0xff] %v13431_v14  ;;  %v13440_v58 = vmul.f32 %v11226_v36, %v13285_v30  ;;  %9138 = vmatprep.mubr.f32.mxu1 %v13436_v60 }
 0x534   : > { %11235 = vrcp.f32 %v4148_v63 }
 0x535   : > { %4273 = vst [vmem:[#allocation2 + $0x1d0] sm:$0xff] %v13440_v58 }
 0x536   : > { %v11228_v29 = vpop.eup %11227  ;;  %9139 = vmatmul.mubr.f32.gmra.mrb[20].mxu1 %v13443_v53  ;;  %v13447_v1 = vld [vmem:[#allocation2 + $0x187] sm:$0xff]  ;;  %v13453_v30 = vld [vmem:[#allocation2 + $0x18f] sm:$0xff] }
 0x537   : > { %v11230_v7 = vpop.eup %11229  ;;  %v13450_v52 = vmul.f32 %v11228_v29, %v13297_v34  ;;  %9141 = vmatprep.mubr.f32.mxu1 %v13447_v1 }
 0x538   : > { %v13456_v36 = vmul.f32 %v11230_v7, %v13316_v39 }
 0x539   : > { %4272 = vst [vmem:[#allocation2 + $0x1c8] sm:$0xff] %v13450_v52 }
 0x53a   : > { %v11232_v63 = vpop.eup %11231  ;;  %4275 = vst [vmem:[#allocation2 + $0x1f0] sm:$0xff] %v13456_v36  ;;  %9142 = vmatmul.mubr.f32.gmra.mrb[22].mxu1 %v13453_v30  ;;  %v13461_v40 = vld [vmem:[#allocation2 + $0x1a7] sm:$0xff]  ;;  %v13467_v29 = vld [vmem:[#allocation2 + $0x1af] sm:$0xff] }
 0x53b   : > { %v11234_v31 = vpop.eup %11233  ;;  %v13464_v34 = vmul.f32 %v11232_v63, %v13325_v17  ;;  %9144 = vmatprep.mubr.f32.mxu1 %v13461_v40 }
 0x53c   : > { %v13470_v39 = vmul.f32 %v11234_v31, %v13340_v45 }
 0x53d   : > { %4274 = vst [vmem:[#allocation2 + $0x1e8] sm:$0xff] %v13464_v34 }
 0x53e   : > { %v11236_v7 = vpop.eup %11235  ;;  %4277 = vst [vmem:[#allocation2 + $0x210] sm:$0xff] %v13470_v39  ;;  %9145 = vmatmul.mubr.f32.gmra.mrb[24].mxu1 %v13467_v29 }
 0x53f   : > { %v13476_v20 = vmul.f32 %v11236_v7, %v13346_v47  ;;  %v4278_v7 = vld [vmem:[#allocation2 + $0x7] sm:$0xff] }
 0x540   : > { %v13478_v37 = vld [vmem:[#allocation2 + $0x1c7] sm:$0xff]  ;;  %v13480_v17 = vld [vmem:[#allocation2 + $0x1cf] sm:$0xff] }
 0x541   : > { %4276 = vst [vmem:[#allocation2 + $0x208] sm:$0xff] %v13476_v20  ;;  %9147 = vmatprep.mubr.f32.mxu1 %v13478_v37 }
 0x542   : > { %9148 = vmatmul.mubr.f32.gmra.mrb[26].mxu1 %v13480_v17 }
 0x544   : > { %v13485_v31 = vld [vmem:[#allocation2 + $0x1e7] sm:$0xff]  ;;  %v13487_v45 = vld [vmem:[#allocation2 + $0x1ef] sm:$0xff] }
 0x545   : > { %9150 = vmatprep.mubr.f32.mxu1 %v13485_v31 }
 0x546   : > { %9151 = vmatmul.mubr.f32.gmra.mrb[28].mxu1 %v13487_v45 }
 0x548   : > { %v13491_v47 = vld [vmem:[#allocation2 + $0x207] sm:$0xff]  ;;  %v13493_v63 = vld [vmem:[#allocation2 + $0x20f] sm:$0xff] }
 0x549   : > { %9153 = vmatprep.mubr.f32.mxu1 %v13491_v47 }
 0x54a   : > { %9154 = vmatmul.mubr.f32.gmra.mrb[30].mxu1 %v13493_v63 }
 0x54b   : > { %9188 = vmatprep.mubr.f32.mxu1 %v4278_v7  ;;  %v7380_v7 = vld [vmem:[%s14393_s3 + $0x7b0] sm:$0xff] }
 0x54e   : > { %9189 = vmatmul.mubr.f32.vlgmr.msra.gmra.mrb[0].mxu1 %v4279_v21  ;;  %v10160_v21 = vpack.c.bf16 %v7381_v49, %v7380_v7  ;;  %v7388_v49 = vld [vmem:[%s14393_s3 + $0x7f0] sm:$0xff] }
 0x54f   : > { %10151 = vmatpush3.bf16.msra.mxu1 %v13387_v62  ;;  %9191 = vmatprep.mubr.f32.mxu1 %v13218_v51  ;;  %v7385_v51 = vld [vmem:[%s14393_s3 + $0x7d8] sm:$0xff]  ;;  %v7387_v62 = vld [vmem:[%s14393_s3 + $0x7e8] sm:$0xff] }
 0x550   : > { %10153 = vmatprep.subr.bf16.mxu1 %v10152_v0 }
 0x552   : > { %9192 = vmatmul.mubr.f32.gmra.mrb[2].mxu1 %v13220_v23 }
 0x553   : > { %9194 = vmatprep.mubr.f32.mxu1 %v13243_v6  ;;  %10155 = vmatpush3.bf16.msra.mxu1 %v10152_v0  ;;  %v7384_v0 = vld [vmem:[%s14393_s3 + $0x7d0] sm:$0xff] }
 0x554   : > { %10157 = vmatprep.subr.bf16.mxu1 %v10156_v11  ;;  %v10168_v23 = vpack.c.bf16 %v7385_v51, %v7384_v0  ;;  %v7392_v51 = vld [vmem:[%s14393_s3 + $0x510] sm:$0xff] }
 0x556   : > { %9195 = vmatmul.mubr.f32.gmra.mrb[4].mxu1 %v13245_v16 }
 0x557   : > { %9197 = vmatprep.mubr.f32.mxu1 %v13268_v26  ;;  %10159 = vmatpush3.bf16.msra.mxu1 %v10156_v11  ;;  %v7386_v11 = vld [vmem:[%s14393_s3 + $0x7e0] sm:$0xff] }
 0x558   : > { %10161 = vmatprep.subr.bf16.mxu1 %v10160_v21  ;;  %v10172_v7 = vpack.c.bf16 %v7387_v62, %v7386_v11  ;;  %v7394_v62 = vld [vmem:[%s14393_s3 + $0x520] sm:$0xff] }
 0x55a   : > { %9198 = vmatmul.mubr.f32.gmra.mrb[6].mxu1 %v13270_v33 }
 0x55b   : > { %9200 = vmatprep.mubr.f32.mxu1 %v13303_v28  ;;  %10163 = vmatpush3.bf16.msra.mxu1 %v10160_v21  ;;  %v7389_v21 = vld [vmem:[%s14393_s3 + $0x7f8] sm:$0xff] }
 0x55c   : > { %10165 = vmatprep.subr.bf16.mxu1 %v10164_v43  ;;  %v10176_v3 = vpack.c.bf16 %v7389_v21, %v7388_v49  ;;  %v7397_v21 = vld [vmem:[%s14393_s3 + $0x538] sm:$0xff] }
 0x55e   : > { %9201 = vmatmul.mubr.f32.gmra.mrb[8].mxu1 %v13305_v27 }
 0x55f   : > { %9203 = vmatprep.mubr.f32.mxu1 %v13329_v56  ;;  %10167 = vmatpush3.bf16.msra.mxu1 %v10164_v43  ;;  %v7391_v43 = vld [vmem:[%s14393_s3 + $0x508] sm:$0xff] }
 0x560   : > { %10169 = vmatprep.subr.bf16.mxu1 %v10168_v23  ;;  %v10180_v0 = vpack.c.bf16 %v7391_v43, %v7390_v57  ;;  %v7401_v57 = vld [vmem:[%s14393_s3 + $0x558] sm:$0xff]  ;;  %v7403_v43 = vld [vmem:[%s14393_s3 + $0x568] sm:$0xff] }
 0x562   : > { %9204 = vmatmul.mubr.f32.gmra.mrb[10].mxu1 %v13331_v12 }
 0x563   : > { %9206 = vmatprep.mubr.f32.mxu1 %v13356_v42  ;;  %10171 = vmatpush3.bf16.msra.mxu1 %v10168_v23  ;;  %v7393_v23 = vld [vmem:[%s14393_s3 + $0x518] sm:$0xff] }
 0x564   : > { %10173 = vmatprep.subr.bf16.mxu1 %v10172_v7  ;;  %v10184_v11 = vpack.c.bf16 %v7393_v23, %v7392_v51  ;;  %v7407_v51 = vld [vmem:[%s14393_s3 + $0x688] sm:$0xff] }
 0x565   : > { %v13694_v23 = vld [vmem:[#allocation2 + $0x68] sm:$0xff] }
 0x566   : > { %9207 = vmatmul.mubr.f32.gmra.mrb[12].mxu1 %v13358_v35 }
 0x567   : > { %9209 = vmatprep.mubr.f32.mxu1 %v13373_v19  ;;  %10175 = vmatpush3.bf16.msra.mxu1 %v10172_v7  ;;  %v7395_v7 = vld [vmem:[%s14393_s3 + $0x528] sm:$0xff] }
 0x568   : > { %10177 = vmatprep.subr.bf16.mxu1 %v10176_v3  ;;  %v10188_v49 = vpack.c.bf16 %v7395_v7, %v7394_v62  ;;  %v13697_v62 = vld [vmem:[#allocation2 + $0x70] sm:$0xff] }
 0x569   : > { %v7416_v7 = vld [vmem:[%s14393_s3 + $0x6d0] sm:$0xff] }
 0x56a   : > { %9210 = vmatmul.mubr.f32.gmra.mrb[14].mxu1 %v13375_v5 }
 0x56b   : > { %9212 = vmatprep.mubr.f32.mxu1 %v13393_v9  ;;  %10179 = vmatpush3.bf16.msra.mxu1 %v10176_v3  ;;  %v7399_v3 = vld [vmem:[%s14393_s3 + $0x548] sm:$0xff] }
 0x56c   : > { %10181 = vmatprep.subr.bf16.mxu1 %v10180_v0 }
 0x56e   : > { %9213 = vmatmul.mubr.f32.gmra.mrb[16].mxu1 %v13395_v25 }
 0x56f   : > { %9215 = vmatprep.mubr.f32.mxu1 %v13409_v46 }
 0x572   : > { %9216 = vmatmul.mubr.f32.gmra.mrb[18].mxu1 %v13411_v38 }
 0x573   : > { %9218 = vmatprep.mubr.f32.mxu1 %v13426_v61 }
 0x576   : > { %9219 = vmatmul.mubr.f32.gmra.mrb[20].mxu1 %v13428_v55 }
 0x577   : > { %9221 = vmatprep.mubr.f32.mxu1 %v13436_v60 }
 0x57a   : > { %9222 = vmatmul.mubr.f32.gmra.mrb[22].mxu1 %v13443_v53 }
 0x57b   : > { %9224 = vmatprep.mubr.f32.mxu1 %v13447_v1 }
 0x57e   : > { %9225 = vmatmul.mubr.f32.gmra.mrb[24].mxu1 %v13453_v30 }
 0x57f   : > { %9227 = vmatprep.mubr.f32.mxu1 %v13461_v40 }
 0x582   : > { %9228 = vmatmul.mubr.f32.gmra.mrb[26].mxu1 %v13467_v29 }
 0x583   : > { %9230 = vmatprep.mubr.f32.mxu1 %v13478_v37 }
 0x586   : > { %9231 = vmatmul.mubr.f32.gmra.mrb[28].mxu1 %v13480_v17 }
 0x587   : > { %9233 = vmatprep.mubr.f32.mxu1 %v13485_v31 }
 0x58a   : > { %9234 = vmatmul.mubr.f32.gmra.mrb[30].mxu1 %v13487_v45 }
 0x58b   : > { %9268 = vmatprep.mubr.f32.mxu1 %v13243_v6  ;;  %v7396_v6 = vld [vmem:[%s14393_s3 + $0x530] sm:$0xff] }
 0x58e   : > { %9269 = vmatmul.mubr.f32.vlgmr.msra.gmra.mrb[0].mxu1 %v13245_v16  ;;  %v10192_v16 = vpack.c.bf16 %v7397_v21, %v7396_v6  ;;  %v13706_v6 = vld [vmem:[#allocation2 + $0x88] sm:$0xff] }
 0x58f   : > { %10183 = vmatpush3.bf16.msra.mxu1 %v10180_v0  ;;  %9271 = vmatprep.mubr.f32.mxu1 %v13268_v26  ;;  %v7398_v26 = vld [vmem:[%s14393_s3 + $0x540] sm:$0xff]  ;;  %v7405_v0 = vld [vmem:[%s14393_s3 + $0x578] sm:$0xff] }
 0x590   : > { %10185 = vmatprep.subr.bf16.mxu1 %v10184_v11 }
 0x592   : > { %9272 = vmatmul.mubr.f32.gmra.mrb[2].mxu1 %v13270_v33  ;;  %v10196_v33 = vpack.c.bf16 %v7399_v3, %v7398_v26  ;;  %v7418_v26 = vld [vmem:[%s14393_s3 + $0x6e0] sm:$0xff]  ;;  %v7419_v3 = vld [vmem:[%s14393_s3 + $0x6e8] sm:$0xff] }
 0x593   : > { %9274 = vmatprep.mubr.f32.mxu1 %v13303_v28  ;;  %10187 = vmatpush3.bf16.msra.mxu1 %v10184_v11  ;;  %v7400_v28 = vld [vmem:[%s14393_s3 + $0x550] sm:$0xff] }
 0x594   : > { %10189 = vmatprep.subr.bf16.mxu1 %v10188_v49 }
 0x596   : > { %9275 = vmatmul.mubr.f32.gmra.mrb[4].mxu1 %v13305_v27  ;;  %v10200_v27 = vpack.c.bf16 %v7401_v57, %v7400_v28  ;;  %v10236_v28 = vpack.c.bf16 %v7419_v3, %v7418_v26  ;;  %v13721_v57 = vld [vmem:[#allocation2 + $0xb0] sm:$0xff]  ;;  %v7442_v3 = vld [vmem:[%s14393_s3 + $0x5a0] sm:$0xff] }
 0x597   : > { %9277 = vmatprep.mubr.f32.mxu1 %v13329_v56  ;;  %10191 = vmatpush3.bf16.msra.mxu1 %v10188_v49  ;;  %v7402_v56 = vld [vmem:[%s14393_s3 + $0x560] sm:$0xff]  ;;  %v7417_v49 = vld [vmem:[%s14393_s3 + $0x6d8] sm:$0xff] }
 0x598   : > { %10193 = vmatprep.subr.bf16.mxu1 %v10192_v16  ;;  %v10232_v21 = vpack.c.bf16 %v7417_v49, %v7416_v7  ;;  %v7439_v49 = vld [vmem:[%s14393_s3 + $0x588] sm:$0xff] }
 0x59a   : > { %9278 = vmatmul.mubr.f32.gmra.mrb[6].mxu1 %v13331_v12  ;;  %v10204_v12 = vpack.c.bf16 %v7403_v43, %v7402_v56  ;;  %v7421_v56 = vld [vmem:[%s14393_s3 + $0x6f8] sm:$0xff] }
 0x59b   : > { %9280 = vmatprep.mubr.f32.mxu1 %v13356_v42  ;;  %10195 = vmatpush3.bf16.msra.mxu1 %v10192_v16  ;;  %v7404_v42 = vld [vmem:[%s14393_s3 + $0x570] sm:$0xff] }
 0x59c   : > { %10197 = vmatprep.subr.bf16.mxu1 %v10196_v33  ;;  %v13709_v16 = vld [vmem:[#allocation2 + $0x90] sm:$0xff] }
 0x59e   : > { %9281 = vmatmul.mubr.f32.gmra.mrb[8].mxu1 %v13358_v35  ;;  %v10208_v35 = vpack.c.bf16 %v7405_v0, %v7404_v42  ;;  %v7423_v42 = vld [vmem:[%s14393_s3 + $0x808] sm:$0xff] }
 0x59f   : > { %9283 = vmatprep.mubr.f32.mxu1 %v13373_v19  ;;  %10199 = vmatpush3.bf16.msra.mxu1 %v10196_v33  ;;  %v7406_v19 = vld [vmem:[%s14393_s3 + $0x680] sm:$0xff]  ;;  %v13718_v33 = vld [vmem:[#allocation2 + $0xa8] sm:$0xff] }
 0x5a0   : > { %10201 = vmatprep.subr.bf16.mxu1 %v10200_v27 }
 0x5a2   : > { %9284 = vmatmul.mubr.f32.gmra.mrb[10].mxu1 %v13375_v5  ;;  %v10212_v5 = vpack.c.bf16 %v7407_v51, %v7406_v19  ;;  %v7425_v19 = vld [vmem:[%s14393_s3 + $0x818] sm:$0xff] }
 0x5a3   : > { %9286 = vmatprep.mubr.f32.mxu1 %v13393_v9  ;;  %10203 = vmatpush3.bf16.msra.mxu1 %v10200_v27  ;;  %v4312_v9 = vld [vmem:[#allocation2 + $0x227] sm:$0xff]  ;;  %v7420_v27 = vld [vmem:[%s14393_s3 + $0x6f0] sm:$0xff] }
 0x5a4   : > { %10205 = vmatprep.subr.bf16.mxu1 %v10204_v12  ;;  %v10240_v43 = vpack.c.bf16 %v7421_v56, %v7420_v27  ;;  %v7445_v56 = vld [vmem:[%s14393_s3 + $0x5b8] sm:$0xff] }
 0x5a6   : > { %9287 = vmatmul.mubr.f32.gmra.mrb[12].mxu1 %v13395_v25  ;;  %v4313_v25 = vld [vmem:[#allocation2 + $0x22f] sm:$0xff] }
 0x5a7   : > { %9289 = vmatprep.mubr.f32.mxu1 %v13409_v46  ;;  %10207 = vmatpush3.bf16.msra.mxu1 %v10204_v12  ;;  %v13660_v46 = vld [vmem:[#allocation2] sm:$0xff] }
 0x5a8   : > { %10209 = vmatprep.subr.bf16.mxu1 %v10208_v35  ;;  %v7422_v12 = vld [vmem:[%s14393_s3 + $0x800] sm:$0xff] }
 0x5a9   : > { %v10244_v0 = vpack.c.bf16 %v7423_v42, %v7422_v12  ;;  %v7449_v12 = vld [vmem:[%s14393_s3 + $0x5d8] sm:$0xff]  ;;  %v11391_v42 = vld [vmem:[#allocation2 + $0xc8] sm:$0xff] }
 0x5aa   : > { %9290 = vmatmul.mubr.f32.gmra.mrb[14].mxu1 %v13411_v38 }
 0x5ab   : > { %9292 = vmatprep.mubr.f32.mxu1 %v13426_v61  ;;  %10211 = vmatpush3.bf16.msra.mxu1 %v10208_v35  ;;  %v7410_v61 = vld [vmem:[%s14393_s3 + $0x6a0] sm:$0xff]  ;;  %v7424_v35 = vld [vmem:[%s14393_s3 + $0x810] sm:$0xff] }
 0x5ac   : > { %10213 = vmatprep.subr.bf16.mxu1 %v10212_v5  ;;  %v10248_v51 = vpack.c.bf16 %v7425_v19, %v7424_v35  ;;  %v11392_v35 = vld [vmem:[#allocation2 + $0xd0] sm:$0xff] }
 0x5ad   : > { %v7452_v19 = vld [vmem:[%s14393_s3 + $0x5f0] sm:$0xff] }
 0x5ae   : > { %9293 = vmatmul.mubr.f32.gmra.mrb[16].mxu1 %v13428_v55  ;;  %v7411_v55 = vld [vmem:[%s14393_s3 + $0x6a8] sm:$0xff] }
 0x5af   : > { %9295 = vmatprep.mubr.f32.mxu1 %v13436_v60  ;;  %v13670_v60 = vld [vmem:[#allocation2 + $0x28] sm:$0xff] }
 0x5b2   : > { %9296 = vmatmul.mubr.f32.gmra.mrb[18].mxu1 %v13443_v53  ;;  %v10220_v53 = vpack.c.bf16 %v7411_v55, %v7410_v61  ;;  %v7430_v61 = vld [vmem:[%s14393_s3 + $0x840] sm:$0xff]  ;;  %v7431_v55 = vld [vmem:[%s14393_s3 + $0x848] sm:$0xff] }
 0x5b3   : > { %9298 = vmatprep.mubr.f32.mxu1 %v13447_v1  ;;  %v13673_v1 = vld [vmem:[#allocation2 + $0x30] sm:$0xff] }
 0x5b6   : > { %9299 = vmatmul.mubr.f32.gmra.mrb[20].mxu1 %v13453_v30  ;;  %v7412_v30 = vld [vmem:[%s14393_s3 + $0x6b0] sm:$0xff] }
 0x5b7   : > { %9301 = vmatprep.mubr.f32.mxu1 %v13461_v40  ;;  %v7408_v40 = vld [vmem:[%s14393_s3 + $0x690] sm:$0xff] }
 0x5ba   : > { %9302 = vmatmul.mubr.f32.gmra.mrb[22].mxu1 %v13467_v29  ;;  %v7413_v29 = vld [vmem:[%s14393_s3 + $0x6b8] sm:$0xff] }
 0x5bb   : > { %9304 = vmatprep.mubr.f32.mxu1 %v13478_v37  ;;  %v7409_v37 = vld [vmem:[%s14393_s3 + $0x698] sm:$0xff] }
 0x5bc   : > { %v10216_v38 = vpack.c.bf16 %v7409_v37, %v7408_v40  ;;  %v7428_v40 = vld [vmem:[%s14393_s3 + $0x830] sm:$0xff]  ;;  %v7429_v37 = vld [vmem:[%s14393_s3 + $0x838] sm:$0xff] }
 0x5be   : > { %9305 = vmatmul.mubr.f32.gmra.mrb[24].mxu1 %v13480_v17  ;;  %v13682_v17 = vld [vmem:[#allocation2 + $0x48] sm:$0xff] }
 0x5bf   : > { %9307 = vmatprep.mubr.f32.mxu1 %v13485_v31  ;;  %v10224_v31 = vpack.c.bf16 %v7413_v29, %v7412_v30  ;;  %v7434_v29 = vld [vmem:[%s14393_s3 + $0x860] sm:$0xff] }
 0x5c2   : > { %9308 = vmatmul.mubr.f32.gmra.mrb[26].mxu1 %v13487_v45  ;;  %v13685_v45 = vld [vmem:[#allocation2 + $0x50] sm:$0xff] }
 0x5c3   : > { %9310 = vmatprep.mubr.f32.mxu1 %v13491_v47  ;;  %v7414_v47 = vld [vmem:[%s14393_s3 + $0x6c0] sm:$0xff] }
 0x5c6   : > { %9311 = vmatmul.mubr.f32.gmra.mrb[28].mxu1 %v13493_v63  ;;  %v7415_v63 = vld [vmem:[%s14393_s3 + $0x6c8] sm:$0xff] }
 0x5c7   : > { %9313 = vmatprep.mubr.f32.mxu1 %v4312_v9  ;;  %v10228_v11 = vpack.c.bf16 %v7415_v63, %v7414_v47  ;;  %v7427_v9 = vld [vmem:[%s14393_s3 + $0x828] sm:$0xff]  ;;  %v7436_v63 = vld [vmem:[%s14393_s3 + $0x870] sm:$0xff] }
 0x5ca   : > { %9314 = vmatmul.mubr.f32.gmra.mrb[30].mxu1 %v4313_v25 }
 0x5cb   : > { %9348 = vmatprep.mubr.f32.mxu1 %v13660_v46 }
 0x5ce   : > { %9349 = vmatmul.mubr.f32.vlgmr.msra.gmra.mrb[0].mxu1 %v13660_v46 }
 0x5cf   : > { %10215 = vmatpush3.bf16.msra.mxu1 %v10212_v5  ;;  %9351 = vmatprep.mubr.f32.mxu1 %v13670_v60  ;;  %v7426_v5 = vld [vmem:[%s14393_s3 + $0x820] sm:$0xff] }
 0x5d0   : > { %10217 = vmatprep.subr.bf16.mxu1 %v10216_v38  ;;  %v10252_v25 = vpack.c.bf16 %v7427_v9, %v7426_v5  ;;  %v11393_v5 = vld [vmem:[#allocation2 + $0xf0] sm:$0xff] }
 0x5d2   : > { %9352 = vmatmul.mubr.f32.gmra.mrb[2].mxu1 %v13673_v1 }
 0x5d3   : > { %9354 = vmatprep.mubr.f32.mxu1 %v13682_v17  ;;  %10219 = vmatpush3.bf16.msra.mxu1 %v10216_v38  ;;  %v10256_v38 = vpack.c.bf16 %v7429_v37, %v7428_v40  ;;  %v13952_v37 = vld [vmem:[#allocation2 + $0x71] sm:$0xff] }
 0x5d4   : > { %10221 = vmatprep.subr.bf16.mxu1 %v10220_v53 }
 0x5d6   : > { %9355 = vmatmul.mubr.f32.gmra.mrb[4].mxu1 %v13685_v45 }
 0x5d7   : > { %9357 = vmatprep.mubr.f32.mxu1 %v13694_v23  ;;  %10223 = vmatpush3.bf16.msra.mxu1 %v10220_v53  ;;  %v7432_v53 = vld [vmem:[%s14393_s3 + $0x850] sm:$0xff] }
 0x5d8   : > { %10225 = vmatprep.subr.bf16.mxu1 %v10224_v31 }
 0x5da   : > { %9358 = vmatmul.mubr.f32.gmra.mrb[6].mxu1 %v13697_v62 }
 0x5db   : > { %9360 = vmatprep.mubr.f32.mxu1 %v13706_v6  ;;  %10227 = vmatpush3.bf16.msra.mxu1 %v10224_v31  ;;  %v7435_v31 = vld [vmem:[%s14393_s3 + $0x868] sm:$0xff] }
 0x5dc   : > { %10229 = vmatprep.subr.bf16.mxu1 %v10228_v11  ;;  %v10268_v47 = vpack.c.bf16 %v7435_v31, %v7434_v29  ;;  %v13973_v29 = vld [vmem:[#allocation2 + $0xa9] sm:$0xff] }
 0x5de   : > { %9361 = vmatmul.mubr.f32.gmra.mrb[8].mxu1 %v13709_v16 }
 0x5df   : > { %9363 = vmatprep.mubr.f32.mxu1 %v13718_v33  ;;  %10231 = vmatpush3.bf16.msra.mxu1 %v10228_v11  ;;  %v7437_v11 = vld [vmem:[%s14393_s3 + $0x878] sm:$0xff] }
 0x5e0   : > { %10233 = vmatprep.subr.bf16.mxu1 %v10232_v21  ;;  %v10272_v7 = vpack.c.bf16 %v7437_v11, %v7436_v63  ;;  %v7468_v63 = vld [vmem:[%s14393_s3 + $0x770] sm:$0xff]  ;;  %v7469_v11 = vld [vmem:[%s14393_s3 + $0x778] sm:$0xff] }
 0x5e2   : > { %9364 = vmatmul.mubr.f32.gmra.mrb[10].mxu1 %v13721_v57 }
 0x5e3   : > { %9366 = vmatprep.mubr.f32.mxu1 %v13294_v50  ;;  %10235 = vmatpush3.bf16.msra.mxu1 %v10232_v21  ;;  %v7441_v21 = vld [vmem:[%s14393_s3 + $0x598] sm:$0xff] }
 0x5e4   : > { %10237 = vmatprep.subr.bf16.mxu1 %v10236_v28 }
 0x5e6   : > { %9367 = vmatmul.mubr.f32.gmra.mrb[12].mxu1 %v13278_v13 }
 0x5e7   : > { %9369 = vmatprep.mubr.f32.mxu1 %v13312_v41  ;;  %10239 = vmatpush3.bf16.msra.mxu1 %v10236_v28  ;;  %v7443_v28 = vld [vmem:[%s14393_s3 + $0x5a8] sm:$0xff] }
 0x5e8   : > { %10241 = vmatprep.subr.bf16.mxu1 %v10240_v43  ;;  %v10284_v27 = vpack.c.bf16 %v7443_v28, %v7442_v3  ;;  %v14000_v3 = vld [vmem:[#allocation2 + $0xf1] sm:$0xff]  ;;  %v14003_v28 = vld [vmem:[#allocation2 + $0x109] sm:$0xff] }
 0x5ea   : > { %9370 = vmatmul.mubr.f32.gmra.mrb[14].mxu1 %v13300_v48 }
 0x5eb   : > { %9372 = vmatprep.mubr.f32.mxu1 %v13343_v24  ;;  %10243 = vmatpush3.bf16.msra.mxu1 %v10240_v43  ;;  %v7447_v43 = vld [vmem:[%s14393_s3 + $0x5c8] sm:$0xff] }
 0x5ec   : > { %10245 = vmatprep.subr.bf16.mxu1 %v10244_v0 }
 0x5ee   : > { %9373 = vmatmul.mubr.f32.gmra.mrb[16].mxu1 %v13336_v44 }
 0x5ef   : > { %9375 = vmatprep.mubr.f32.mxu1 %v13371_v59 }
 0x5f2   : > { %9376 = vmatmul.mubr.f32.gmra.mrb[18].mxu1 %v13364_v10 }
 0x5f3   : > { %9378 = vmatprep.mubr.f32.mxu1 %v13391_v4 }
 0x5f6   : > { %9379 = vmatmul.mubr.f32.gmra.mrb[20].mxu1 %v13384_v18 }
 0x5f7   : > { %9381 = vmatprep.mubr.f32.mxu1 %v13403_v32 }
 0x5fa   : > { %9382 = vmatmul.mubr.f32.gmra.mrb[22].mxu1 %v13398_v54 }
 0x5fb   : > { %9384 = vmatprep.mubr.f32.mxu1 %v13418_v2 }
 0x5fe   : > { %9385 = vmatmul.mubr.f32.gmra.mrb[24].mxu1 %v13414_v8 }
 0x5ff   : > { %9387 = vmatprep.mubr.f32.mxu1 %v13431_v14 }
 0x602   : > { %9388 = vmatmul.mubr.f32.gmra.mrb[26].mxu1 %v13424_v15 }
 0x603   : > { %9390 = vmatprep.mubr.f32.mxu1 %v13450_v52 }
 0x606   : > { %9391 = vmatmul.mubr.f32.gmra.mrb[28].mxu1 %v13440_v58 }
 0x607   : > { %9393 = vmatprep.mubr.f32.mxu1 %v13464_v34 }
 0x60a   : > { %9394 = vmatmul.mubr.f32.gmra.mrb[30].mxu1 %v13456_v36 }
 0x60b   : > { %9428 = vmatprep.mubr.f32.mxu1 %v13670_v60  ;;  %v10260_v60 = vpack.c.bf16 %v7431_v55, %v7430_v61  ;;  %v7465_v61 = vld [vmem:[%s14393_s3 + $0x758] sm:$0xff]  ;;  %v13961_v55 = vld [vmem:[#allocation2 + $0x89] sm:$0xff] }
 0x60e   : > { %9429 = vmatmul.mubr.f32.vlgmr.msra.gmra.mrb[0].mxu1 %v13673_v1  ;;  %v7433_v1 = vld [vmem:[%s14393_s3 + $0x858] sm:$0xff] }
 0x60f   : > { %10247 = vmatpush3.bf16.msra.mxu1 %v10244_v0  ;;  %9431 = vmatprep.mubr.f32.mxu1 %v13682_v17  ;;  %v10264_v30 = vpack.c.bf16 %v7433_v1, %v7432_v53  ;;  %v7451_v0 = vld [vmem:[%s14393_s3 + $0x5e8] sm:$0xff]  ;;  %v13964_v53 = vld [vmem:[#allocation2 + $0x91] sm:$0xff]  ;;  %v7466_v1 = vld [vmem:[%s14393_s3 + $0x760] sm:$0xff] }
 0x610   : > { %10249 = vmatprep.subr.bf16.mxu1 %v10248_v51 }
 0x612   : > { %9432 = vmatmul.mubr.f32.gmra.mrb[2].mxu1 %v13685_v45 }
 0x613   : > { %9434 = vmatprep.mubr.f32.mxu1 %v13694_v23  ;;  %10251 = vmatpush3.bf16.msra.mxu1 %v10248_v51  ;;  %v7453_v51 = vld [vmem:[%s14393_s3 + $0x5f8] sm:$0xff] }
 0x614   : > { %10253 = vmatprep.subr.bf16.mxu1 %v10252_v25  ;;  %v10304_v9 = vpack.c.bf16 %v7453_v51, %v7452_v19  ;;  %v7472_v19 = vld [vmem:[%s14393_s3 + $0x890] sm:$0xff]  ;;  %v7473_v51 = vld [vmem:[%s14393_s3 + $0x898] sm:$0xff] }
 0x616   : > { %9435 = vmatmul.mubr.f32.gmra.mrb[4].mxu1 %v13697_v62 }
 0x617   : > { %9437 = vmatprep.mubr.f32.mxu1 %v13706_v6  ;;  %10255 = vmatpush3.bf16.msra.mxu1 %v10252_v25  ;;  %v7455_v25 = vld [vmem:[%s14393_s3 + $0x708] sm:$0xff] }
 0x618   : > { %10257 = vmatprep.subr.bf16.mxu1 %v10256_v38 }
 0x61a   : > { %9438 = vmatmul.mubr.f32.gmra.mrb[6].mxu1 %v13709_v16 }
 0x61b   : > { %9440 = vmatprep.mubr.f32.mxu1 %v13718_v33  ;;  %10259 = vmatpush3.bf16.msra.mxu1 %v10256_v38  ;;  %v7464_v38 = vld [vmem:[%s14393_s3 + $0x750] sm:$0xff] }
 0x61c   : > { %10261 = vmatprep.subr.bf16.mxu1 %v10260_v60 }
 0x61e   : > { %9441 = vmatmul.mubr.f32.gmra.mrb[8].mxu1 %v13721_v57 }
 0x61f   : > { %9443 = vmatprep.mubr.f32.mxu1 %v13294_v50  ;;  %10263 = vmatpush3.bf16.msra.mxu1 %v10260_v60  ;;  %v7438_v50 = vld [vmem:[%s14393_s3 + $0x580] sm:$0xff]  ;;  %v10328_v60 = vpack.c.bf16 %v7465_v61, %v7464_v38 }
 0x620   : > { %10265 = vmatprep.subr.bf16.mxu1 %v10264_v30 }
 0x622   : > { %9444 = vmatmul.mubr.f32.gmra.mrb[10].mxu1 %v13278_v13  ;;  %v10276_v13 = vpack.c.bf16 %v7439_v49, %v7438_v50  ;;  %v10336_v50 = vpack.c.bf16 %v7469_v11, %v7468_v63  ;;  %v13988_v49 = vld [vmem:[#allocation2 + $0xd1] sm:$0xff] }
 0x623   : > { %9446 = vmatprep.mubr.f32.mxu1 %v13312_v41  ;;  %10267 = vmatpush3.bf16.msra.mxu1 %v10264_v30  ;;  %v7467_v30 = vld [vmem:[%s14393_s3 + $0x768] sm:$0xff] }
 0x624   : > { %10269 = vmatprep.subr.bf16.mxu1 %v10268_v47  ;;  %v10332_v31 = vpack.c.bf16 %v7467_v30, %v7466_v1 }
 0x626   : > { %9447 = vmatmul.mubr.f32.gmra.mrb[12].mxu1 %v13300_v48  ;;  %v7440_v48 = vld [vmem:[%s14393_s3 + $0x590] sm:$0xff] }
 0x627   : > { %9449 = vmatprep.mubr.f32.mxu1 %v13343_v24  ;;  %10271 = vmatpush3.bf16.msra.mxu1 %v10268_v47  ;;  %v10280_v26 = vpack.c.bf16 %v7441_v21, %v7440_v48  ;;  %v13976_v47 = vld [vmem:[#allocation2 + $0xb1] sm:$0xff]  ;;  %v7471_v48 = vld [vmem:[%s14393_s3 + $0x888] sm:$0xff] }
 0x628   : > { %10273 = vmatprep.subr.bf16.mxu1 %v10272_v7  ;;  %v13997_v21 = vld [vmem:[#allocation2 + $0xe9] sm:$0xff] }
 0x62a   : > { %9450 = vmatmul.mubr.f32.gmra.mrb[14].mxu1 %v13336_v44 }
 0x62b   : > { %9452 = vmatprep.mubr.f32.mxu1 %v13371_v59  ;;  %10275 = vmatpush3.bf16.msra.mxu1 %v10272_v7  ;;  %v13985_v7 = vld [vmem:[#allocation2 + $0xc9] sm:$0xff] }
 0x62c   : > { %10277 = vmatprep.subr.bf16.mxu1 %v10276_v13 }
 0x62e   : > { %9453 = vmatmul.mubr.f32.gmra.mrb[16].mxu1 %v13364_v10 }
 0x62f   : > { %9455 = vmatprep.mubr.f32.mxu1 %v13391_v4 }
 0x632   : > { %9456 = vmatmul.mubr.f32.gmra.mrb[18].mxu1 %v13384_v18 }
 0x633   : > { %9458 = vmatprep.mubr.f32.mxu1 %v13403_v32 }
 0x636   : > { %9459 = vmatmul.mubr.f32.gmra.mrb[20].mxu1 %v13398_v54 }
 0x637   : > { %9461 = vmatprep.mubr.f32.mxu1 %v13418_v2 }
 0x63a   : > { %9462 = vmatmul.mubr.f32.gmra.mrb[22].mxu1 %v13414_v8 }
 0x63b   : > { %9464 = vmatprep.mubr.f32.mxu1 %v13431_v14 }
 0x63e   : > { %9465 = vmatmul.mubr.f32.gmra.mrb[24].mxu1 %v13424_v15 }
 0x63f   : > { %9467 = vmatprep.mubr.f32.mxu1 %v13450_v52 }
 0x642   : > { %9468 = vmatmul.mubr.f32.gmra.mrb[26].mxu1 %v13440_v58 }
 0x643   : > { %9470 = vmatprep.mubr.f32.mxu1 %v13464_v34 }
 0x646   : > { %9471 = vmatmul.mubr.f32.gmra.mrb[28].mxu1 %v13456_v36 }
 0x647   : > { %9473 = vmatprep.mubr.f32.mxu1 %v13476_v20 }
 0x64a   : > { %9474 = vmatmul.mubr.f32.gmra.mrb[30].mxu1 %v13470_v39 }
 0x64b   : > { %9508 = vmatprep.mubr.f32.mxu1 %v13682_v17  ;;  %v7444_v17 = vld [vmem:[%s14393_s3 + $0x5b0] sm:$0xff] }
 0x64e   : > { %9509 = vmatmul.mubr.f32.vlgmr.msra.gmra.mrb[0].mxu1 %v13685_v45  ;;  %v10288_v45 = vpack.c.bf16 %v7445_v56, %v7444_v17  ;;  %v14009_v17 = vld [vmem:[#allocation2 + $0x129] sm:$0xff]  ;;  %v14012_v56 = vld [vmem:[#allocation2 + $0x131] sm:$0xff] }
 0x64f   : > { %10279 = vmatpush3.bf16.msra.mxu1 %v10276_v13  ;;  %9511 = vmatprep.mubr.f32.mxu1 %v13694_v23  ;;  %v7446_v23 = vld [vmem:[%s14393_s3 + $0x5c0] sm:$0xff] }
 0x650   : > { %10281 = vmatprep.subr.bf16.mxu1 %v10280_v26  ;;  %v7470_v13 = vld [vmem:[%s14393_s3 + $0x880] sm:$0xff] }
 0x652   : > { %9512 = vmatmul.mubr.f32.gmra.mrb[2].mxu1 %v13697_v62  ;;  %v10292_v62 = vpack.c.bf16 %v7447_v43, %v7446_v23  ;;  %v14018_v23 = vld [vmem:[#allocation2 + $0x151] sm:$0xff]  ;;  %v14021_v43 = vld [vmem:[#allocation2 + $0x169] sm:$0xff] }
 0x653   : > { %9514 = vmatprep.mubr.f32.mxu1 %v13706_v6  ;;  %10283 = vmatpush3.bf16.msra.mxu1 %v10280_v26  ;;  %v7448_v6 = vld [vmem:[%s14393_s3 + $0x5d0] sm:$0xff]  ;;  %v10340_v26 = vpack.c.bf16 %v7471_v48, %v7470_v13 }
 0x654   : > { %10285 = vmatprep.subr.bf16.mxu1 %v10284_v27 }
 0x656   : > { %9515 = vmatmul.mubr.f32.gmra.mrb[4].mxu1 %v13709_v16  ;;  %v10296_v16 = vpack.c.bf16 %v7449_v12, %v7448_v6  ;;  %v14027_v6 = vld [vmem:[#allocation2 + $0x189] sm:$0xff]  ;;  %v14030_v12 = vld [vmem:[#allocation2 + $0x191] sm:$0xff] }
 0x657   : > { %9517 = vmatprep.mubr.f32.mxu1 %v13718_v33  ;;  %10287 = vmatpush3.bf16.msra.mxu1 %v10284_v27  ;;  %v7450_v33 = vld [vmem:[%s14393_s3 + $0x5e0] sm:$0xff]  ;;  %v14006_v27 = vld [vmem:[#allocation2 + $0x111] sm:$0xff] }
 0x658   : > { %10289 = vmatprep.subr.bf16.mxu1 %v10288_v45 }
 0x65a   : > { %9518 = vmatmul.mubr.f32.gmra.mrb[6].mxu1 %v13721_v57  ;;  %v10300_v57 = vpack.c.bf16 %v7451_v0, %v7450_v33  ;;  %v14039_v33 = vld [vmem:[#allocation2 + $0x1c9] sm:$0xff]  ;;  %v14042_v0 = vld [vmem:[#allocation2 + $0x1d1] sm:$0xff] }
 0x65b   : > { %9520 = vmatprep.mubr.f32.mxu1 %v11391_v42  ;;  %10291 = vmatpush3.bf16.msra.mxu1 %v10288_v45  ;;  %v14015_v45 = vld [vmem:[#allocation2 + $0x149] sm:$0xff] }
 0x65c   : > { %10293 = vmatprep.subr.bf16.mxu1 %v10292_v62  ;;  %v14033_v42 = vld [vmem:[#allocation2 + $0x1a9] sm:$0xff] }
 0x65e   : > { %9521 = vmatmul.mubr.f32.gmra.mrb[8].mxu1 %v11392_v35  ;;  %v14045_v35 = vld [vmem:[#allocation2 + $0x1e9] sm:$0xff] }
 0x65f   : > { %9523 = vmatprep.mubr.f32.mxu1 %v13312_v41  ;;  %10295 = vmatpush3.bf16.msra.mxu1 %v10292_v62  ;;  %v7454_v41 = vld [vmem:[%s14393_s3 + $0x700] sm:$0xff]  ;;  %v14024_v62 = vld [vmem:[#allocation2 + $0x171] sm:$0xff] }
 0x660   : > { %10297 = vmatprep.subr.bf16.mxu1 %v10296_v16  ;;  %v10308_v40 = vpack.c.bf16 %v7455_v25, %v7454_v41  ;;  %v7475_v41 = vld [vmem:[%s14393_s3 + $0x8a8] sm:$0xff] }
 0x662   : > { %9524 = vmatmul.mubr.f32.gmra.mrb[10].mxu1 %v11393_v5  ;;  %v10344_v5 = vpack.c.bf16 %v7473_v51, %v7472_v19 }
 0x663   : > { %9526 = vmatprep.mubr.f32.mxu1 %v13343_v24  ;;  %10299 = vmatpush3.bf16.msra.mxu1 %v10296_v16  ;;  %v7456_v24 = vld [vmem:[%s14393_s3 + $0x710] sm:$0xff] }
 0x664   : > { %10301 = vmatprep.subr.bf16.mxu1 %v10300_v57  ;;  %v14036_v16 = vld [vmem:[#allocation2 + $0x1b1] sm:$0xff] }
 0x666   : > { %9527 = vmatmul.mubr.f32.gmra.mrb[12].mxu1 %v13336_v44  ;;  %v7457_v44 = vld [vmem:[%s14393_s3 + $0x718] sm:$0xff] }
 0x667   : > { %9529 = vmatprep.mubr.f32.mxu1 %v13371_v59  ;;  %10303 = vmatpush3.bf16.msra.mxu1 %v10300_v57  ;;  %v5930_v59 = vld [vmem:[#allocation2 + $0x9] sm:$0xff]  ;;  %v14048_v57 = vld [vmem:[#allocation2 + $0x1f1] sm:$0xff] }
 0x668   : > { %10305 = vmatprep.subr.bf16.mxu1 %v10304_v9 }
 0x66a   : > { %9530 = vmatmul.mubr.f32.gmra.mrb[14].mxu1 %v13364_v10  ;;  %v5931_v10 = vld [vmem:[#allocation2 + $0x11] sm:$0xff] }
 0x66b   : > { %9532 = vmatprep.mubr.f32.mxu1 %v13391_v4  ;;  %10307 = vmatpush3.bf16.msra.mxu1 %v10304_v9  ;;  %v7459_v4 = vld [vmem:[%s14393_s3 + $0x728] sm:$0xff]  ;;  %v7474_v9 = vld [vmem:[%s14393_s3 + $0x8a0] sm:$0xff] }
 0x66c   : > { %10309 = vmatprep.subr.bf16.mxu1 %v10308_v40  ;;  %v10348_v25 = vpack.c.bf16 %v7475_v41, %v7474_v9 }
 0x66e   : > { %9533 = vmatmul.mubr.f32.gmra.mrb[16].mxu1 %v13384_v18  ;;  %v10312_v18 = vpack.c.bf16 %v7457_v44, %v7456_v24  ;;  %v7478_v44 = vld [vmem:[%s14393_s3 + $0x8c0] sm:$0xff] }
 0x66f   : > { %9535 = vmatprep.mubr.f32.mxu1 %v13403_v32 }
 0x672   : > { %9536 = vmatmul.mubr.f32.gmra.mrb[18].mxu1 %v13398_v54  ;;  %v13925_v54 = vld [vmem:[#allocation2 + $0x29] sm:$0xff] }
 0x673   : > { %9538 = vmatprep.mubr.f32.mxu1 %v13418_v2  ;;  %v7460_v2 = vld [vmem:[%s14393_s3 + $0x730] sm:$0xff] }
 0x676   : > { %9539 = vmatmul.mubr.f32.gmra.mrb[20].mxu1 %v13414_v8  ;;  %v13928_v8 = vld [vmem:[#allocation2 + $0x31] sm:$0xff] }
 0x677   : > { %9541 = vmatprep.mubr.f32.mxu1 %v13431_v14  ;;  %v13937_v14 = vld [vmem:[#allocation2 + $0x49] sm:$0xff] }
 0x67a   : > { %9542 = vmatmul.mubr.f32.gmra.mrb[22].mxu1 %v13424_v15  ;;  %v7461_v15 = vld [vmem:[%s14393_s3 + $0x738] sm:$0xff] }
 0x67b   : > { %9544 = vmatprep.mubr.f32.mxu1 %v13450_v52  ;;  %v13940_v52 = vld [vmem:[#allocation2 + $0x51] sm:$0xff] }
 0x67e   : > { %9545 = vmatmul.mubr.f32.gmra.mrb[24].mxu1 %v13440_v58  ;;  %v10320_v58 = vpack.c.bf16 %v7461_v15, %v7460_v2  ;;  %v7484_v15 = vld [vmem:[%s14393_s3 + $0x8f0] sm:$0xff] }
 0x67f   : > { %9547 = vmatprep.mubr.f32.mxu1 %v13464_v34  ;;  %v7463_v34 = vld [vmem:[%s14393_s3 + $0x748] sm:$0xff] }
 0x682   : > { %9548 = vmatmul.mubr.f32.gmra.mrb[26].mxu1 %v13456_v36  ;;  %v7462_v36 = vld [vmem:[%s14393_s3 + $0x740] sm:$0xff] }
 0x683   : > { %9550 = vmatprep.mubr.f32.mxu1 %v13476_v20  ;;  %v7458_v20 = vld [vmem:[%s14393_s3 + $0x720] sm:$0xff] }
 0x684   : > { %v10316_v32 = vpack.c.bf16 %v7459_v4, %v7458_v20  ;;  %v7480_v20 = vld [vmem:[%s14393_s3 + $0x8d0] sm:$0xff]  ;;  %v7481_v4 = vld [vmem:[%s14393_s3 + $0x8d8] sm:$0xff] }
 0x686   : > { %9551 = vmatmul.mubr.f32.gmra.mrb[28].mxu1 %v13470_v39  ;;  %v13949_v39 = vld [vmem:[#allocation2 + $0x69] sm:$0xff] }
 0x687   : > { %9553 = vmatprep.mubr.f32.mxu1 %v13660_v46 }
 0x68a   : > { %9554 = vmatmul.mubr.f32.gmra.mrb[30].mxu1 %v13660_v46  ;;  %v10324_v46 = vpack.c.bf16 %v7463_v34, %v7462_v36  ;;  %v5962_v34 = vld [vmem:[#allocation2 + $0x209] sm:$0xff] }
 0x68b   : > { %9588 = vmatprep.mubr.f32.mxu1 %v5930_v59  ;;  %v7477_v59 = vld [vmem:[%s14393_s3 + $0x8b8] sm:$0xff] }
 0x68e   : > { %9589 = vmatmul.mubr.f32.vlgmr.msra.gmra.mrb[0].mxu1 %v5931_v10  ;;  %v7479_v10 = vld [vmem:[%s14393_s3 + $0x8c8] sm:$0xff] }
 0x68f   : > { %10311 = vmatpush3.bf16.msra.mxu1 %v10308_v40  ;;  %9591 = vmatprep.mubr.f32.mxu1 %v13925_v54  ;;  %v7476_v40 = vld [vmem:[%s14393_s3 + $0x8b0] sm:$0xff] }
 0x690   : > { %10313 = vmatprep.subr.bf16.mxu1 %v10312_v18  ;;  %v10352_v24 = vpack.c.bf16 %v7477_v59, %v7476_v40 }
 0x692   : > { %9592 = vmatmul.mubr.f32.gmra.mrb[2].mxu1 %v13928_v8 }
 0x693   : > { %9594 = vmatprep.mubr.f32.mxu1 %v13937_v14  ;;  %10315 = vmatpush3.bf16.msra.mxu1 %v10312_v18  ;;  %v10356_v18 = vpack.c.bf16 %v7479_v10, %v7478_v44 }
 0x694   : > { %10317 = vmatprep.subr.bf16.mxu1 %v10316_v32 }
 0x696   : > { %9595 = vmatmul.mubr.f32.gmra.mrb[4].mxu1 %v13940_v52 }
 0x697   : > { %9597 = vmatprep.mubr.f32.mxu1 %v13949_v39  ;;  %10319 = vmatpush3.bf16.msra.mxu1 %v10316_v32  ;;  %v7482_v32 = vld [vmem:[%s14393_s3 + $0x8e0] sm:$0xff] }
 0x698   : > { %10321 = vmatprep.subr.bf16.mxu1 %v10320_v58 }
 0x69a   : > { %9598 = vmatmul.mubr.f32.gmra.mrb[6].mxu1 %v13952_v37 }
 0x69b   : > { %9600 = vmatprep.mubr.f32.mxu1 %v13961_v55  ;;  %10323 = vmatpush3.bf16.msra.mxu1 %v10320_v58  ;;  %v7485_v58 = vld [vmem:[%s14393_s3 + $0x8f8] sm:$0xff] }
 0x69c   : > { %10325 = vmatprep.subr.bf16.mxu1 %v10324_v46  ;;  %v10368_v36 = vpack.c.bf16 %v7485_v58, %v7484_v15 }
 0x69e   : > { %9601 = vmatmul.mubr.f32.gmra.mrb[8].mxu1 %v13964_v53 }
 0x69f   : > { %9603 = vmatprep.mubr.f32.mxu1 %v13973_v29  ;;  %10327 = vmatpush3.bf16.msra.mxu1 %v10324_v46  ;;  %v5963_v46 = vld [vmem:[#allocation2 + $0x211] sm:$0xff] }
 0x6a0   : > { %10329 = vmatprep.subr.bf16.mxu1 %v10328_v60 }
 0x6a2   : > { %9604 = vmatmul.mubr.f32.gmra.mrb[10].mxu1 %v13976_v47 }
 0x6a3   : > { %9606 = vmatprep.mubr.f32.mxu1 %v13985_v7  ;;  %10331 = vmatpush3.bf16.msra.mxu1 %v10328_v60 }
 0x6a4   : > { %10333 = vmatprep.subr.bf16.mxu1 %v10332_v31 }
 0x6a6   : > { %9607 = vmatmul.mubr.f32.gmra.mrb[12].mxu1 %v13988_v49 }
 0x6a7   : > { %9609 = vmatprep.mubr.f32.mxu1 %v13997_v21  ;;  %10335 = vmatpush3.bf16.msra.mxu1 %v10332_v31 }
 0x6a8   : > { %10337 = vmatprep.subr.bf16.mxu1 %v10336_v50 }
 0x6aa   : > { %9610 = vmatmul.mubr.f32.gmra.mrb[14].mxu1 %v14000_v3 }
 0x6ab   : > { %9612 = vmatprep.mubr.f32.mxu1 %v14003_v28  ;;  %10339 = vmatpush3.bf16.msra.mxu1 %v10336_v50 }
 0x6ac   : > { %10341 = vmatprep.subr.bf16.mxu1 %v10340_v26 }
 0x6ae   : > { %9613 = vmatmul.mubr.f32.gmra.mrb[16].mxu1 %v14006_v27 }
 0x6af   : > { %9615 = vmatprep.mubr.f32.mxu1 %v14009_v17 }
 0x6b2   : > { %9616 = vmatmul.mubr.f32.gmra.mrb[18].mxu1 %v14012_v56 }
 0x6b3   : > { %9618 = vmatprep.mubr.f32.mxu1 %v14015_v45 }
 0x6b6   : > { %9619 = vmatmul.mubr.f32.gmra.mrb[20].mxu1 %v14018_v23 }
 0x6b7   : > { %9621 = vmatprep.mubr.f32.mxu1 %v14021_v43 }
 0x6ba   : > { %9622 = vmatmul.mubr.f32.gmra.mrb[22].mxu1 %v14024_v62 }
 0x6bb   : > { %9624 = vmatprep.mubr.f32.mxu1 %v14027_v6 }
 0x6be   : > { %9625 = vmatmul.mubr.f32.gmra.mrb[24].mxu1 %v14030_v12 }
 0x6bf   : > { %9627 = vmatprep.mubr.f32.mxu1 %v14033_v42 }
 0x6c2   : > { %9628 = vmatmul.mubr.f32.gmra.mrb[26].mxu1 %v14036_v16 }
 0x6c3   : > { %9630 = vmatprep.mubr.f32.mxu1 %v14039_v33 }
 0x6c6   : > { %9631 = vmatmul.mubr.f32.gmra.mrb[28].mxu1 %v14042_v0 }
 0x6c7   : > { %9633 = vmatprep.mubr.f32.mxu1 %v14045_v35 }
 0x6ca   : > { %9634 = vmatmul.mubr.f32.gmra.mrb[30].mxu1 %v14048_v57 }
 0x6cb   : > { %9668 = vmatprep.mubr.f32.mxu1 %v13925_v54  ;;  %v10360_v54 = vpack.c.bf16 %v7481_v4, %v7480_v20 }
 0x6ce   : > { %9669 = vmatmul.mubr.f32.vlgmr.msra.gmra.mrb[0].mxu1 %v13928_v8  ;;  %v7483_v8 = vld [vmem:[%s14393_s3 + $0x8e8] sm:$0xff] }
 0x6cf   : > { %10343 = vmatpush3.bf16.msra.mxu1 %v10340_v26  ;;  %9671 = vmatprep.mubr.f32.mxu1 %v13937_v14  ;;  %v10364_v2 = vpack.c.bf16 %v7483_v8, %v7482_v32 }
 0x6d0   : > { %10345 = vmatprep.subr.bf16.mxu1 %v10344_v5 }
 0x6d2   : > { %9672 = vmatmul.mubr.f32.gmra.mrb[2].mxu1 %v13940_v52 }
 0x6d3   : > { %9674 = vmatprep.mubr.f32.mxu1 %v13949_v39  ;;  %10347 = vmatpush3.bf16.msra.mxu1 %v10344_v5 }
 0x6d4   : > { %10349 = vmatprep.subr.bf16.mxu1 %v10348_v25 }
 0x6d6   : > { %9675 = vmatmul.mubr.f32.gmra.mrb[4].mxu1 %v13952_v37 }
 0x6d7   : > { %9677 = vmatprep.mubr.f32.mxu1 %v13961_v55  ;;  %10351 = vmatpush3.bf16.msra.mxu1 %v10348_v25 }
 0x6d8   : > { %10353 = vmatprep.subr.bf16.mxu1 %v10352_v24 }
 0x6da   : > { %9678 = vmatmul.mubr.f32.gmra.mrb[6].mxu1 %v13964_v53 }
 0x6db   : > { %9680 = vmatprep.mubr.f32.mxu1 %v13973_v29  ;;  %10355 = vmatpush3.bf16.msra.mxu1 %v10352_v24 }
 0x6dc   : > { %10357 = vmatprep.subr.bf16.mxu1 %v10356_v18 }
 0x6de   : > { %9681 = vmatmul.mubr.f32.gmra.mrb[8].mxu1 %v13976_v47 }
 0x6df   : > { %9683 = vmatprep.mubr.f32.mxu1 %v13985_v7  ;;  %10359 = vmatpush3.bf16.msra.mxu1 %v10356_v18 }
 0x6e0   : > { %10361 = vmatprep.subr.bf16.mxu1 %v10360_v54 }
 0x6e2   : > { %9684 = vmatmul.mubr.f32.gmra.mrb[10].mxu1 %v13988_v49 }
 0x6e3   : > { %9686 = vmatprep.mubr.f32.mxu1 %v13997_v21  ;;  %10363 = vmatpush3.bf16.msra.mxu1 %v10360_v54 }
 0x6e4   : > { %10365 = vmatprep.subr.bf16.mxu1 %v10364_v2 }
 0x6e6   : > { %9687 = vmatmul.mubr.f32.gmra.mrb[12].mxu1 %v14000_v3 }
 0x6e7   : > { %9689 = vmatprep.mubr.f32.mxu1 %v14003_v28  ;;  %10367 = vmatpush3.bf16.msra.mxu1 %v10364_v2 }
 0x6e8   : > { %10369 = vmatprep.subr.bf16.mxu1 %v10368_v36 }
 0x6ea   : > { %9690 = vmatmul.mubr.f32.gmra.mrb[14].mxu1 %v14006_v27 }
 0x6eb   : > { %9692 = vmatprep.mubr.f32.mxu1 %v14009_v17  ;;  %10371 = vmatpush3.bf16.msra.mxu1 %v10368_v36 }
 0x6ee   : > { %9693 = vmatmul.mubr.f32.gmra.mrb[16].mxu1 %v14012_v56 }
 0x6ef   : > { %9695 = vmatprep.mubr.f32.mxu1 %v14015_v45 }
 0x6f2   : > { %9696 = vmatmul.mubr.f32.gmra.mrb[18].mxu1 %v14018_v23 }
 0x6f3   : > { %9698 = vmatprep.mubr.f32.mxu1 %v14021_v43 }
 0x6f6   : > { %9699 = vmatmul.mubr.f32.gmra.mrb[20].mxu1 %v14024_v62 }
 0x6f7   : > { %9701 = vmatprep.mubr.f32.mxu1 %v14027_v6 }
 0x6fa   : > { %9702 = vmatmul.mubr.f32.gmra.mrb[22].mxu1 %v14030_v12 }
 0x6fb   : > { %9704 = vmatprep.mubr.f32.mxu1 %v14033_v42 }
 0x6fe   : > { %9705 = vmatmul.mubr.f32.gmra.mrb[24].mxu1 %v14036_v16 }
 0x6ff   : > { %9707 = vmatprep.mubr.f32.mxu1 %v14039_v33 }
 0x702   : > { %9708 = vmatmul.mubr.f32.gmra.mrb[26].mxu1 %v14042_v0 }
 0x703   : > { %9710 = vmatprep.mubr.f32.mxu1 %v14045_v35 }
 0x706   : > { %9711 = vmatmul.mubr.f32.gmra.mrb[28].mxu1 %v14048_v57 }
 0x707   : > { %9713 = vmatprep.mubr.f32.mxu1 %v5962_v34 }
 0x70a   : > { %9714 = vmatmul.mubr.f32.gmra.mrb[30].mxu1 %v5963_v46 }
 0x70b   : > { %9748 = vmatprep.mubr.f32.mxu1 %v13937_v14  ;;  %v5964_v14 = vld [vmem:[#allocation2 + $0x229] sm:$0xff] }
 0x70e   : > { %9749 = vmatmul.mubr.f32.vlgmr.msra.gmra.mrb[0].mxu1 %v13940_v52  ;;  %v5965_v52 = vld [vmem:[#allocation2 + $0x231] sm:$0xff] }
 0x70f   : > { %9751 = vmatprep.mubr.f32.mxu1 %v13949_v39  ;;  %v14154_v39 = vld [vmem:[%s14394_s4 + $0x1] ss:$0 sm:$0xff] }
 0x712   : > { %9752 = vmatmul.mubr.f32.gmra.mrb[2].mxu1 %v13952_v37 }
 0x713   : > { %9754 = vmatprep.mubr.f32.mxu1 %v13961_v55 }
 0x716   : > { %9755 = vmatmul.mubr.f32.gmra.mrb[4].mxu1 %v13964_v53 }
 0x717   : > { %9757 = vmatprep.mubr.f32.mxu1 %v13973_v29 }
 0x71a   : > { %9758 = vmatmul.mubr.f32.gmra.mrb[6].mxu1 %v13976_v47 }
 0x71b   : > { %9760 = vmatprep.mubr.f32.mxu1 %v13985_v7 }
 0x71e   : > { %9761 = vmatmul.mubr.f32.gmra.mrb[8].mxu1 %v13988_v49 }
 0x71f   : > { %9763 = vmatprep.mubr.f32.mxu1 %v13997_v21 }
 0x722   : > { %9764 = vmatmul.mubr.f32.gmra.mrb[10].mxu1 %v14000_v3 }
 0x723   : > { %9766 = vmatprep.mubr.f32.mxu1 %v14003_v28 }
 0x726   : > { %9767 = vmatmul.mubr.f32.gmra.mrb[12].mxu1 %v14006_v27 }
 0x727   : > { %9769 = vmatprep.mubr.f32.mxu1 %v14009_v17 }
 0x72a   : > { %9770 = vmatmul.mubr.f32.gmra.mrb[14].mxu1 %v14012_v56 }
 0x72b   : > { %9772 = vmatprep.mubr.f32.mxu1 %v14015_v45 }
 0x72e   : > { %9773 = vmatmul.mubr.f32.gmra.mrb[16].mxu1 %v14018_v23 }
 0x72f   : > { %9775 = vmatprep.mubr.f32.mxu1 %v14021_v43 }
 0x732   : > { %9776 = vmatmul.mubr.f32.gmra.mrb[18].mxu1 %v14024_v62 }
 0x733   : > { %9778 = vmatprep.mubr.f32.mxu1 %v14027_v6 }
 0x736   : > { %9779 = vmatmul.mubr.f32.gmra.mrb[20].mxu1 %v14030_v12 }
 0x737   : > { %9781 = vmatprep.mubr.f32.mxu1 %v14033_v42 }
 0x73a   : > { %9782 = vmatmul.mubr.f32.gmra.mrb[22].mxu1 %v14036_v16 }
 0x73b   : > { %9784 = vmatprep.mubr.f32.mxu1 %v14039_v33 }
 0x73e   : > { %9785 = vmatmul.mubr.f32.gmra.mrb[24].mxu1 %v14042_v0 }
 0x73f   : > { %9787 = vmatprep.mubr.f32.mxu1 %v14045_v35 }
 0x742   : > { %9788 = vmatmul.mubr.f32.gmra.mrb[26].mxu1 %v14048_v57 }
 0x743   : > { %9790 = vmatprep.mubr.f32.mxu1 %v5962_v34 }
 0x746   : > { %9791 = vmatmul.mubr.f32.gmra.mrb[28].mxu1 %v5963_v46 }
 0x747   : > { %9793 = vmatprep.mubr.f32.mxu1 %v5964_v14 }
 0x74a   : > { %9794 = vmatmul.mubr.f32.gmra.mrb[30].mxu1 %v5965_v52 }
 0x7e1   : > { %v9750_v37 = vpop.f32.mrb[0].mxu1 }
 0x7e2   : > { %v14157_v38 = vadd.f32 %v9750_v37, %v14154_v39  ;;  %v6597_v61 = vpop.f32.mrb[1].mxu1 }
 0x7e3   : > { %v14160_v55 = vadd.f32 %v14154_v39, %v6597_v61 }
 0x7e4   : > { %v6829_v60 = vsub.f32 0.0, %v14157_v38 }
 0x7e5   : > { %v6828_v53 = vsub.f32 0.0, %v14160_v55  ;;  %v9753_v1 = vpop.f32.mrb[2].mxu1 }
 0x7e6   : > { %v6862_v30 = vmul.f32 1.442695, %v6829_v60  ;;  %v14165_v29 = vadd.f32 %v9753_v1, %v14154_v39  ;;  %v6607_v31 = vpop.f32.mrb[3].mxu1 }
 0x7e7   : > { %v6860_v47 = vmul.f32 1.442695, %v6828_v53  ;;  %v14168_v63 = vadd.f32 %v14154_v39, %v6607_v31 }
 0x7e8   : > { %11237 = vpow2.f32 %v6862_v30  ;;  %v6831_v11 = vsub.f32 0.0, %v14165_v29 }
 0x7e9   : > { %11239 = vpow2.f32 %v6860_v47  ;;  %v6830_v7 = vsub.f32 0.0, %v14168_v63  ;;  %v9756_v50 = vpop.f32.mrb[4].mxu1 }
 0x7ea   : > { %v6866_v49 = vmul.f32 1.442695, %v6831_v11  ;;  %v14173_v13 = vadd.f32 %v9756_v50, %v14154_v39  ;;  %v6617_v48 = vpop.f32.mrb[5].mxu1 }
 0x7eb   : > { %v6864_v21 = vmul.f32 1.442695, %v6830_v7  ;;  %v14176_v26 = vadd.f32 %v14154_v39, %v6617_v48 }
 0x7ec   : > { %11241 = vpow2.f32 %v6866_v49  ;;  %v6833_v3 = vsub.f32 0.0, %v14173_v13 }
 0x7ed   : > { %11243 = vpow2.f32 %v6864_v21  ;;  %v6832_v28 = vsub.f32 0.0, %v14176_v26  ;;  %v9759_v27 = vpop.f32.mrb[6].mxu1 }
 0x7ee   : > { %v6870_v17 = vmul.f32 1.442695, %v6833_v3  ;;  %v14181_v56 = vadd.f32 %v9759_v27, %v14154_v39  ;;  %v6627_v45 = vpop.f32.mrb[7].mxu1 }
 0x7ef   : > { %v6868_v23 = vmul.f32 1.442695, %v6832_v28  ;;  %v14184_v43 = vadd.f32 %v14154_v39, %v6627_v45 }
 0x7f0   : > { %11245 = vpow2.f32 %v6870_v17  ;;  %v6835_v62 = vsub.f32 0.0, %v14181_v56 }
 0x7f1   : > { %11247 = vpow2.f32 %v6868_v23  ;;  %v6834_v6 = vsub.f32 0.0, %v14184_v43  ;;  %v9762_v12 = vpop.f32.mrb[8].mxu1 }
 0x7f2   : > { %v11238_v42 = vpop.eup %11237  ;;  %v6874_v16 = vmul.f32 1.442695, %v6835_v62  ;;  %v14189_v33 = vadd.f32 %v9762_v12, %v14154_v39  ;;  %v6637_v0 = vpop.f32.mrb[9].mxu1 }
 0x7f3   : > { %v11240_v35 = vpop.eup %11239  ;;  %v6925_v57 = vadd.f32 1.0, %v11238_v42  ;;  %v6872_v19 = vmul.f32 1.442695, %v6834_v6  ;;  %v14192_v51 = vadd.f32 %v14154_v39, %v6637_v0  ;;  %v14471_v0 = vld [vmem:[#allocation4_spill] sm:$0xff] }
 0x7f4   : > { %v6924_v5 = vadd.f32 1.0, %v11240_v35  ;;  %11249 = vpow2.f32 %v6874_v16  ;;  %v6837_v9 = vsub.f32 0.0, %v14189_v33 }
 0x7f5   : > { %11251 = vrcp.f32 %v6925_v57  ;;  %v6836_v41 = vsub.f32 0.0, %v14192_v51  ;;  %v9765_v25 = vpop.f32.mrb[10].mxu1 }
 0x7f6   : > { %v11242_v40 = vpop.eup %11241  ;;  %11253 = vrcp.f32 %v6924_v5  ;;  %v6878_v59 = vmul.f32 1.442695, %v6837_v9  ;;  %v14197_v24 = vadd.f32 %v9765_v25, %v14154_v39  ;;  %v6647_v44 = vpop.f32.mrb[11].mxu1 }
 0x7f7   : > { %v11244_v10 = vpop.eup %11243  ;;  %v6927_v18 = vadd.f32 1.0, %v11242_v40  ;;  %11255 = vpow2.f32 %v6872_v19  ;;  %v6876_v20 = vmul.f32 1.442695, %v6836_v41  ;;  %v14200_v4 = vadd.f32 %v14154_v39, %v6647_v44 }
 0x7f8   : > { %v6926_v54 = vadd.f32 1.0, %v11244_v10  ;;  %11257 = vpow2.f32 %v6878_v59  ;;  %v6839_v32 = vsub.f32 0.0, %v14197_v24  ;;  %v14472_v10 = vld [vmem:[#allocation11_spill] sm:$0xff] }
 0x7f9   : > { %11259 = vrcp.f32 %v6927_v18  ;;  %v6838_v8 = vsub.f32 0.0, %v14200_v4  ;;  %v9768_v2 = vpop.f32.mrb[12].mxu1 }
 0x7fa   : > { %v11246_v15 = vpop.eup %11245  ;;  %11261 = vrcp.f32 %v6926_v54  ;;  %v6882_v58 = vmul.f32 1.442695, %v6839_v32  ;;  %v14205_v36 = vadd.f32 %v9768_v2, %v14154_v39  ;;  %v6657_v34 = vpop.f32.mrb[13].mxu1 }
 0x7fb   : > { %v11248_v46 = vpop.eup %11247  ;;  %v6929_v14 = vadd.f32 1.0, %v11246_v15  ;;  %11263 = vpow2.f32 %v6876_v20  ;;  %v6880_v52 = vmul.f32 1.442695, %v6838_v8  ;;  %v14208_v37 = vadd.f32 %v14154_v39, %v6657_v34  ;;  %v14473_v8 = vld [vmem:[#allocation5_spill] sm:$0xff] }
 0x7fc   : > { %v6928_v61 = vadd.f32 1.0, %v11248_v46  ;;  %11265 = vpow2.f32 %v6882_v58  ;;  %v6841_v60 = vsub.f32 0.0, %v14205_v36 }
 0x7fd   : > { %11267 = vrcp.f32 %v6929_v14  ;;  %v6840_v53 = vsub.f32 0.0, %v14208_v37  ;;  %v9771_v1 = vpop.f32.mrb[14].mxu1 }
 0x7fe   : > { %v11250_v30 = vpop.eup %11249  ;;  %11269 = vrcp.f32 %v6928_v61  ;;  %v6886_v31 = vmul.f32 1.442695, %v6841_v60  ;;  %v14213_v47 = vadd.f32 %v9771_v1, %v14154_v39  ;;  %v6667_v11 = vpop.f32.mrb[15].mxu1 }
 0x7ff   : > { %v11252_v7 = vpop.eup %11251  ;;  %v6931_v50 = vadd.f32 1.0, %v11250_v30  ;;  %11271 = vpow2.f32 %v6880_v52  ;;  %v6884_v49 = vmul.f32 1.442695, %v6840_v53  ;;  %v14216_v48 = vadd.f32 %v14154_v39, %v6667_v11  ;;  %v14474_v30 = vld [vmem:[#allocation12_spill] sm:$0xff] }
 0x800   : > { %v11254_v21 = vpop.eup %11253  ;;  %v7021_v3 = vmul.f32 %v11252_v7, %v14157_v38  ;;  %11273 = vpow2.f32 %v6886_v31  ;;  %v6843_v28 = vsub.f32 0.0, %v14213_v47 }
 0x801   : > { %v11256_v27 = vpop.eup %11255  ;;  %v7020_v17 = vmul.f32 %v11254_v21, %v14160_v55  ;;  %11275 = vrcp.f32 %v6931_v50  ;;  %v6842_v45 = vsub.f32 0.0, %v14216_v48  ;;  %v9774_v23 = vpop.f32.mrb[16].mxu1 }
 0x802   : > { %v11258_v62 = vpop.eup %11257  ;;  %v7085_v38 = vadd.f32 %v7021_v3, %v11984_v22  ;;  %v6930_v6 = vadd.f32 1.0, %v11256_v27  ;;  %11277 = vpow2.f32 %v6884_v49  ;;  %v6890_v12 = vmul.f32 1.442695, %v6843_v28  ;;  %v6677_v42 = vpop.f32.mrb[17].mxu1  ;;  %v14475_v49 = vld [vmem:[#allocation6_spill] sm:$0xff] }
 0x803   : > { %v11260_v16 = vpop.eup %11259  ;;  %v7084_v35 = vadd.f32 %v7020_v17, %v14471_v0  ;;  %v6933_v57 = vadd.f32 1.0, %v11258_v62  ;;  %v6888_v19 = vmul.f32 1.442695, %v6842_v45  ;;  %v14232_v55 = vadd.f32 %v9774_v23, %v14154_v39 }
 0x804   : > { %v11262_v5 = vpop.eup %11261  ;;  %7117 = vst [vmem:[%s14225_s23 + $0x8] sm:$0xff] %v7085_v38  ;;  %v7023_v9 = vmul.f32 %v11260_v16, %v14165_v29  ;;  %11279 = vrcp.f32 %v6930_v6  ;;  %v14237_v22 = vadd.f32 %v14154_v39, %v6677_v42  ;;  %v14476_v42 = vld [vmem:[#allocation13_spill] sm:$0xff] }
 0x805   : > { %v11264_v41 = vpop.eup %11263  ;;  %7116 = vst [vmem:[%s14225_s23] sm:$0xff] %v7084_v35  ;;  %v7022_v25 = vmul.f32 %v11262_v5, %v14168_v63  ;;  %11281 = vrcp.f32 %v6933_v57  ;;  %v6845_v40 = vsub.f32 0.0, %v14232_v55  ;;  %v9777_v59 = vpop.f32.mrb[18].mxu1 }
 0x806   : > { %v11266_v44 = vpop.eup %11265  ;;  %v7087_v18 = vadd.f32 %v7023_v9, %v14472_v10  ;;  %v6932_v20 = vadd.f32 1.0, %v11264_v41  ;;  %11283 = vpow2.f32 %v6890_v12  ;;  %v6844_v29 = vsub.f32 0.0, %v14237_v22  ;;  %v6687_v54 = vpop.f32.mrb[19].mxu1  ;;  %v14477_v10 = vld [vmem:[#allocation7_spill] sm:$0xff] }
 0x807   : > { %v11268_v32 = vpop.eup %11267  ;;  %v7086_v2 = vadd.f32 %v7022_v25, %v14473_v8  ;;  %v6935_v15 = vadd.f32 1.0, %v11266_v44  ;;  %11285 = vpow2.f32 %v6888_v19  ;;  %v6894_v63 = vmul.f32 1.442695, %v6845_v40  ;;  %v14478_v8 = vld [vmem:[#allocation14_spill] sm:$0xff] }
 0x808   : > { %v11270_v58 = vpop.eup %11269  ;;  %7119 = vst [vmem:[%s14225_s23 + $0x18] sm:$0xff] %v7087_v18  ;;  %v7025_v34 = vmul.f32 %v11268_v32, %v14173_v13  ;;  %11287 = vrcp.f32 %v6932_v20  ;;  %v6892_v46 = vmul.f32 1.442695, %v6844_v29  ;;  %v14248_v14 = vadd.f32 %v9777_v59, %v14154_v39 }
 0x809   : > { %v11272_v52 = vpop.eup %11271  ;;  %7118 = vst [vmem:[%s14225_s23 + $0x10] sm:$0xff] %v7086_v2  ;;  %v7024_v61 = vmul.f32 %v11270_v58, %v14176_v26  ;;  %11289 = vrcp.f32 %v6935_v15  ;;  %v14253_v60 = vadd.f32 %v14154_v39, %v6687_v54  ;;  %v9780_v53 = vpop.f32.mrb[20].mxu1 }
 0x80a   : > { %v11274_v1 = vpop.eup %11273  ;;  %v7089_v31 = vadd.f32 %v7025_v34, %v14474_v30  ;;  %v6934_v13 = vadd.f32 1.0, %v11272_v52  ;;  %11291 = vpow2.f32 %v6894_v63  ;;  %v6847_v11 = vsub.f32 0.0, %v14248_v14  ;;  %v6697_v7 = vpop.f32.mrb[21].mxu1 }
 0x80b   : > { %v11276_v50 = vpop.eup %11275  ;;  %v7088_v21 = vadd.f32 %v7024_v61, %v14475_v49  ;;  %v6937_v3 = vadd.f32 1.0, %v11274_v1  ;;  %11293 = vpow2.f32 %v6892_v46  ;;  %v6846_v26 = vsub.f32 0.0, %v14253_v60  ;;  %v14480_v49 = vld [vmem:[#allocation15_spill] sm:$0xff] }
 0x80c   : > { %v11278_v28 = vpop.eup %11277  ;;  %7121 = vst [vmem:[%s14225_s23 + $0x28] sm:$0xff] %v7089_v31  ;;  %v7027_v27 = vmul.f32 %v11276_v50, %v14181_v56  ;;  %11295 = vrcp.f32 %v6934_v13  ;;  %v6898_v17 = vmul.f32 1.442695, %v6847_v11  ;;  %v14262_v45 = vadd.f32 %v9780_v53, %v14154_v39  ;;  %v14479_v31 = vld [vmem:[#allocation9_spill] sm:$0xff] }
 0x80d   : > { %7120 = vst [vmem:[%s14225_s23 + $0x20] sm:$0xff] %v7088_v21  ;;  %11297 = vrcp.f32 %v6937_v3  ;;  %v6936_v23 = vadd.f32 1.0, %v11278_v28  ;;  %v6896_v62 = vmul.f32 1.442695, %v6846_v26  ;;  %v14266_v38 = vadd.f32 %v14154_v39, %v6697_v7  ;;  %v9783_v6 = vpop.f32.mrb[22].mxu1 }
 0x80e   : > { %v11280_v12 = vpop.eup %11279  ;;  %v7091_v16 = vadd.f32 %v7027_v27, %v14476_v42  ;;  %11299 = vpow2.f32 %v6898_v17  ;;  %v6849_v56 = vsub.f32 0.0, %v14262_v45  ;;  %v14271_v0 = vadd.f32 %v9783_v6, %v14154_v39  ;;  %v6707_v35 = vpop.f32.mrb[23].mxu1 }
 0x80f   : > { %v11282_v57 = vpop.eup %11281  ;;  %v7026_v19 = vmul.f32 %v11280_v12, %v14184_v43  ;;  %11301 = vrcp.f32 %v6936_v23  ;;  %v6848_v5 = vsub.f32 0.0, %v14266_v38  ;;  %v14276_v9 = vadd.f32 %v14154_v39, %v6707_v35 }
 0x810   : > { %v11284_v41 = vpop.eup %11283  ;;  %7123 = vst [vmem:[%s14225_s23 + $0x38] sm:$0xff] %v7091_v16  ;;  %v7029_v25 = vmul.f32 %v11282_v57, %v14189_v33  ;;  %11303 = vpow2.f32 %v6896_v62  ;;  %v6902_v40 = vmul.f32 1.442695, %v6849_v56  ;;  %v6851_v59 = vsub.f32 0.0, %v14271_v0  ;;  %v14481_v56 = vld [vmem:[#allocation10_spill] sm:$0xff] }
 0x811   : > { %v11286_v44 = vpop.eup %11285  ;;  %v7090_v18 = vadd.f32 %v7026_v19, %v14477_v10  ;;  %v6939_v20 = vadd.f32 1.0, %v11284_v41  ;;  %v6900_v43 = vmul.f32 1.442695, %v6848_v5  ;;  %v6850_v29 = vsub.f32 0.0, %v14276_v9  ;;  %v9786_v54 = vpop.f32.mrb[24].mxu1  ;;  %v14482_v41 = vld [vmem:[#allocation16_spill] sm:$0xff] }
 0x812   : > { %v11288_v32 = vpop.eup %11287  ;;  %v7093_v2 = vadd.f32 %v7029_v25, %v14478_v8  ;;  %v6938_v15 = vadd.f32 1.0, %v11286_v44  ;;  %11305 = vpow2.f32 %v6902_v40  ;;  %v6906_v33 = vmul.f32 1.442695, %v6851_v59  ;;  %v6717_v63 = vpop.f32.mrb[25].mxu1 }
 0x813   : > { %v11290_v58 = vpop.eup %11289  ;;  %7122 = vst [vmem:[%s14225_s23 + $0x30] sm:$0xff] %v7090_v18  ;;  %v7028_v34 = vmul.f32 %v11288_v32, %v14192_v51  ;;  %11307 = vrcp.f32 %v6939_v20  ;;  %v14287_v46 = vadd.f32 %v9786_v54, %v14154_v39  ;;  %v6904_v53 = vmul.f32 1.442695, %v6850_v29 }
 0x814   : > { %v11292_v52 = vpop.eup %11291  ;;  %7125 = vst [vmem:[%s14225_s23 + $0x48] sm:$0xff] %v7093_v2  ;;  %v7031_v61 = vmul.f32 %v11290_v58, %v14197_v24  ;;  %11309 = vrcp.f32 %v6938_v15  ;;  %v14292_v1 = vadd.f32 %v14154_v39, %v6717_v63 }
 0x815   : > { %v11294_v30 = vpop.eup %11293  ;;  %v7092_v13 = vadd.f32 %v7028_v34, %v14479_v31  ;;  %v6941_v11 = vadd.f32 1.0, %v11292_v52  ;;  %11311 = vpow2.f32 %v6900_v43  ;;  %v6853_v51 = vsub.f32 0.0, %v14287_v46  ;;  %v9789_v7 = vpop.f32.mrb[26].mxu1  ;;  %v14483_v43 = vld [vmem:[#allocation17_spill] sm:$0xff] }
 0x816   : > { %v11296_v50 = vpop.eup %11295  ;;  %v7095_v21 = vadd.f32 %v7031_v61, %v14480_v49  ;;  %v6940_v3 = vadd.f32 1.0, %v11294_v30  ;;  %11313 = vpow2.f32 %v6906_v33  ;;  %v6852_v24 = vsub.f32 0.0, %v14292_v1  ;;  %v6727_v26 = vpop.f32.mrb[27].mxu1  ;;  %v14485_v49 = vld [vmem:[#allocation19_spill] sm:$0xff] }
 0x817   : > { %v11298_v28 = vpop.eup %11297  ;;  %7124 = vst [vmem:[%s14225_s23 + $0x40] sm:$0xff] %v7092_v13  ;;  %v7030_v27 = vmul.f32 %v11296_v50, %v14200_v4  ;;  %11315 = vrcp.f32 %v6941_v11  ;;  %v6910_v17 = vmul.f32 1.442695, %v6853_v51  ;;  %v14301_v23 = vadd.f32 %v9789_v7, %v14154_v39  ;;  %v14484_v11 = vld [vmem:[#allocation18_spill] sm:$0xff] }
 0x818   : > { %v11300_v62 = vpop.eup %11299  ;;  %7127 = vst [vmem:[%s14225_s23 + $0x58] sm:$0xff] %v7095_v21  ;;  %v7033_v6 = vmul.f32 %v11298_v28, %v14205_v36  ;;  %11317 = vrcp.f32 %v6940_v3  ;;  %v6908_v12 = vmul.f32 1.442695, %v6852_v24  ;;  %v14306_v42 = vadd.f32 %v14154_v39, %v6727_v26 }
 0x819   : > { %v11302_v16 = vpop.eup %11301  ;;  %v7094_v35 = vadd.f32 %v7030_v27, %v14481_v56  ;;  %v6943_v57 = vadd.f32 1.0, %v11300_v62  ;;  %11319 = vpow2.f32 %v6904_v53  ;;  %v6855_v4 = vsub.f32 0.0, %v14301_v23  ;;  %v9792_v19 = vpop.f32.mrb[28].mxu1 }
 0x81a   : > { %v11304_v5 = vpop.eup %11303  ;;  %v7097_v25 = vadd.f32 %v7033_v6, %v14482_v41  ;;  %v7032_v36 = vmul.f32 %v11302_v16, %v14208_v37  ;;  %11321 = vpow2.f32 %v6910_v17  ;;  %v6854_v40 = vsub.f32 0.0, %v14306_v42  ;;  %v6737_v59 = vpop.f32.mrb[29].mxu1  ;;  %v14486_v6 = vld [vmem:[#allocation20_spill] sm:$0xff] }
 0x81b   : > { %7126 = vst [vmem:[%s14225_s23 + $0x50] sm:$0xff] %v7094_v35  ;;  %11323 = vrcp.f32 %v6943_v57  ;;  %v6942_v44 = vadd.f32 1.0, %v11304_v5  ;;  %v6914_v10 = vmul.f32 1.442695, %v6855_v4  ;;  %v14315_v18 = vadd.f32 %v9792_v19, %v14154_v39  ;;  %v14487_v57 = vld [vmem:[#allocation21_spill] sm:$0xff] }
 0x81c   : > { %v11306_v20 = vpop.eup %11305  ;;  %7129 = vst [vmem:[%s14225_s23 + $0x68] sm:$0xff] %v7097_v25  ;;  %v7096_v29 = vadd.f32 %v7032_v36, %v14483_v43  ;;  %11325 = vpow2.f32 %v6908_v12  ;;  %v6912_v54 = vmul.f32 1.442695, %v6854_v40  ;;  %v14320_v37 = vadd.f32 %v14154_v39, %v6737_v59  ;;  %v14488_v36 = vld [vmem:[#allocation22_spill] sm:$0xff] }
 0x81d   : > { %v11308_v32 = vpop.eup %11307  ;;  %11327 = vrcp.f32 %v6942_v44  ;;  %v6945_v8 = vadd.f32 1.0, %v11306_v20  ;;  %v6857_v2 = vsub.f32 0.0, %v14315_v18  ;;  %v9795_v15 = vpop.f32.mrb[30].mxu1  ;;  %v14489_v43 = vld [vmem:[#allocation30_spill] sm:$0xff] }
 0x81e   : > { %v11310_v33 = vpop.eup %11309  ;;  %7128 = vst [vmem:[%s14225_s23 + $0x60] sm:$0xff] %v7096_v29  ;;  %v7035_v63 = vmul.f32 %v11308_v32, %v14213_v47  ;;  %11329 = vpow2.f32 %v6914_v10  ;;  %v6856_v58 = vsub.f32 0.0, %v14320_v37  ;;  %v14327_v34 = vadd.f32 %v9795_v15, %v14154_v39  ;;  %v6747_v52 = vpop.f32.mrb[31].mxu1 }
 0x81f   : > { %v11312_v61 = vpop.eup %11311  ;;  %v7034_v53 = vmul.f32 %v11310_v33, %v14216_v48  ;;  %11331 = vrcp.f32 %v6945_v8  ;;  %v6918_v30 = vmul.f32 1.442695, %v6857_v2  ;;  %v14331_v31 = vadd.f32 %v14154_v39, %v6747_v52  ;;  %v14490_v2 = vld [vmem:[#allocation32_spill] sm:$0xff] }
 0x820   : > { %v11314_v13 = vpop.eup %11313  ;;  %v7099_v47 = vadd.f32 %v7035_v63, %v14484_v11  ;;  %v6944_v51 = vadd.f32 1.0, %v11312_v61  ;;  %11333 = vpow2.f32 %v6912_v54  ;;  %v6916_v7 = vmul.f32 1.442695, %v6856_v58  ;;  %v14491_v61 = vld [vmem:[#allocation31_spill] sm:$0xff]  ;;  %v14492_v11 = vld [vmem:[#allocation34_spill] sm:$0xff] }
 0x821   : > { %v11316_v50 = vpop.eup %11315  ;;  %v7098_v21 = vadd.f32 %v7034_v53, %v14485_v49  ;;  %v6947_v3 = vadd.f32 1.0, %v11314_v13  ;;  %11335 = vpow2.f32 %v6918_v30  ;;  %v6859_v24 = vsub.f32 0.0, %v14327_v34 }
 0x822   : > { %v11318_v48 = vpop.eup %11317  ;;  %7131 = vst [vmem:[%s14225_s23 + $0x78] sm:$0xff] %v7099_v47  ;;  %v7037_v26 = vmul.f32 %v11316_v50, %v14232_v55  ;;  %11337 = vrcp.f32 %v6944_v51  ;;  %v6858_v39 = vsub.f32 0.0, %v14331_v31 }
 0x823   : > { %v11320_v28 = vpop.eup %11319  ;;  %7130 = vst [vmem:[%s14225_s23 + $0x70] sm:$0xff] %v7098_v21  ;;  %v7036_v27 = vmul.f32 %v11318_v48, %v14237_v22  ;;  %11339 = vrcp.f32 %v6947_v3  ;;  %v6922_v17 = vmul.f32 1.442695, %v6859_v24  ;;  %v14493_v21 = vld [vmem:[#allocation33_spill] sm:$0xff]  ;;  %v14494_v48 = vld [vmem:[#allocation23_spill] sm:$0xff] }
 0x824   : > { %v11322_v62 = vpop.eup %11321  ;;  %v7101_v12 = vadd.f32 %v7037_v26, %v14486_v6  ;;  %v6946_v16 = vadd.f32 1.0, %v11320_v28  ;;  %11341 = vpow2.f32 %v6916_v7  ;;  %v6920_v56 = vmul.f32 1.442695, %v6858_v39  ;;  %v14496_v6 = vld [vmem:[#allocation8_spill] sm:$0xff] }
 0x825   : > { %v11324_v35 = vpop.eup %11323  ;;  %v7100_v55 = vadd.f32 %v7036_v27, %v14487_v57  ;;  %v6949_v4 = vadd.f32 1.0, %v11322_v62  ;;  %11343 = vpow2.f32 %v6922_v17 }
 0x826   : > { %v11326_v19 = vpop.eup %11325  ;;  %7133 = vst [vmem:[%s14225_s23 + $0x88] sm:$0xff] %v7101_v12  ;;  %v7039_v5 = vmul.f32 %v11324_v35, %v14248_v14  ;;  %11345 = vrcp.f32 %v6946_v16 }
 0x827   : > { %v11328_v22 = vpop.eup %11327  ;;  %7132 = vst [vmem:[%s14225_s23 + $0x80] sm:$0xff] %v7100_v55  ;;  %11347 = vrcp.f32 %v6949_v4  ;;  %v6948_v41 = vadd.f32 1.0, %v11326_v19  ;;  %v14498_v55 = vld [vmem:[#allocation26_spill] sm:$0xff] }
 0x828   : > { %v11330_v25 = vpop.eup %11329  ;;  %v7103_v40 = vadd.f32 %v7039_v5, %v14488_v36  ;;  %v7038_v59 = vmul.f32 %v11328_v22, %v14253_v60  ;;  %11349 = vpow2.f32 %v6920_v56  ;;  %v14497_v56 = vld [vmem:[#allocation25_spill] sm:$0xff]  ;;  %v14499_v22 = vld [vmem:[#allocation27_spill] sm:$0xff] }
 0x829   : > { %v11332_v44 = vpop.eup %11331  ;;  %11351 = vrcp.f32 %v6948_v41  ;;  %v6951_v10 = vadd.f32 1.0, %v11330_v25  ;;  %v14500_v25 = vld [vmem:[#allocation29_spill] sm:$0xff] }
 0x82a   : > { %v11334_v20 = vpop.eup %11333  ;;  %7135 = vst [vmem:[%s14225_s23 + $0x98] sm:$0xff] %v7103_v40  ;;  %v7102_v14 = vadd.f32 %v14489_v43, %v7038_v59  ;;  %v7041_v29 = vmul.f32 %v11332_v44, %v14262_v45  ;;  %v14501_v40 = vld [vmem:[#allocation28_spill] sm:$0xff] }
 0x82b   : > { %v11336_v54 = vpop.eup %11335  ;;  %11353 = vrcp.f32 %v6951_v10  ;;  %v6950_v32 = vadd.f32 1.0, %v11334_v20 }
 0x82c   : > { %v11338_v8 = vpop.eup %11337  ;;  %7134 = vst [vmem:[%s14225_s23 + $0x90] sm:$0xff] %v7102_v14  ;;  %v7105_v15 = vadd.f32 %v14490_v2, %v7041_v29  ;;  %v6953_v60 = vadd.f32 1.0, %v11336_v54 }
 0x82d   : > { %v11340_v33 = vpop.eup %11339  ;;  %v7040_v63 = vmul.f32 %v11338_v8, %v14266_v38  ;;  %11355 = vrcp.f32 %v6950_v32 }
 0x82e   : > { %v11342_v58 = vpop.eup %11341  ;;  %7137 = vst [vmem:[%s14225_s23 + $0xa8] sm:$0xff] %v7105_v15  ;;  %v7043_v52 = vmul.f32 %v11340_v33, %v14271_v0  ;;  %11357 = vrcp.f32 %v6953_v60 }
 0x82f   : > { %v11344_v45 = vpop.eup %11343  ;;  %v7104_v53 = vadd.f32 %v14491_v61, %v7040_v63  ;;  %v6952_v30 = vadd.f32 1.0, %v11342_v58 }
 0x830   : > { %v11346_v13 = vpop.eup %11345  ;;  %v7107_v47 = vadd.f32 %v14492_v11, %v7043_v52  ;;  %v6955_v51 = vadd.f32 1.0, %v11344_v45 }
 0x831   : > { %v11348_v7 = vpop.eup %11347  ;;  %7136 = vst [vmem:[%s14225_s23 + $0xa0] sm:$0xff] %v7104_v53  ;;  %v7042_v38 = vmul.f32 %v11346_v13, %v14276_v9  ;;  %11359 = vrcp.f32 %v6952_v30  ;;  %v14495_v9 = vld [vmem:[#allocation24_spill] sm:$0xff] }
 0x832   : > { %v11350_v50 = vpop.eup %11349  ;;  %7139 = vst [vmem:[%s14225_s23 + $0xb8] sm:$0xff] %v7107_v47  ;;  %v7045_v0 = vmul.f32 %v11348_v7, %v14287_v46  ;;  %11361 = vrcp.f32 %v6955_v51 }
 0x833   : > { %v11352_v49 = vpop.eup %11351  ;;  %v7106_v3 = vadd.f32 %v14493_v21, %v7042_v38  ;;  %v6954_v24 = vadd.f32 1.0, %v11350_v50 }
 0x834   : > { %v7109_v26 = vadd.f32 %v7045_v0, %v14494_v48  ;;  %v7044_v39 = vmul.f32 %v11352_v49, %v14292_v1 }
 0x835   : > { %v11354_v28 = vpop.eup %11353  ;;  %7138 = vst [vmem:[%s14225_s23 + $0xb0] sm:$0xff] %v7106_v3  ;;  %11363 = vrcp.f32 %v6954_v24 }
 0x836   : > { %7141 = vst [vmem:[%s14225_s23 + $0xc8] sm:$0xff] %v7109_v26  ;;  %v7108_v27 = vadd.f32 %v7044_v39, %v14495_v9  ;;  %v7047_v46 = vmul.f32 %v11354_v28, %v14301_v23 }
 0x837   : > { %v11356_v17 = vpop.eup %11355 }
 0x838   : > { %v11358_v62 = vpop.eup %11357  ;;  %7140 = vst [vmem:[%s14225_s23 + $0xc0] sm:$0xff] %v7108_v27  ;;  %v7111_v12 = vadd.f32 %v7047_v46, %v14496_v6  ;;  %v7046_v16 = vmul.f32 %v11356_v17, %v14306_v42 }
 0x839   : > { %v7049_v1 = vmul.f32 %v11358_v62, %v14315_v18 }
 0x83a   : > { %7143 = vst [vmem:[%s14225_s23 + $0xd8] sm:$0xff] %v7111_v12  ;;  %v7110_v35 = vadd.f32 %v7046_v16, %v14497_v56 }
 0x83b   : > { %v11360_v57 = vpop.eup %11359  ;;  %v7113_v4 = vadd.f32 %v7049_v1, %v14498_v55 }
 0x83c   : > { %v11362_v19 = vpop.eup %11361  ;;  %7142 = vst [vmem:[%s14225_s23 + $0xd0] sm:$0xff] %v7110_v35  ;;  %v7048_v23 = vmul.f32 %v11360_v57, %v14320_v37 }
 0x83d   : > { %7145 = vst [vmem:[%s14225_s23 + $0xe8] sm:$0xff] %v7113_v4  ;;  %v7051_v5 = vmul.f32 %v11362_v19, %v14327_v34 }
 0x83e   : > { %v7112_v41 = vadd.f32 %v7048_v23, %v14499_v22 }
 0x83f   : > { %v11364_v42 = vpop.eup %11363  ;;  %v7115_v36 = vadd.f32 %v7051_v5, %v14500_v25 }
 0x840   : > { %7144 = vst [vmem:[%s14225_s23 + $0xe0] sm:$0xff] %v7112_v41  ;;  %v7050_v18 = vmul.f32 %v11364_v42, %v14331_v31 }
 0x841   : > { %7147 = vst [vmem:[%s14225_s23 + $0xf8] sm:$0xff] %v7115_v36 }
 0x842   : > { %v7114_v59 = vadd.f32 %v7050_v18, %v14501_v40 }
 0x844   : > { %7146 = vst [vmem:[%s14225_s23 + $0xf0] sm:$0xff] %v7114_v59 }
 0x845 PF: > { %s15_s18 = sadd.s32 1, %s11400_s18  }
 0x846   : > { %p12_p4 = scmp.ge.s32.totalorder %s15_s18, 4  }
 0x848   :  { %14 = sbr.rel (!%p12_p4) target bundleno = 1 (0x1), region = 89 }

</bundles_post_ra>
